<compile_context>
chip_gen: v6e
topology: v6e:2x2x1
jax: 0.10.0
libtpu: 0.0.40
codegen_flags: <defaults>
</compile_context>

<pallas_src>
import functools

import jax
import jax.numpy as jnp
from jax.experimental import pallas as pl
from jax.experimental.pallas import tpu as pltpu


PAD_F = 32          # lane padding on each side of the fine (H*W) spatial axis
PAD_C = 32          # lane padding on each side of the coarse (H/2 * W/2) axis
N_MODULES = 3       # -> n_contracting_path = 2
DIM_IN = [4, 8, 16]
DIM_OUT = [8, 16, 8]
BN_EPS = 1e-5


# ----------------------------------------------------------------------------
# In-kernel building blocks
# ----------------------------------------------------------------------------

def _build_side_copies(t_ref, cin, padl, hw, mask_ref):
    """Fill the dw=-1 / dw=+1 blocks of a triple buffer from its dw=0 block.

    t_ref   : (3*cin, padl+hw+padl) bf16; rows [cin:2cin] hold the activation,
              pad lanes are zero.  Rows [0:cin] <- shift by -1 (left-edge mask),
              rows [2cin:3cin] <- shift by +1 (right-edge mask).
    mask_ref: (2, hw) bf16 0/1 [left-valid ; right-valid].
    """
    ml = mask_ref[0:1, :]
    mr = mask_ref[1:2, :]
    t_ref[0:cin, padl:padl + hw] = (
        t_ref[cin:2 * cin, padl - 1:padl - 1 + hw] * ml)
    t_ref[2 * cin:3 * cin, padl:padl + hw] = (
        t_ref[cin:2 * cin, padl + 1:padl + 1 + hw] * mr)


def _conv3x3_relu_bn(t_ref, w_ref, p_ref, wimg, padl, hw):
    """BN(ReLU(conv3x3(x) + bias)), stride 1, padding 1, on a triple buffer.

    t_ref: (3*Cin, padl+hw+padl) bf16 triple buffer (see _build_side_copies).
    w_ref: (3, Cout, 3*Cin) bf16, indexed by kh; K columns ordered [kw0 | kw1 | kw2].
    p_ref: (Cout, 3) f32 = [bias | bn_scale | bn_shift].
    Returns (Cout, hw) f32.
    """
    cout = w_ref.shape[1]
    acc = jnp.zeros((cout, hw), jnp.float32)
    for kh in range(3):                        # 3 fused row-tap matmuls (K = 3*Cin)
        start = padl + (kh - 1) * wimg
        acc = acc + jnp.dot(w_ref[kh], t_ref[:, start:start + hw],
                            preferred_element_type=jnp.float32)
    p = p_ref[...]
    bias, scale, shift = p[:, 0:1], p[:, 1:2], p[:, 2:3]
    # Conv bias -> ReLU -> BatchNorm affine (ReLU sits between conv and BN, so the
    # BN scale cannot be folded into the conv weights).
    return jnp.maximum(acc + bias, 0.0) * scale + shift


def _unet_kernel(x_ref,
                 w0a, p0a, w0b, p0b,
                 w1a, p1a, w1b, p1b,
                 wup, bup,
                 w2a, p2a, w2b, p2b,
                 mask_f, mask_c, sel_pool, scat,
                 out_ref,
                 t0a, t0b, t1a, t1m, t1b, t2a, t2b,
                 *, H, W):
    Hc, Wc = H // 2, W // 2
    HW, HWc = H * W, Hc * Wc
    PF, PC = PAD_F, PAD_C
    c0, d0, d1, d2 = DIM_IN[0], DIM_OUT[0], DIM_OUT[1], DIM_OUT[2]
    cup = DIM_IN[1]          # channels produced by the up-sampler (8)
    ccat = DIM_IN[2]         # channels of the concat [skip, up] (16)

    # Zero all scratch: pad lanes and never-written blocks must read as 0.
    # (Gating this on program_id(0)==0 would be unsafe under the megacore split.)
    for t in (t0a, t0b, t1a, t1m, t1b, t2a, t2b):
        t[...] = jnp.zeros_like(t)

    # ---------------- contracting module 0 (H x W lattice) ----------------
    t0a[c0:2 * c0, PF:PF + HW] = x_ref[0].astype(jnp.bfloat16)
    _build_side_copies(t0a, c0, PF, HW, mask_f)
    y = _conv3x3_relu_bn(t0a, w0a, p0a, W, PF, HW)
    t0b[d0:2 * d0, PF:PF + HW] = y.astype(jnp.bfloat16)
    _build_side_copies(t0b, d0, PF, HW, mask_f)
    skip = _conv3x3_relu_bn(t0b, w0b, p0b, W, PF, HW)            # (8, HW) f32
    # Skip tensor goes straight into the concat buffer (channels 0..7, dw=0 block).
    t2a[ccat:ccat + d0, PF:PF + HW] = skip.astype(jnp.bfloat16)

    # ---------------- fused MaxPool2d(kernel=2, stride=2) -----------------
    # Selected positions (even row / even col) never read pad or wrap, so no masks
    # are needed; sel_pool is a precomputed 0/1 bf16 constant -> exact selection.
    m4 = jnp.maximum(
        jnp.maximum(t2a[ccat:ccat + d0, PF:PF + HW],
                    t2a[ccat:ccat + d0, PF + 1:PF + 1 + HW]),
        jnp.maximum(t2a[ccat:ccat + d0, PF + W:PF + W + HW],
                    t2a[ccat:ccat + d0, PF + W + 1:PF + W + 1 + HW]))
    pooled = jnp.dot(m4, sel_pool[...], preferred_element_type=jnp.float32)
    t1a[d0:2 * d0, PC:PC + HWc] = pooled.astype(jnp.bfloat16)
    _build_side_copies(t1a, d0, PC, HWc, mask_c)

    # ---------------- contracting module 1 (Hc x Wc lattice) --------------
    y = _conv3x3_relu_bn(t1a, w1a, p1a, Wc, PC, HWc)
    t1m[d1:2 * d1, PC:PC + HWc] = y.astype(jnp.bfloat16)
    _build_side_copies(t1m, d1, PC, HWc, mask_c)
    y = _conv3x3_relu_bn(t1m, w1b, p1b, Wc, PC, HWc)             # (16, HWc) f32
    # Double buffer for the transpose-conv taps: rows [0:16]=dw0, [16:32]=dw+1.
    t1b[0:d1, PC:PC + HWc] = y.astype(jnp.bfloat16)
    t1b[d1:2 * d1, PC:PC + HWc] = t1b[0:d1, PC + 1:PC + 1 + HWc] * mask_c[1:2, :]

    # ------- ConvTranspose2d(16->8, k=3, s=2, p=1, out_p=1) ---------------
    # 4 output-parity planes from 3 fused matmuls, then 4 bf16 scatter matmuls.
    r0 = t1b[:, PC:PC + HWc]              # [x(0,0) ; x(0,+1)]   (32, HWc)
    r1 = t1b[:, PC + Wc:PC + Wc + HWc]    # [x(+1,0); x(+1,+1)]  (32, HWc)
    e_pl = jnp.dot(wup[0], r0, preferred_element_type=jnp.float32)        # [ee; eo]
    o_pl = (jnp.dot(wup[1], r0, preferred_element_type=jnp.float32) +
            jnp.dot(wup[2], r1, preferred_element_type=jnp.float32))      # [oe; oo]
    up = (jnp.dot(e_pl[0:cup].astype(jnp.bfloat16), scat[0],
                  preferred_element_type=jnp.float32) +
          jnp.dot(e_pl[cup:2 * cup].astype(jnp.bfloat16), scat[1],
                  preferred_element_type=jnp.float32) +
          jnp.dot(o_pl[0:cup].astype(jnp.bfloat16), scat[2],
                  preferred_element_type=jnp.float32) +
          jnp.dot(o_pl[cup:2 * cup].astype(jnp.bfloat16), scat[3],
                  preferred_element_type=jnp.float32))
    up = up + bup[...]                                           # (8, HW) f32
    # Concat order matches torch.cat([skip, upsampled], dim=1).
    t2a[ccat + d0:ccat + d0 + cup, PF:PF + HW] = up.astype(jnp.bfloat16)
    _build_side_copies(t2a, ccat, PF, HW, mask_f)

    # ---------------- expanding module (H x W lattice) --------------------
    y = _conv3x3_relu_bn(t2a, w2a, p2a, W, PF, HW)
    t2b[d2:2 * d2, PF:PF + HW] = y.astype(jnp.bfloat16)
    _build_side_copies(t2b, d2, PF, HW, mask_f)
    out_ref[0] = _conv3x3_relu_bn(t2b, w2b, p2b, W, PF, HW)


# ----------------------------------------------------------------------------
# Wrapper
# ----------------------------------------------------------------------------

def _const_spec(a):
    z = (0,) * a.ndim
    return pl.BlockSpec(a.shape, lambda n, _z=z: _z)


def _make_lattice_constants(H, W):
    """Host-precomputed bf16 edge masks, pool-selection and scatter matrices."""
    Hc, Wc = H // 2, W // 2
    HW, HWc = H * W, Hc * Wc
    pf = jnp.arange(HW)
    mask_f = jnp.stack([(pf % W) != 0, (pf % W) != (W - 1)]).astype(jnp.bfloat16)
    pc = jnp.arange(HWc)
    mask_c = jnp.stack([(pc % Wc) != 0, (pc % Wc) != (Wc - 1)]).astype(jnp.bfloat16)
    q = jnp.arange(HWc)
    base = 2 * (q // Wc) * W + 2 * (q % Wc)            # fine index of the (ee) pixel
    p = jnp.arange(HW)
    sel_pool = (p[:, None] == base[None, :]).astype(jnp.bfloat16)        # (HW, HWc)
    offs = jnp.array([0, 1, W, W + 1])                 # parity order [ee, eo, oe, oo]
    scat = ((base[None, :, None] + offs[:, None, None]) ==
            p[None, None, :]).astype(jnp.bfloat16)                       # (4, HWc, HW)
    return mask_f, mask_c, sel_pool, scat


def unet_forward(x_nchw, params):
    N, C, H, W = x_nchw.shape
    assert H % 2 == 0 and W % 2 == 0
    assert PAD_F >= W + 1 and PAD_C >= W // 2 + 1
    HW = H * W
    HWc = (H // 2) * (W // 2)
    d2 = DIM_OUT[2]

    x = x_nchw.reshape(N, C, HW).astype(jnp.float32)     # raw, un-padded DMA
    mask_f, mask_c, sel_pool, scat = _make_lattice_constants(H, W)

    order = ["w0a", "p0a", "w0b", "p0b", "w1a", "p1a", "w1b", "p1b",
             "wup", "bup", "w2a", "p2a", "w2b", "p2b"]
    flat = [params[k] for k in order] + [mask_f, mask_c, sel_pool, scat]

    scratch = [
        pltpu.VMEM((3 * DIM_IN[0], HW + 2 * PAD_F), jnp.bfloat16),    # t0a
        pltpu.VMEM((3 * DIM_OUT[0], HW + 2 * PAD_F), jnp.bfloat16),   # t0b
        pltpu.VMEM((3 * DIM_OUT[0], HWc + 2 * PAD_C), jnp.bfloat16),  # t1a
        pltpu.VMEM((3 * DIM_OUT[1], HWc + 2 * PAD_C), jnp.bfloat16),  # t1m
        pltpu.VMEM((2 * DIM_OUT[1], HWc + 2 * PAD_C), jnp.bfloat16),  # t1b
        pltpu.VMEM((3 * DIM_IN[2], HW + 2 * PAD_F), jnp.bfloat16),    # t2a (skip|up)
        pltpu.VMEM((3 * DIM_OUT[2], HW + 2 * PAD_F), jnp.bfloat16),   # t2b
    ]

    out = pl.pallas_call(
        functools.partial(_unet_kernel, H=H, W=W),
        out_shape=jax.ShapeDtypeStruct((N, d2, HW), jnp.float32),
        grid=(N,),
        in_specs=[pl.BlockSpec((1, C, HW), lambda n: (n, 0, 0))]
                 + [_const_spec(a) for a in flat],
        out_specs=pl.BlockSpec((1, d2, HW), lambda n: (n, 0, 0)),
        scratch_shapes=scratch,
        compiler_params=pltpu.CompilerParams(
            dimension_semantics=("parallel",)),
    )(x, *flat)
    return out.reshape(N, d2, H, W)


# ----------------------------------------------------------------------------
# Parameter construction (PyTorch layouts -> kernel packing)
# ----------------------------------------------------------------------------

def _pack_conv_w(w):
    # Conv2d weight (Cout, Cin, 3, 3) -> (3, Cout, 3*Cin): row = kh, K = [kw0|kw1|kw2].
    cout, cin = w.shape[0], w.shape[1]
    return jnp.transpose(w, (2, 0, 3, 1)).reshape(3, cout, 3 * cin).astype(jnp.bfloat16)


def _pack_convT_w(wt):
    # ConvTranspose2d weight (Cin, Cout, 3, 3) -> (3, 2*Cout, 2*Cin) parity-fused:
    #   [ee; eo] = W[0] @ [x00; x01]
    #   [oe; oo] = W[1] @ [x00; x01] + W[2] @ [x10; x11]
    cin, cout = wt.shape[0], wt.shape[1]
    wk = jnp.transpose(wt, (2, 3, 1, 0))               # (kh, kw, Cout, Cin)
    z = jnp.zeros((cout, cin), wt.dtype)

    def row(a, b):                                     # (Cout, 2*Cin)
        return jnp.concatenate([a, b], axis=1)

    wa = jnp.concatenate([row(wk[1, 1], z), row(wk[1, 2], wk[1, 0])], axis=0)
    wb = jnp.concatenate([row(wk[2, 1], z), row(wk[2, 2], wk[2, 0])], axis=0)
    wc = jnp.concatenate([row(wk[0, 1], z), row(wk[0, 2], wk[0, 0])], axis=0)
    return jnp.stack([wa, wb, wc]).astype(jnp.bfloat16)


def _fold_bn(key, c):
    k1, k2, k3, k4 = jax.random.split(key, 4)
    gamma = 1.0 + 0.1 * jax.random.normal(k1, (c,), jnp.float32)
    beta = 0.1 * jax.random.normal(k2, (c,), jnp.float32)
    mean = 0.1 * jax.random.normal(k3, (c,), jnp.float32)
    var = jax.random.uniform(k4, (c,), jnp.float32, minval=0.5, maxval=1.5)
    scale = gamma / jnp.sqrt(var + BN_EPS)
    shift = beta - mean * scale
    return scale, shift


def _init_conv_bn(key, cin, cout):
    kw_, kb_, kbn = jax.random.split(key, 3)
    w = 0.1 * jax.random.normal(kw_, (cout, cin, 3, 3), jnp.float32)
    b = 0.1 * jax.random.normal(kb_, (cout,), jnp.float32)
    scale, shift = _fold_bn(kbn, cout)
    p = jnp.stack([b, scale, shift], axis=1)           # (Cout, 3) f32
    return _pack_conv_w(w), p


def init_unet_params(key):
    keys = jax.random.split(key, 8)
    params = {}
    params["w0a"], params["p0a"] = _init_conv_bn(keys[0], DIM_IN[0], DIM_OUT[0])
    params["w0b"], params["p0b"] = _init_conv_bn(keys[1], DIM_OUT[0], DIM_OUT[0])
    params["w1a"], params["p1a"] = _init_conv_bn(keys[2], DIM_IN[1], DIM_OUT[1])
    params["w1b"], params["p1b"] = _init_conv_bn(keys[3], DIM_OUT[1], DIM_OUT[1])
    # up_samplers[0] = ConvTranspose2d(dim_out[1]=16, dim_in[1]=8, k=3, s=2, p=1, op=1)
    wt = 0.1 * jax.random.normal(keys[4], (DIM_OUT[1], DIM_IN[1], 3, 3), jnp.float32)
    bt = 0.1 * jax.random.normal(keys[5], (DIM_IN[1],), jnp.float32)
    params["wup"] = _pack_convT_w(wt)
    params["bup"] = bt.reshape(DIM_IN[1], 1)
    params["w2a"], params["p2a"] = _init_conv_bn(keys[6], DIM_IN[2], DIM_OUT[2])
    params["w2b"], params["p2b"] = _init_conv_bn(keys[7], DIM_OUT[2], DIM_OUT[2])
    return params


# ----------------------------------------------------------------------------

if __name__ == "__main__":
    key = jax.random.PRNGKey(0)
    kx, kp = jax.random.split(key)
    x = jax.random.normal(kx, (2, 4, 16, 16), jnp.float32)   # NCHW, like PyTorch
    params = init_unet_params(kp)

    fwd = jax.jit(lambda inp: unet_forward(inp, params))
    out = fwd(x)
    jax.block_until_ready(out)

    assert out.shape == (2, 8, 16, 16), out.shape
    assert bool(jnp.all(jnp.isfinite(out)))
    print("KERNEL_OK")
</pallas_src>

<mosaic_0001>
module attributes {stable_mosaic.version = 11 : i64} {
  func.func @_unet_kernel(%arg0: i32, %arg1: memref<1x4x256xf32, #tpu.memory_space<vmem>>, %arg2: memref<3x8x12xbf16, #tpu.memory_space<vmem>>, %arg3: memref<8x3xf32, #tpu.memory_space<vmem>>, %arg4: memref<3x8x24xbf16, #tpu.memory_space<vmem>>, %arg5: memref<8x3xf32, #tpu.memory_space<vmem>>, %arg6: memref<3x16x24xbf16, #tpu.memory_space<vmem>>, %arg7: memref<16x3xf32, #tpu.memory_space<vmem>>, %arg8: memref<3x16x48xbf16, #tpu.memory_space<vmem>>, %arg9: memref<16x3xf32, #tpu.memory_space<vmem>>, %arg10: memref<3x16x32xbf16, #tpu.memory_space<vmem>>, %arg11: memref<8x1xf32, #tpu.memory_space<vmem>>, %arg12: memref<3x8x48xbf16, #tpu.memory_space<vmem>>, %arg13: memref<8x3xf32, #tpu.memory_space<vmem>>, %arg14: memref<3x8x24xbf16, #tpu.memory_space<vmem>>, %arg15: memref<8x3xf32, #tpu.memory_space<vmem>>, %arg16: memref<2x256xbf16, #tpu.memory_space<vmem>>, %arg17: memref<2x64xbf16, #tpu.memory_space<vmem>>, %arg18: memref<256x64xbf16, #tpu.memory_space<vmem>>, %arg19: memref<4x64x256xbf16, #tpu.memory_space<vmem>>, %arg20: memref<1x8x256xf32, #tpu.memory_space<vmem>>, %arg21: memref<12x320xbf16, #tpu.memory_space<vmem>>, %arg22: memref<24x320xbf16, #tpu.memory_space<vmem>>, %arg23: memref<24x128xbf16, #tpu.memory_space<vmem>>, %arg24: memref<48x128xbf16, #tpu.memory_space<vmem>>, %arg25: memref<32x128xbf16, #tpu.memory_space<vmem>>, %arg26: memref<48x320xbf16, #tpu.memory_space<vmem>>, %arg27: memref<24x320xbf16, #tpu.memory_space<vmem>>) attributes {dimension_semantics = [#tpu.dimension_semantics<parallel>], iteration_bounds = array<i64: 2>, scalar_prefetch = 0 : i64, scratch_operands = 7 : i64, tpu.core_type = #tpu.core_type<tc>, window_params = [{transform_indices = @transform_0, window_bounds = array<i64: 1, 4, 256>}, {pipeline_mode = #tpu.pipeline_mode<synchronous>, transform_indices = @transform_1, window_bounds = array<i64: 3, 8, 12>}, {pipeline_mode = #tpu.pipeline_mode<synchronous>, transform_indices = @transform_2, window_bounds = array<i64: 8, 3>}, {pipeline_mode = #tpu.pipeline_mode<synchronous>, transform_indices = @transform_3, window_bounds = array<i64: 3, 8, 24>}, {pipeline_mode = #tpu.pipeline_mode<synchronous>, transform_indices = @transform_4, window_bounds = array<i64: 8, 3>}, {pipeline_mode = #tpu.pipeline_mode<synchronous>, transform_indices = @transform_5, window_bounds = array<i64: 3, 16, 24>}, {pipeline_mode = #tpu.pipeline_mode<synchronous>, transform_indices = @transform_6, window_bounds = array<i64: 16, 3>}, {pipeline_mode = #tpu.pipeline_mode<synchronous>, transform_indices = @transform_7, window_bounds = array<i64: 3, 16, 48>}, {pipeline_mode = #tpu.pipeline_mode<synchronous>, transform_indices = @transform_8, window_bounds = array<i64: 16, 3>}, {pipeline_mode = #tpu.pipeline_mode<synchronous>, transform_indices = @transform_9, window_bounds = array<i64: 3, 16, 32>}, {pipeline_mode = #tpu.pipeline_mode<synchronous>, transform_indices = @transform_10, window_bounds = array<i64: 8, 1>}, {pipeline_mode = #tpu.pipeline_mode<synchronous>, transform_indices = @transform_11, window_bounds = array<i64: 3, 8, 48>}, {pipeline_mode = #tpu.pipeline_mode<synchronous>, transform_indices = @transform_12, window_bounds = array<i64: 8, 3>}, {pipeline_mode = #tpu.pipeline_mode<synchronous>, transform_indices = @transform_13, window_bounds = array<i64: 3, 8, 24>}, {pipeline_mode = #tpu.pipeline_mode<synchronous>, transform_indices = @transform_14, window_bounds = array<i64: 8, 3>}, {pipeline_mode = #tpu.pipeline_mode<synchronous>, transform_indices = @transform_15, window_bounds = array<i64: 2, 256>}, {pipeline_mode = #tpu.pipeline_mode<synchronous>, transform_indices = @transform_16, window_bounds = array<i64: 2, 64>}, {pipeline_mode = #tpu.pipeline_mode<synchronous>, transform_indices = @transform_17, window_bounds = array<i64: 256, 64>}, {pipeline_mode = #tpu.pipeline_mode<synchronous>, transform_indices = @transform_18, window_bounds = array<i64: 4, 64, 256>}, {transform_indices = @transform_19, window_bounds = array<i64: 1, 8, 256>}]} {
    %cst = arith.constant 0.000000e+00 : bf16
    %0 = vector.broadcast %cst : bf16 to vector<12x320xbf16>
    %c0 = arith.constant 0 : index
    %c0_0 = arith.constant 0 : index
    %1 = vector.load %arg21[%c0, %c0_0] : memref<12x320xbf16, #tpu.memory_space<vmem>>, vector<12x320xbf16>
    tpu.vector_store %arg21[%c0, %c0_0], %0 {strides = array<i32>} : memref<12x320xbf16, #tpu.memory_space<vmem>>, vector<12x320xbf16>,
    %cst_1 = arith.constant 0.000000e+00 : bf16
    %2 = vector.broadcast %cst_1 : bf16 to vector<24x320xbf16>
    %c0_2 = arith.constant 0 : index
    %c0_3 = arith.constant 0 : index
    %3 = vector.load %arg22[%c0_2, %c0_3] : memref<24x320xbf16, #tpu.memory_space<vmem>>, vector<24x320xbf16>
    tpu.vector_store %arg22[%c0_2, %c0_3], %2 {strides = array<i32>} : memref<24x320xbf16, #tpu.memory_space<vmem>>, vector<24x320xbf16>,
    %cst_4 = arith.constant 0.000000e+00 : bf16
    %4 = vector.broadcast %cst_4 : bf16 to vector<24x128xbf16>
    %c0_5 = arith.constant 0 : index
    %c0_6 = arith.constant 0 : index
    %5 = vector.load %arg23[%c0_5, %c0_6] : memref<24x128xbf16, #tpu.memory_space<vmem>>, vector<24x128xbf16>
    tpu.vector_store %arg23[%c0_5, %c0_6], %4 {strides = array<i32>} : memref<24x128xbf16, #tpu.memory_space<vmem>>, vector<24x128xbf16>,
    %cst_7 = arith.constant 0.000000e+00 : bf16
    %6 = vector.broadcast %cst_7 : bf16 to vector<48x128xbf16>
    %c0_8 = arith.constant 0 : index
    %c0_9 = arith.constant 0 : index
    %7 = vector.load %arg24[%c0_8, %c0_9] : memref<48x128xbf16, #tpu.memory_space<vmem>>, vector<48x128xbf16>
    tpu.vector_store %arg24[%c0_8, %c0_9], %6 {strides = array<i32>} : memref<48x128xbf16, #tpu.memory_space<vmem>>, vector<48x128xbf16>,
    %cst_10 = arith.constant 0.000000e+00 : bf16
    %8 = vector.broadcast %cst_10 : bf16 to vector<32x128xbf16>
    %c0_11 = arith.constant 0 : index
    %c0_12 = arith.constant 0 : index
    %9 = vector.load %arg25[%c0_11, %c0_12] : memref<32x128xbf16, #tpu.memory_space<vmem>>, vector<32x128xbf16>
    tpu.vector_store %arg25[%c0_11, %c0_12], %8 {strides = array<i32>} : memref<32x128xbf16, #tpu.memory_space<vmem>>, vector<32x128xbf16>,
    %cst_13 = arith.constant 0.000000e+00 : bf16
    %10 = vector.broadcast %cst_13 : bf16 to vector<48x320xbf16>
    %c0_14 = arith.constant 0 : index
    %c0_15 = arith.constant 0 : index
    %11 = vector.load %arg26[%c0_14, %c0_15] : memref<48x320xbf16, #tpu.memory_space<vmem>>, vector<48x320xbf16>
    tpu.vector_store %arg26[%c0_14, %c0_15], %10 {strides = array<i32>} : memref<48x320xbf16, #tpu.memory_space<vmem>>, vector<48x320xbf16>,
    %cst_16 = arith.constant 0.000000e+00 : bf16
    %12 = vector.broadcast %cst_16 : bf16 to vector<24x320xbf16>
    %c0_17 = arith.constant 0 : index
    %c0_18 = arith.constant 0 : index
    %13 = vector.load %arg27[%c0_17, %c0_18] : memref<24x320xbf16, #tpu.memory_space<vmem>>, vector<24x320xbf16>
    tpu.vector_store %arg27[%c0_17, %c0_18], %12 {strides = array<i32>} : memref<24x320xbf16, #tpu.memory_space<vmem>>, vector<24x320xbf16>,
    %c0_19 = arith.constant 0 : index
    %c0_20 = arith.constant 0 : index
    %c0_21 = arith.constant 0 : index
    %14 = vector.load %arg1[%c0_19, %c0_20, %c0_21] : memref<1x4x256xf32, #tpu.memory_space<vmem>>, vector<1x4x256xf32>
    %15 = vector.shape_cast %14 : vector<1x4x256xf32> to vector<4x256xf32>
    %16 = arith.truncf %15 : vector<4x256xf32> to vector<4x256xbf16>
    %c4 = arith.constant 4 : index
    %c32 = arith.constant 32 : index
    %17 = vector.load %arg21[%c4, %c32] : memref<12x320xbf16, #tpu.memory_space<vmem>>, vector<4x256xbf16>
    tpu.vector_store %arg21[%c4, %c32], %16 {strides = array<i32>} : memref<12x320xbf16, #tpu.memory_space<vmem>>, vector<4x256xbf16>,
    %c0_22 = arith.constant 0 : index
    %c0_23 = arith.constant 0 : index
    %18 = vector.load %arg16[%c0_22, %c0_23] : memref<2x256xbf16, #tpu.memory_space<vmem>>, vector<1x256xbf16>
    %c1 = arith.constant 1 : index
    %c0_24 = arith.constant 0 : index
    %19 = vector.load %arg16[%c1, %c0_24] : memref<2x256xbf16, #tpu.memory_space<vmem>>, vector<1x256xbf16>
    %c4_25 = arith.constant 4 : index
    %c31 = arith.constant 31 : index
    %20 = vector.load %arg21[%c4_25, %c31] : memref<12x320xbf16, #tpu.memory_space<vmem>>, vector<4x256xbf16>
    %21 = vector.broadcast %18 : vector<1x256xbf16> to vector<4x256xbf16>
    %22 = arith.mulf %20, %21 : vector<4x256xbf16>
    %c0_26 = arith.constant 0 : index
    %c32_27 = arith.constant 32 : index
    %23 = vector.load %arg21[%c0_26, %c32_27] : memref<12x320xbf16, #tpu.memory_space<vmem>>, vector<4x256xbf16>
    tpu.vector_store %arg21[%c0_26, %c32_27], %22 {strides = array<i32>} : memref<12x320xbf16, #tpu.memory_space<vmem>>, vector<4x256xbf16>,
    %c4_28 = arith.constant 4 : index
    %c33 = arith.constant 33 : index
    %24 = vector.load %arg21[%c4_28, %c33] : memref<12x320xbf16, #tpu.memory_space<vmem>>, vector<4x256xbf16>
    %25 = vector.broadcast %19 : vector<1x256xbf16> to vector<4x256xbf16>
    %26 = arith.mulf %24, %25 : vector<4x256xbf16>
    %c8 = arith.constant 8 : index
    %c32_29 = arith.constant 32 : index
    %27 = vector.load %arg21[%c8, %c32_29] : memref<12x320xbf16, #tpu.memory_space<vmem>>, vector<4x256xbf16>
    tpu.vector_store %arg21[%c8, %c32_29], %26 {strides = array<i32>} : memref<12x320xbf16, #tpu.memory_space<vmem>>, vector<4x256xbf16>,
    %cst_30 = arith.constant 0.000000e+00 : f32
    %28 = vector.broadcast %cst_30 : f32 to vector<8x256xf32>
    %c0_31 = arith.constant 0 : index
    %c0_32 = arith.constant 0 : index
    %c0_33 = arith.constant 0 : index
    %29 = vector.load %arg2[%c0_31, %c0_32, %c0_33] : memref<3x8x12xbf16, #tpu.memory_space<vmem>>, vector<1x8x12xbf16>
    %30 = vector.shape_cast %29 : vector<1x8x12xbf16> to vector<8x12xbf16>
    %c0_34 = arith.constant 0 : index
    %c16 = arith.constant 16 : index
    %31 = vector.load %arg21[%c0_34, %c16] : memref<12x320xbf16, #tpu.memory_space<vmem>>, vector<12x256xbf16>
    %cst_35 = arith.constant dense<0.000000e+00> : vector<8x256xf32>
    %32 = tpu.matmul %30, %31, %cst_35 {dimension_numbers = #tpu.dot_dimension_numbers<[1], [0], [0], [1], [0, 0, 1, 1], [], []>} : vector<8x12xbf16>, vector<12x256xbf16>, vector<8x256xf32> -> vector<8x256xf32>
    %33 = arith.addf %28, %32 : vector<8x256xf32>
    %c1_36 = arith.constant 1 : index
    %c0_37 = arith.constant 0 : index
    %c0_38 = arith.constant 0 : index
    %34 = vector.load %arg2[%c1_36, %c0_37, %c0_38] : memref<3x8x12xbf16, #tpu.memory_space<vmem>>, vector<1x8x12xbf16>
    %35 = vector.shape_cast %34 : vector<1x8x12xbf16> to vector<8x12xbf16>
    %c0_39 = arith.constant 0 : index
    %c32_40 = arith.constant 32 : index
    %36 = vector.load %arg21[%c0_39, %c32_40] : memref<12x320xbf16, #tpu.memory_space<vmem>>, vector<12x256xbf16>
    %cst_41 = arith.constant dense<0.000000e+00> : vector<8x256xf32>
    %37 = tpu.matmul %35, %36, %cst_41 {dimension_numbers = #tpu.dot_dimension_numbers<[1], [0], [0], [1], [0, 0, 1, 1], [], []>} : vector<8x12xbf16>, vector<12x256xbf16>, vector<8x256xf32> -> vector<8x256xf32>
    %38 = arith.addf %33, %37 : vector<8x256xf32>
    %c2 = arith.constant 2 : index
    %c0_42 = arith.constant 0 : index
    %c0_43 = arith.constant 0 : index
    %39 = vector.load %arg2[%c2, %c0_42, %c0_43] : memref<3x8x12xbf16, #tpu.memory_space<vmem>>, vector<1x8x12xbf16>
    %40 = vector.shape_cast %39 : vector<1x8x12xbf16> to vector<8x12xbf16>
    %c0_44 = arith.constant 0 : index
    %c48 = arith.constant 48 : index
    %41 = vector.load %arg21[%c0_44, %c48] : memref<12x320xbf16, #tpu.memory_space<vmem>>, vector<12x256xbf16>
    %cst_45 = arith.constant dense<0.000000e+00> : vector<8x256xf32>
    %42 = tpu.matmul %40, %41, %cst_45 {dimension_numbers = #tpu.dot_dimension_numbers<[1], [0], [0], [1], [0, 0, 1, 1], [], []>} : vector<8x12xbf16>, vector<12x256xbf16>, vector<8x256xf32> -> vector<8x256xf32>
    %43 = arith.addf %38, %42 : vector<8x256xf32>
    %c0_46 = arith.constant 0 : index
    %c0_47 = arith.constant 0 : index
    %44 = vector.load %arg3[%c0_46, %c0_47] : memref<8x3xf32, #tpu.memory_space<vmem>>, vector<8x3xf32>
    %45 = vector.extract_strided_slice %44 {offsets = [0, 0], sizes = [8, 1], strides = [1, 1]} : vector<8x3xf32> to vector<8x1xf32>
    %46 = vector.extract_strided_slice %44 {offsets = [0, 1], sizes = [8, 1], strides = [1, 1]} : vector<8x3xf32> to vector<8x1xf32>
    %47 = vector.extract_strided_slice %44 {offsets = [0, 2], sizes = [8, 1], strides = [1, 1]} : vector<8x3xf32> to vector<8x1xf32>
    %48 = vector.broadcast %45 : vector<8x1xf32> to vector<8x256xf32>
    %49 = arith.addf %43, %48 : vector<8x256xf32>
    %cst_48 = arith.constant 0.000000e+00 : f32
    %50 = vector.broadcast %cst_48 : f32 to vector<8x256xf32>
    %51 = arith.maximumf %49, %50 : vector<8x256xf32>
    %52 = vector.broadcast %46 : vector<8x1xf32> to vector<8x256xf32>
    %53 = arith.mulf %51, %52 : vector<8x256xf32>
    %54 = vector.broadcast %47 : vector<8x1xf32> to vector<8x256xf32>
    %55 = arith.addf %53, %54 : vector<8x256xf32>
    %56 = arith.truncf %55 : vector<8x256xf32> to vector<8x256xbf16>
    %c8_49 = arith.constant 8 : index
    %c32_50 = arith.constant 32 : index
    %57 = vector.load %arg22[%c8_49, %c32_50] : memref<24x320xbf16, #tpu.memory_space<vmem>>, vector<8x256xbf16>
    tpu.vector_store %arg22[%c8_49, %c32_50], %56 {strides = array<i32>} : memref<24x320xbf16, #tpu.memory_space<vmem>>, vector<8x256xbf16>,
    %c0_51 = arith.constant 0 : index
    %c0_52 = arith.constant 0 : index
    %58 = vector.load %arg16[%c0_51, %c0_52] : memref<2x256xbf16, #tpu.memory_space<vmem>>, vector<1x256xbf16>
    %c1_53 = arith.constant 1 : index
    %c0_54 = arith.constant 0 : index
    %59 = vector.load %arg16[%c1_53, %c0_54] : memref<2x256xbf16, #tpu.memory_space<vmem>>, vector<1x256xbf16>
    %c8_55 = arith.constant 8 : index
    %c31_56 = arith.constant 31 : index
    %60 = vector.load %arg22[%c8_55, %c31_56] : memref<24x320xbf16, #tpu.memory_space<vmem>>, vector<8x256xbf16>
    %61 = vector.broadcast %58 : vector<1x256xbf16> to vector<8x256xbf16>
    %62 = arith.mulf %60, %61 : vector<8x256xbf16>
    %c0_57 = arith.constant 0 : index
    %c32_58 = arith.constant 32 : index
    %63 = vector.load %arg22[%c0_57, %c32_58] : memref<24x320xbf16, #tpu.memory_space<vmem>>, vector<8x256xbf16>
    tpu.vector_store %arg22[%c0_57, %c32_58], %62 {strides = array<i32>} : memref<24x320xbf16, #tpu.memory_space<vmem>>, vector<8x256xbf16>,
    %c8_59 = arith.constant 8 : index
    %c33_60 = arith.constant 33 : index
    %64 = vector.load %arg22[%c8_59, %c33_60] : memref<24x320xbf16, #tpu.memory_space<vmem>>, vector<8x256xbf16>
    %65 = vector.broadcast %59 : vector<1x256xbf16> to vector<8x256xbf16>
    %66 = arith.mulf %64, %65 : vector<8x256xbf16>
    %c16_61 = arith.constant 16 : index
    %c32_62 = arith.constant 32 : index
    %67 = vector.load %arg22[%c16_61, %c32_62] : memref<24x320xbf16, #tpu.memory_space<vmem>>, vector<8x256xbf16>
    tpu.vector_store %arg22[%c16_61, %c32_62], %66 {strides = array<i32>} : memref<24x320xbf16, #tpu.memory_space<vmem>>, vector<8x256xbf16>,
    %cst_63 = arith.constant 0.000000e+00 : f32
    %68 = vector.broadcast %cst_63 : f32 to vector<8x256xf32>
    %c0_64 = arith.constant 0 : index
    %c0_65 = arith.constant 0 : index
    %c0_66 = arith.constant 0 : index
    %69 = vector.load %arg4[%c0_64, %c0_65, %c0_66] : memref<3x8x24xbf16, #tpu.memory_space<vmem>>, vector<1x8x24xbf16>
    %70 = vector.shape_cast %69 : vector<1x8x24xbf16> to vector<8x24xbf16>
    %c0_67 = arith.constant 0 : index
    %c16_68 = arith.constant 16 : index
    %71 = vector.load %arg22[%c0_67, %c16_68] : memref<24x320xbf16, #tpu.memory_space<vmem>>, vector<24x256xbf16>
    %cst_69 = arith.constant dense<0.000000e+00> : vector<8x256xf32>
    %72 = tpu.matmul %70, %71, %cst_69 {dimension_numbers = #tpu.dot_dimension_numbers<[1], [0], [0], [1], [0, 0, 1, 1], [], []>} : vector<8x24xbf16>, vector<24x256xbf16>, vector<8x256xf32> -> vector<8x256xf32>
    %73 = arith.addf %68, %72 : vector<8x256xf32>
    %c1_70 = arith.constant 1 : index
    %c0_71 = arith.constant 0 : index
    %c0_72 = arith.constant 0 : index
    %74 = vector.load %arg4[%c1_70, %c0_71, %c0_72] : memref<3x8x24xbf16, #tpu.memory_space<vmem>>, vector<1x8x24xbf16>
    %75 = vector.shape_cast %74 : vector<1x8x24xbf16> to vector<8x24xbf16>
    %c0_73 = arith.constant 0 : index
    %c32_74 = arith.constant 32 : index
    %76 = vector.load %arg22[%c0_73, %c32_74] : memref<24x320xbf16, #tpu.memory_space<vmem>>, vector<24x256xbf16>
    %cst_75 = arith.constant dense<0.000000e+00> : vector<8x256xf32>
    %77 = tpu.matmul %75, %76, %cst_75 {dimension_numbers = #tpu.dot_dimension_numbers<[1], [0], [0], [1], [0, 0, 1, 1], [], []>} : vector<8x24xbf16>, vector<24x256xbf16>, vector<8x256xf32> -> vector<8x256xf32>
    %78 = arith.addf %73, %77 : vector<8x256xf32>
    %c2_76 = arith.constant 2 : index
    %c0_77 = arith.constant 0 : index
    %c0_78 = arith.constant 0 : index
    %79 = vector.load %arg4[%c2_76, %c0_77, %c0_78] : memref<3x8x24xbf16, #tpu.memory_space<vmem>>, vector<1x8x24xbf16>
    %80 = vector.shape_cast %79 : vector<1x8x24xbf16> to vector<8x24xbf16>
    %c0_79 = arith.constant 0 : index
    %c48_80 = arith.constant 48 : index
    %81 = vector.load %arg22[%c0_79, %c48_80] : memref<24x320xbf16, #tpu.memory_space<vmem>>, vector<24x256xbf16>
    %cst_81 = arith.constant dense<0.000000e+00> : vector<8x256xf32>
    %82 = tpu.matmul %80, %81, %cst_81 {dimension_numbers = #tpu.dot_dimension_numbers<[1], [0], [0], [1], [0, 0, 1, 1], [], []>} : vector<8x24xbf16>, vector<24x256xbf16>, vector<8x256xf32> -> vector<8x256xf32>
    %83 = arith.addf %78, %82 : vector<8x256xf32>
    %c0_82 = arith.constant 0 : index
    %c0_83 = arith.constant 0 : index
    %84 = vector.load %arg5[%c0_82, %c0_83] : memref<8x3xf32, #tpu.memory_space<vmem>>, vector<8x3xf32>
    %85 = vector.extract_strided_slice %84 {offsets = [0, 0], sizes = [8, 1], strides = [1, 1]} : vector<8x3xf32> to vector<8x1xf32>
    %86 = vector.extract_strided_slice %84 {offsets = [0, 1], sizes = [8, 1], strides = [1, 1]} : vector<8x3xf32> to vector<8x1xf32>
    %87 = vector.extract_strided_slice %84 {offsets = [0, 2], sizes = [8, 1], strides = [1, 1]} : vector<8x3xf32> to vector<8x1xf32>
    %88 = vector.broadcast %85 : vector<8x1xf32> to vector<8x256xf32>
    %89 = arith.addf %83, %88 : vector<8x256xf32>
    %cst_84 = arith.constant 0.000000e+00 : f32
    %90 = vector.broadcast %cst_84 : f32 to vector<8x256xf32>
    %91 = arith.maximumf %89, %90 : vector<8x256xf32>
    %92 = vector.broadcast %86 : vector<8x1xf32> to vector<8x256xf32>
    %93 = arith.mulf %91, %92 : vector<8x256xf32>
    %94 = vector.broadcast %87 : vector<8x1xf32> to vector<8x256xf32>
    %95 = arith.addf %93, %94 : vector<8x256xf32>
    %96 = arith.truncf %95 : vector<8x256xf32> to vector<8x256xbf16>
    %c16_85 = arith.constant 16 : index
    %c32_86 = arith.constant 32 : index
    %97 = vector.load %arg26[%c16_85, %c32_86] : memref<48x320xbf16, #tpu.memory_space<vmem>>, vector<8x256xbf16>
    tpu.vector_store %arg26[%c16_85, %c32_86], %96 {strides = array<i32>} : memref<48x320xbf16, #tpu.memory_space<vmem>>, vector<8x256xbf16>,
    %c16_87 = arith.constant 16 : index
    %c32_88 = arith.constant 32 : index
    %98 = vector.load %arg26[%c16_87, %c32_88] : memref<48x320xbf16, #tpu.memory_space<vmem>>, vector<8x256xbf16>
    %c16_89 = arith.constant 16 : index
    %c33_90 = arith.constant 33 : index
    %99 = vector.load %arg26[%c16_89, %c33_90] : memref<48x320xbf16, #tpu.memory_space<vmem>>, vector<8x256xbf16>
    %100 = arith.maximumf %98, %99 : vector<8x256xbf16>
    %c16_91 = arith.constant 16 : index
    %c48_92 = arith.constant 48 : index
    %101 = vector.load %arg26[%c16_91, %c48_92] : memref<48x320xbf16, #tpu.memory_space<vmem>>, vector<8x256xbf16>
    %c16_93 = arith.constant 16 : index
    %c49 = arith.constant 49 : index
    %102 = vector.load %arg26[%c16_93, %c49] : memref<48x320xbf16, #tpu.memory_space<vmem>>, vector<8x256xbf16>
    %103 = arith.maximumf %101, %102 : vector<8x256xbf16>
    %104 = arith.maximumf %100, %103 : vector<8x256xbf16>
    %c0_94 = arith.constant 0 : index
    %c0_95 = arith.constant 0 : index
    %105 = vector.load %arg18[%c0_94, %c0_95] : memref<256x64xbf16, #tpu.memory_space<vmem>>, vector<256x64xbf16>
    %cst_96 = arith.constant dense<0.000000e+00> : vector<8x64xf32>
    %106 = tpu.matmul %104, %105, %cst_96 {dimension_numbers = #tpu.dot_dimension_numbers<[1], [0], [0], [1], [0, 0, 1, 1], [], []>} : vector<8x256xbf16>, vector<256x64xbf16>, vector<8x64xf32> -> vector<8x64xf32>
    %107 = arith.truncf %106 : vector<8x64xf32> to vector<8x64xbf16>
    %c8_97 = arith.constant 8 : index
    %c32_98 = arith.constant 32 : index
    %108 = vector.load %arg23[%c8_97, %c32_98] : memref<24x128xbf16, #tpu.memory_space<vmem>>, vector<8x64xbf16>
    tpu.vector_store %arg23[%c8_97, %c32_98], %107 {strides = array<i32>} : memref<24x128xbf16, #tpu.memory_space<vmem>>, vector<8x64xbf16>,
    %c0_99 = arith.constant 0 : index
    %c0_100 = arith.constant 0 : index
    %109 = vector.load %arg17[%c0_99, %c0_100] : memref<2x64xbf16, #tpu.memory_space<vmem>>, vector<1x64xbf16>
    %c1_101 = arith.constant 1 : index
    %c0_102 = arith.constant 0 : index
    %110 = vector.load %arg17[%c1_101, %c0_102] : memref<2x64xbf16, #tpu.memory_space<vmem>>, vector<1x64xbf16>
    %c8_103 = arith.constant 8 : index
    %c31_104 = arith.constant 31 : index
    %111 = vector.load %arg23[%c8_103, %c31_104] : memref<24x128xbf16, #tpu.memory_space<vmem>>, vector<8x64xbf16>
    %112 = vector.broadcast %109 : vector<1x64xbf16> to vector<8x64xbf16>
    %113 = arith.mulf %111, %112 : vector<8x64xbf16>
    %c0_105 = arith.constant 0 : index
    %c32_106 = arith.constant 32 : index
    %114 = vector.load %arg23[%c0_105, %c32_106] : memref<24x128xbf16, #tpu.memory_space<vmem>>, vector<8x64xbf16>
    tpu.vector_store %arg23[%c0_105, %c32_106], %113 {strides = array<i32>} : memref<24x128xbf16, #tpu.memory_space<vmem>>, vector<8x64xbf16>,
    %c8_107 = arith.constant 8 : index
    %c33_108 = arith.constant 33 : index
    %115 = vector.load %arg23[%c8_107, %c33_108] : memref<24x128xbf16, #tpu.memory_space<vmem>>, vector<8x64xbf16>
    %116 = vector.broadcast %110 : vector<1x64xbf16> to vector<8x64xbf16>
    %117 = arith.mulf %115, %116 : vector<8x64xbf16>
    %c16_109 = arith.constant 16 : index
    %c32_110 = arith.constant 32 : index
    %118 = vector.load %arg23[%c16_109, %c32_110] : memref<24x128xbf16, #tpu.memory_space<vmem>>, vector<8x64xbf16>
    tpu.vector_store %arg23[%c16_109, %c32_110], %117 {strides = array<i32>} : memref<24x128xbf16, #tpu.memory_space<vmem>>, vector<8x64xbf16>,
    %cst_111 = arith.constant 0.000000e+00 : f32
    %119 = vector.broadcast %cst_111 : f32 to vector<16x64xf32>
    %c0_112 = arith.constant 0 : index
    %c0_113 = arith.constant 0 : index
    %c0_114 = arith.constant 0 : index
    %120 = vector.load %arg6[%c0_112, %c0_113, %c0_114] : memref<3x16x24xbf16, #tpu.memory_space<vmem>>, vector<1x16x24xbf16>
    %121 = vector.shape_cast %120 : vector<1x16x24xbf16> to vector<16x24xbf16>
    %c0_115 = arith.constant 0 : index
    %c24 = arith.constant 24 : index
    %122 = vector.load %arg23[%c0_115, %c24] : memref<24x128xbf16, #tpu.memory_space<vmem>>, vector<24x64xbf16>
    %cst_116 = arith.constant dense<0.000000e+00> : vector<16x64xf32>
    %123 = tpu.matmul %121, %122, %cst_116 {dimension_numbers = #tpu.dot_dimension_numbers<[1], [0], [0], [1], [0, 0, 1, 1], [], []>} : vector<16x24xbf16>, vector<24x64xbf16>, vector<16x64xf32> -> vector<16x64xf32>
    %124 = arith.addf %119, %123 : vector<16x64xf32>
    %c1_117 = arith.constant 1 : index
    %c0_118 = arith.constant 0 : index
    %c0_119 = arith.constant 0 : index
    %125 = vector.load %arg6[%c1_117, %c0_118, %c0_119] : memref<3x16x24xbf16, #tpu.memory_space<vmem>>, vector<1x16x24xbf16>
    %126 = vector.shape_cast %125 : vector<1x16x24xbf16> to vector<16x24xbf16>
    %c0_120 = arith.constant 0 : index
    %c32_121 = arith.constant 32 : index
    %127 = vector.load %arg23[%c0_120, %c32_121] : memref<24x128xbf16, #tpu.memory_space<vmem>>, vector<24x64xbf16>
    %cst_122 = arith.constant dense<0.000000e+00> : vector<16x64xf32>
    %128 = tpu.matmul %126, %127, %cst_122 {dimension_numbers = #tpu.dot_dimension_numbers<[1], [0], [0], [1], [0, 0, 1, 1], [], []>} : vector<16x24xbf16>, vector<24x64xbf16>, vector<16x64xf32> -> vector<16x64xf32>
    %129 = arith.addf %124, %128 : vector<16x64xf32>
    %c2_123 = arith.constant 2 : index
    %c0_124 = arith.constant 0 : index
    %c0_125 = arith.constant 0 : index
    %130 = vector.load %arg6[%c2_123, %c0_124, %c0_125] : memref<3x16x24xbf16, #tpu.memory_space<vmem>>, vector<1x16x24xbf16>
    %131 = vector.shape_cast %130 : vector<1x16x24xbf16> to vector<16x24xbf16>
    %c0_126 = arith.constant 0 : index
    %c40 = arith.constant 40 : index
    %132 = vector.load %arg23[%c0_126, %c40] : memref<24x128xbf16, #tpu.memory_space<vmem>>, vector<24x64xbf16>
    %cst_127 = arith.constant dense<0.000000e+00> : vector<16x64xf32>
    %133 = tpu.matmul %131, %132, %cst_127 {dimension_numbers = #tpu.dot_dimension_numbers<[1], [0], [0], [1], [0, 0, 1, 1], [], []>} : vector<16x24xbf16>, vector<24x64xbf16>, vector<16x64xf32> -> vector<16x64xf32>
    %134 = arith.addf %129, %133 : vector<16x64xf32>
    %c0_128 = arith.constant 0 : index
    %c0_129 = arith.constant 0 : index
    %135 = vector.load %arg7[%c0_128, %c0_129] : memref<16x3xf32, #tpu.memory_space<vmem>>, vector<16x3xf32>
    %136 = vector.extract_strided_slice %135 {offsets = [0, 0], sizes = [16, 1], strides = [1, 1]} : vector<16x3xf32> to vector<16x1xf32>
    %137 = vector.extract_strided_slice %135 {offsets = [0, 1], sizes = [16, 1], strides = [1, 1]} : vector<16x3xf32> to vector<16x1xf32>
    %138 = vector.extract_strided_slice %135 {offsets = [0, 2], sizes = [16, 1], strides = [1, 1]} : vector<16x3xf32> to vector<16x1xf32>
    %139 = vector.broadcast %136 : vector<16x1xf32> to vector<16x64xf32>
    %140 = arith.addf %134, %139 : vector<16x64xf32>
    %cst_130 = arith.constant 0.000000e+00 : f32
    %141 = vector.broadcast %cst_130 : f32 to vector<16x64xf32>
    %142 = arith.maximumf %140, %141 : vector<16x64xf32>
    %143 = vector.broadcast %137 : vector<16x1xf32> to vector<16x64xf32>
    %144 = arith.mulf %142, %143 : vector<16x64xf32>
    %145 = vector.broadcast %138 : vector<16x1xf32> to vector<16x64xf32>
    %146 = arith.addf %144, %145 : vector<16x64xf32>
    %147 = arith.truncf %146 : vector<16x64xf32> to vector<16x64xbf16>
    %c16_131 = arith.constant 16 : index
    %c32_132 = arith.constant 32 : index
    %148 = vector.load %arg24[%c16_131, %c32_132] : memref<48x128xbf16, #tpu.memory_space<vmem>>, vector<16x64xbf16>
    tpu.vector_store %arg24[%c16_131, %c32_132], %147 {strides = array<i32>} : memref<48x128xbf16, #tpu.memory_space<vmem>>, vector<16x64xbf16>,
    %c0_133 = arith.constant 0 : index
    %c0_134 = arith.constant 0 : index
    %149 = vector.load %arg17[%c0_133, %c0_134] : memref<2x64xbf16, #tpu.memory_space<vmem>>, vector<1x64xbf16>
    %c1_135 = arith.constant 1 : index
    %c0_136 = arith.constant 0 : index
    %150 = vector.load %arg17[%c1_135, %c0_136] : memref<2x64xbf16, #tpu.memory_space<vmem>>, vector<1x64xbf16>
    %c16_137 = arith.constant 16 : index
    %c31_138 = arith.constant 31 : index
    %151 = vector.load %arg24[%c16_137, %c31_138] : memref<48x128xbf16, #tpu.memory_space<vmem>>, vector<16x64xbf16>
    %152 = vector.broadcast %149 : vector<1x64xbf16> to vector<16x64xbf16>
    %153 = arith.mulf %151, %152 : vector<16x64xbf16>
    %c0_139 = arith.constant 0 : index
    %c32_140 = arith.constant 32 : index
    %154 = vector.load %arg24[%c0_139, %c32_140] : memref<48x128xbf16, #tpu.memory_space<vmem>>, vector<16x64xbf16>
    tpu.vector_store %arg24[%c0_139, %c32_140], %153 {strides = array<i32>} : memref<48x128xbf16, #tpu.memory_space<vmem>>, vector<16x64xbf16>,
    %c16_141 = arith.constant 16 : index
    %c33_142 = arith.constant 33 : index
    %155 = vector.load %arg24[%c16_141, %c33_142] : memref<48x128xbf16, #tpu.memory_space<vmem>>, vector<16x64xbf16>
    %156 = vector.broadcast %150 : vector<1x64xbf16> to vector<16x64xbf16>
    %157 = arith.mulf %155, %156 : vector<16x64xbf16>
    %c32_143 = arith.constant 32 : index
    %c32_144 = arith.constant 32 : index
    %158 = vector.load %arg24[%c32_143, %c32_144] : memref<48x128xbf16, #tpu.memory_space<vmem>>, vector<16x64xbf16>
    tpu.vector_store %arg24[%c32_143, %c32_144], %157 {strides = array<i32>} : memref<48x128xbf16, #tpu.memory_space<vmem>>, vector<16x64xbf16>,
    %cst_145 = arith.constant 0.000000e+00 : f32
    %159 = vector.broadcast %cst_145 : f32 to vector<16x64xf32>
    %c0_146 = arith.constant 0 : index
    %c0_147 = arith.constant 0 : index
    %c0_148 = arith.constant 0 : index
    %160 = vector.load %arg8[%c0_146, %c0_147, %c0_148] : memref<3x16x48xbf16, #tpu.memory_space<vmem>>, vector<1x16x48xbf16>
    %161 = vector.shape_cast %160 : vector<1x16x48xbf16> to vector<16x48xbf16>
    %c0_149 = arith.constant 0 : index
    %c24_150 = arith.constant 24 : index
    %162 = vector.load %arg24[%c0_149, %c24_150] : memref<48x128xbf16, #tpu.memory_space<vmem>>, vector<48x64xbf16>
    %cst_151 = arith.constant dense<0.000000e+00> : vector<16x64xf32>
    %163 = tpu.matmul %161, %162, %cst_151 {dimension_numbers = #tpu.dot_dimension_numbers<[1], [0], [0], [1], [0, 0, 1, 1], [], []>} : vector<16x48xbf16>, vector<48x64xbf16>, vector<16x64xf32> -> vector<16x64xf32>
    %164 = arith.addf %159, %163 : vector<16x64xf32>
    %c1_152 = arith.constant 1 : index
    %c0_153 = arith.constant 0 : index
    %c0_154 = arith.constant 0 : index
    %165 = vector.load %arg8[%c1_152, %c0_153, %c0_154] : memref<3x16x48xbf16, #tpu.memory_space<vmem>>, vector<1x16x48xbf16>
    %166 = vector.shape_cast %165 : vector<1x16x48xbf16> to vector<16x48xbf16>
    %c0_155 = arith.constant 0 : index
    %c32_156 = arith.constant 32 : index
    %167 = vector.load %arg24[%c0_155, %c32_156] : memref<48x128xbf16, #tpu.memory_space<vmem>>, vector<48x64xbf16>
    %cst_157 = arith.constant dense<0.000000e+00> : vector<16x64xf32>
    %168 = tpu.matmul %166, %167, %cst_157 {dimension_numbers = #tpu.dot_dimension_numbers<[1], [0], [0], [1], [0, 0, 1, 1], [], []>} : vector<16x48xbf16>, vector<48x64xbf16>, vector<16x64xf32> -> vector<16x64xf32>
    %169 = arith.addf %164, %168 : vector<16x64xf32>
    %c2_158 = arith.constant 2 : index
    %c0_159 = arith.constant 0 : index
    %c0_160 = arith.constant 0 : index
    %170 = vector.load %arg8[%c2_158, %c0_159, %c0_160] : memref<3x16x48xbf16, #tpu.memory_space<vmem>>, vector<1x16x48xbf16>
    %171 = vector.shape_cast %170 : vector<1x16x48xbf16> to vector<16x48xbf16>
    %c0_161 = arith.constant 0 : index
    %c40_162 = arith.constant 40 : index
    %172 = vector.load %arg24[%c0_161, %c40_162] : memref<48x128xbf16, #tpu.memory_space<vmem>>, vector<48x64xbf16>
    %cst_163 = arith.constant dense<0.000000e+00> : vector<16x64xf32>
    %173 = tpu.matmul %171, %172, %cst_163 {dimension_numbers = #tpu.dot_dimension_numbers<[1], [0], [0], [1], [0, 0, 1, 1], [], []>} : vector<16x48xbf16>, vector<48x64xbf16>, vector<16x64xf32> -> vector<16x64xf32>
    %174 = arith.addf %169, %173 : vector<16x64xf32>
    %c0_164 = arith.constant 0 : index
    %c0_165 = arith.constant 0 : index
    %175 = vector.load %arg9[%c0_164, %c0_165] : memref<16x3xf32, #tpu.memory_space<vmem>>, vector<16x3xf32>
    %176 = vector.extract_strided_slice %175 {offsets = [0, 0], sizes = [16, 1], strides = [1, 1]} : vector<16x3xf32> to vector<16x1xf32>
    %177 = vector.extract_strided_slice %175 {offsets = [0, 1], sizes = [16, 1], strides = [1, 1]} : vector<16x3xf32> to vector<16x1xf32>
    %178 = vector.extract_strided_slice %175 {offsets = [0, 2], sizes = [16, 1], strides = [1, 1]} : vector<16x3xf32> to vector<16x1xf32>
    %179 = vector.broadcast %176 : vector<16x1xf32> to vector<16x64xf32>
    %180 = arith.addf %174, %179 : vector<16x64xf32>
    %cst_166 = arith.constant 0.000000e+00 : f32
    %181 = vector.broadcast %cst_166 : f32 to vector<16x64xf32>
    %182 = arith.maximumf %180, %181 : vector<16x64xf32>
    %183 = vector.broadcast %177 : vector<16x1xf32> to vector<16x64xf32>
    %184 = arith.mulf %182, %183 : vector<16x64xf32>
    %185 = vector.broadcast %178 : vector<16x1xf32> to vector<16x64xf32>
    %186 = arith.addf %184, %185 : vector<16x64xf32>
    %187 = arith.truncf %186 : vector<16x64xf32> to vector<16x64xbf16>
    %c0_167 = arith.constant 0 : index
    %c32_168 = arith.constant 32 : index
    %188 = vector.load %arg25[%c0_167, %c32_168] : memref<32x128xbf16, #tpu.memory_space<vmem>>, vector<16x64xbf16>
    tpu.vector_store %arg25[%c0_167, %c32_168], %187 {strides = array<i32>} : memref<32x128xbf16, #tpu.memory_space<vmem>>, vector<16x64xbf16>,
    %c0_169 = arith.constant 0 : index
    %c33_170 = arith.constant 33 : index
    %189 = vector.load %arg25[%c0_169, %c33_170] : memref<32x128xbf16, #tpu.memory_space<vmem>>, vector<16x64xbf16>
    %c1_171 = arith.constant 1 : index
    %c0_172 = arith.constant 0 : index
    %190 = vector.load %arg17[%c1_171, %c0_172] : memref<2x64xbf16, #tpu.memory_space<vmem>>, vector<1x64xbf16>
    %191 = vector.broadcast %190 : vector<1x64xbf16> to vector<16x64xbf16>
    %192 = arith.mulf %189, %191 : vector<16x64xbf16>
    %c16_173 = arith.constant 16 : index
    %c32_174 = arith.constant 32 : index
    %193 = vector.load %arg25[%c16_173, %c32_174] : memref<32x128xbf16, #tpu.memory_space<vmem>>, vector<16x64xbf16>
    tpu.vector_store %arg25[%c16_173, %c32_174], %192 {strides = array<i32>} : memref<32x128xbf16, #tpu.memory_space<vmem>>, vector<16x64xbf16>,
    %c0_175 = arith.constant 0 : index
    %c32_176 = arith.constant 32 : index
    %194 = vector.load %arg25[%c0_175, %c32_176] : memref<32x128xbf16, #tpu.memory_space<vmem>>, vector<32x64xbf16>
    %c0_177 = arith.constant 0 : index
    %c40_178 = arith.constant 40 : index
    %195 = vector.load %arg25[%c0_177, %c40_178] : memref<32x128xbf16, #tpu.memory_space<vmem>>, vector<32x64xbf16>
    %c0_179 = arith.constant 0 : index
    %c0_180 = arith.constant 0 : index
    %c0_181 = arith.constant 0 : index
    %196 = vector.load %arg10[%c0_179, %c0_180, %c0_181] : memref<3x16x32xbf16, #tpu.memory_space<vmem>>, vector<1x16x32xbf16>
    %197 = vector.shape_cast %196 : vector<1x16x32xbf16> to vector<16x32xbf16>
    %cst_182 = arith.constant dense<0.000000e+00> : vector<16x64xf32>
    %198 = tpu.matmul %197, %194, %cst_182 {dimension_numbers = #tpu.dot_dimension_numbers<[1], [0], [0], [1], [0, 0, 1, 1], [], []>} : vector<16x32xbf16>, vector<32x64xbf16>, vector<16x64xf32> -> vector<16x64xf32>
    %c1_183 = arith.constant 1 : index
    %c0_184 = arith.constant 0 : index
    %c0_185 = arith.constant 0 : index
    %199 = vector.load %arg10[%c1_183, %c0_184, %c0_185] : memref<3x16x32xbf16, #tpu.memory_space<vmem>>, vector<1x16x32xbf16>
    %200 = vector.shape_cast %199 : vector<1x16x32xbf16> to vector<16x32xbf16>
    %cst_186 = arith.constant dense<0.000000e+00> : vector<16x64xf32>
    %201 = tpu.matmul %200, %194, %cst_186 {dimension_numbers = #tpu.dot_dimension_numbers<[1], [0], [0], [1], [0, 0, 1, 1], [], []>} : vector<16x32xbf16>, vector<32x64xbf16>, vector<16x64xf32> -> vector<16x64xf32>
    %c2_187 = arith.constant 2 : index
    %c0_188 = arith.constant 0 : index
    %c0_189 = arith.constant 0 : index
    %202 = vector.load %arg10[%c2_187, %c0_188, %c0_189] : memref<3x16x32xbf16, #tpu.memory_space<vmem>>, vector<1x16x32xbf16>
    %203 = vector.shape_cast %202 : vector<1x16x32xbf16> to vector<16x32xbf16>
    %cst_190 = arith.constant dense<0.000000e+00> : vector<16x64xf32>
    %204 = tpu.matmul %203, %195, %cst_190 {dimension_numbers = #tpu.dot_dimension_numbers<[1], [0], [0], [1], [0, 0, 1, 1], [], []>} : vector<16x32xbf16>, vector<32x64xbf16>, vector<16x64xf32> -> vector<16x64xf32>
    %205 = arith.addf %201, %204 : vector<16x64xf32>
    %206 = vector.extract_strided_slice %198 {offsets = [0, 0], sizes = [8, 64], strides = [1, 1]} : vector<16x64xf32> to vector<8x64xf32>
    %207 = arith.truncf %206 : vector<8x64xf32> to vector<8x64xbf16>
    %c0_191 = arith.constant 0 : index
    %c0_192 = arith.constant 0 : index
    %c0_193 = arith.constant 0 : index
    %208 = vector.load %arg19[%c0_191, %c0_192, %c0_193] : memref<4x64x256xbf16, #tpu.memory_space<vmem>>, vector<1x64x256xbf16>
    %209 = vector.shape_cast %208 : vector<1x64x256xbf16> to vector<64x256xbf16>
    %cst_194 = arith.constant dense<0.000000e+00> : vector<8x256xf32>
    %210 = tpu.matmul %207, %209, %cst_194 {dimension_numbers = #tpu.dot_dimension_numbers<[1], [0], [0], [1], [0, 0, 1, 1], [], []>} : vector<8x64xbf16>, vector<64x256xbf16>, vector<8x256xf32> -> vector<8x256xf32>
    %211 = vector.extract_strided_slice %198 {offsets = [8, 0], sizes = [8, 64], strides = [1, 1]} : vector<16x64xf32> to vector<8x64xf32>
    %212 = arith.truncf %211 : vector<8x64xf32> to vector<8x64xbf16>
    %c1_195 = arith.constant 1 : index
    %c0_196 = arith.constant 0 : index
    %c0_197 = arith.constant 0 : index
    %213 = vector.load %arg19[%c1_195, %c0_196, %c0_197] : memref<4x64x256xbf16, #tpu.memory_space<vmem>>, vector<1x64x256xbf16>
    %214 = vector.shape_cast %213 : vector<1x64x256xbf16> to vector<64x256xbf16>
    %cst_198 = arith.constant dense<0.000000e+00> : vector<8x256xf32>
    %215 = tpu.matmul %212, %214, %cst_198 {dimension_numbers = #tpu.dot_dimension_numbers<[1], [0], [0], [1], [0, 0, 1, 1], [], []>} : vector<8x64xbf16>, vector<64x256xbf16>, vector<8x256xf32> -> vector<8x256xf32>
    %216 = arith.addf %210, %215 : vector<8x256xf32>
    %217 = vector.extract_strided_slice %205 {offsets = [0, 0], sizes = [8, 64], strides = [1, 1]} : vector<16x64xf32> to vector<8x64xf32>
    %218 = arith.truncf %217 : vector<8x64xf32> to vector<8x64xbf16>
    %c2_199 = arith.constant 2 : index
    %c0_200 = arith.constant 0 : index
    %c0_201 = arith.constant 0 : index
    %219 = vector.load %arg19[%c2_199, %c0_200, %c0_201] : memref<4x64x256xbf16, #tpu.memory_space<vmem>>, vector<1x64x256xbf16>
    %220 = vector.shape_cast %219 : vector<1x64x256xbf16> to vector<64x256xbf16>
    %cst_202 = arith.constant dense<0.000000e+00> : vector<8x256xf32>
    %221 = tpu.matmul %218, %220, %cst_202 {dimension_numbers = #tpu.dot_dimension_numbers<[1], [0], [0], [1], [0, 0, 1, 1], [], []>} : vector<8x64xbf16>, vector<64x256xbf16>, vector<8x256xf32> -> vector<8x256xf32>
    %222 = arith.addf %216, %221 : vector<8x256xf32>
    %223 = vector.extract_strided_slice %205 {offsets = [8, 0], sizes = [8, 64], strides = [1, 1]} : vector<16x64xf32> to vector<8x64xf32>
    %224 = arith.truncf %223 : vector<8x64xf32> to vector<8x64xbf16>
    %c3 = arith.constant 3 : index
    %c0_203 = arith.constant 0 : index
    %c0_204 = arith.constant 0 : index
    %225 = vector.load %arg19[%c3, %c0_203, %c0_204] : memref<4x64x256xbf16, #tpu.memory_space<vmem>>, vector<1x64x256xbf16>
    %226 = vector.shape_cast %225 : vector<1x64x256xbf16> to vector<64x256xbf16>
    %cst_205 = arith.constant dense<0.000000e+00> : vector<8x256xf32>
    %227 = tpu.matmul %224, %226, %cst_205 {dimension_numbers = #tpu.dot_dimension_numbers<[1], [0], [0], [1], [0, 0, 1, 1], [], []>} : vector<8x64xbf16>, vector<64x256xbf16>, vector<8x256xf32> -> vector<8x256xf32>
    %228 = arith.addf %222, %227 : vector<8x256xf32>
    %c0_206 = arith.constant 0 : index
    %c0_207 = arith.constant 0 : index
    %229 = vector.load %arg11[%c0_206, %c0_207] : memref<8x1xf32, #tpu.memory_space<vmem>>, vector<8x1xf32>
    %230 = vector.broadcast %229 : vector<8x1xf32> to vector<8x256xf32>
    %231 = arith.addf %228, %230 : vector<8x256xf32>
    %232 = arith.truncf %231 : vector<8x256xf32> to vector<8x256xbf16>
    %c24_208 = arith.constant 24 : index
    %c32_209 = arith.constant 32 : index
    %233 = vector.load %arg26[%c24_208, %c32_209] : memref<48x320xbf16, #tpu.memory_space<vmem>>, vector<8x256xbf16>
    tpu.vector_store %arg26[%c24_208, %c32_209], %232 {strides = array<i32>} : memref<48x320xbf16, #tpu.memory_space<vmem>>, vector<8x256xbf16>,
    %c0_210 = arith.constant 0 : index
    %c0_211 = arith.constant 0 : index
    %234 = vector.load %arg16[%c0_210, %c0_211] : memref<2x256xbf16, #tpu.memory_space<vmem>>, vector<1x256xbf16>
    %c1_212 = arith.constant 1 : index
    %c0_213 = arith.constant 0 : index
    %235 = vector.load %arg16[%c1_212, %c0_213] : memref<2x256xbf16, #tpu.memory_space<vmem>>, vector<1x256xbf16>
    %c16_214 = arith.constant 16 : index
    %c31_215 = arith.constant 31 : index
    %236 = vector.load %arg26[%c16_214, %c31_215] : memref<48x320xbf16, #tpu.memory_space<vmem>>, vector<16x256xbf16>
    %237 = vector.broadcast %234 : vector<1x256xbf16> to vector<16x256xbf16>
    %238 = arith.mulf %236, %237 : vector<16x256xbf16>
    %c0_216 = arith.constant 0 : index
    %c32_217 = arith.constant 32 : index
    %239 = vector.load %arg26[%c0_216, %c32_217] : memref<48x320xbf16, #tpu.memory_space<vmem>>, vector<16x256xbf16>
    tpu.vector_store %arg26[%c0_216, %c32_217], %238 {strides = array<i32>} : memref<48x320xbf16, #tpu.memory_space<vmem>>, vector<16x256xbf16>,
    %c16_218 = arith.constant 16 : index
    %c33_219 = arith.constant 33 : index
    %240 = vector.load %arg26[%c16_218, %c33_219] : memref<48x320xbf16, #tpu.memory_space<vmem>>, vector<16x256xbf16>
    %241 = vector.broadcast %235 : vector<1x256xbf16> to vector<16x256xbf16>
    %242 = arith.mulf %240, %241 : vector<16x256xbf16>
    %c32_220 = arith.constant 32 : index
    %c32_221 = arith.constant 32 : index
    %243 = vector.load %arg26[%c32_220, %c32_221] : memref<48x320xbf16, #tpu.memory_space<vmem>>, vector<16x256xbf16>
    tpu.vector_store %arg26[%c32_220, %c32_221], %242 {strides = array<i32>} : memref<48x320xbf16, #tpu.memory_space<vmem>>, vector<16x256xbf16>,
    %cst_222 = arith.constant 0.000000e+00 : f32
    %244 = vector.broadcast %cst_222 : f32 to vector<8x256xf32>
    %c0_223 = arith.constant 0 : index
    %c0_224 = arith.constant 0 : index
    %c0_225 = arith.constant 0 : index
    %245 = vector.load %arg12[%c0_223, %c0_224, %c0_225] : memref<3x8x48xbf16, #tpu.memory_space<vmem>>, vector<1x8x48xbf16>
    %246 = vector.shape_cast %245 : vector<1x8x48xbf16> to vector<8x48xbf16>
    %c0_226 = arith.constant 0 : index
    %c16_227 = arith.constant 16 : index
    %247 = vector.load %arg26[%c0_226, %c16_227] : memref<48x320xbf16, #tpu.memory_space<vmem>>, vector<48x256xbf16>
    %cst_228 = arith.constant dense<0.000000e+00> : vector<8x256xf32>
    %248 = tpu.matmul %246, %247, %cst_228 {dimension_numbers = #tpu.dot_dimension_numbers<[1], [0], [0], [1], [0, 0, 1, 1], [], []>} : vector<8x48xbf16>, vector<48x256xbf16>, vector<8x256xf32> -> vector<8x256xf32>
    %249 = arith.addf %244, %248 : vector<8x256xf32>
    %c1_229 = arith.constant 1 : index
    %c0_230 = arith.constant 0 : index
    %c0_231 = arith.constant 0 : index
    %250 = vector.load %arg12[%c1_229, %c0_230, %c0_231] : memref<3x8x48xbf16, #tpu.memory_space<vmem>>, vector<1x8x48xbf16>
    %251 = vector.shape_cast %250 : vector<1x8x48xbf16> to vector<8x48xbf16>
    %c0_232 = arith.constant 0 : index
    %c32_233 = arith.constant 32 : index
    %252 = vector.load %arg26[%c0_232, %c32_233] : memref<48x320xbf16, #tpu.memory_space<vmem>>, vector<48x256xbf16>
    %cst_234 = arith.constant dense<0.000000e+00> : vector<8x256xf32>
    %253 = tpu.matmul %251, %252, %cst_234 {dimension_numbers = #tpu.dot_dimension_numbers<[1], [0], [0], [1], [0, 0, 1, 1], [], []>} : vector<8x48xbf16>, vector<48x256xbf16>, vector<8x256xf32> -> vector<8x256xf32>
    %254 = arith.addf %249, %253 : vector<8x256xf32>
    %c2_235 = arith.constant 2 : index
    %c0_236 = arith.constant 0 : index
    %c0_237 = arith.constant 0 : index
    %255 = vector.load %arg12[%c2_235, %c0_236, %c0_237] : memref<3x8x48xbf16, #tpu.memory_space<vmem>>, vector<1x8x48xbf16>
    %256 = vector.shape_cast %255 : vector<1x8x48xbf16> to vector<8x48xbf16>
    %c0_238 = arith.constant 0 : index
    %c48_239 = arith.constant 48 : index
    %257 = vector.load %arg26[%c0_238, %c48_239] : memref<48x320xbf16, #tpu.memory_space<vmem>>, vector<48x256xbf16>
    %cst_240 = arith.constant dense<0.000000e+00> : vector<8x256xf32>
    %258 = tpu.matmul %256, %257, %cst_240 {dimension_numbers = #tpu.dot_dimension_numbers<[1], [0], [0], [1], [0, 0, 1, 1], [], []>} : vector<8x48xbf16>, vector<48x256xbf16>, vector<8x256xf32> -> vector<8x256xf32>
    %259 = arith.addf %254, %258 : vector<8x256xf32>
    %c0_241 = arith.constant 0 : index
    %c0_242 = arith.constant 0 : index
    %260 = vector.load %arg13[%c0_241, %c0_242] : memref<8x3xf32, #tpu.memory_space<vmem>>, vector<8x3xf32>
    %261 = vector.extract_strided_slice %260 {offsets = [0, 0], sizes = [8, 1], strides = [1, 1]} : vector<8x3xf32> to vector<8x1xf32>
    %262 = vector.extract_strided_slice %260 {offsets = [0, 1], sizes = [8, 1], strides = [1, 1]} : vector<8x3xf32> to vector<8x1xf32>
    %263 = vector.extract_strided_slice %260 {offsets = [0, 2], sizes = [8, 1], strides = [1, 1]} : vector<8x3xf32> to vector<8x1xf32>
    %264 = vector.broadcast %261 : vector<8x1xf32> to vector<8x256xf32>
    %265 = arith.addf %259, %264 : vector<8x256xf32>
    %cst_243 = arith.constant 0.000000e+00 : f32
    %266 = vector.broadcast %cst_243 : f32 to vector<8x256xf32>
    %267 = arith.maximumf %265, %266 : vector<8x256xf32>
    %268 = vector.broadcast %262 : vector<8x1xf32> to vector<8x256xf32>
    %269 = arith.mulf %267, %268 : vector<8x256xf32>
    %270 = vector.broadcast %263 : vector<8x1xf32> to vector<8x256xf32>
    %271 = arith.addf %269, %270 : vector<8x256xf32>
    %272 = arith.truncf %271 : vector<8x256xf32> to vector<8x256xbf16>
    %c8_244 = arith.constant 8 : index
    %c32_245 = arith.constant 32 : index
    %273 = vector.load %arg27[%c8_244, %c32_245] : memref<24x320xbf16, #tpu.memory_space<vmem>>, vector<8x256xbf16>
    tpu.vector_store %arg27[%c8_244, %c32_245], %272 {strides = array<i32>} : memref<24x320xbf16, #tpu.memory_space<vmem>>, vector<8x256xbf16>,
    %c0_246 = arith.constant 0 : index
    %c0_247 = arith.constant 0 : index
    %274 = vector.load %arg16[%c0_246, %c0_247] : memref<2x256xbf16, #tpu.memory_space<vmem>>, vector<1x256xbf16>
    %c1_248 = arith.constant 1 : index
    %c0_249 = arith.constant 0 : index
    %275 = vector.load %arg16[%c1_248, %c0_249] : memref<2x256xbf16, #tpu.memory_space<vmem>>, vector<1x256xbf16>
    %c8_250 = arith.constant 8 : index
    %c31_251 = arith.constant 31 : index
    %276 = vector.load %arg27[%c8_250, %c31_251] : memref<24x320xbf16, #tpu.memory_space<vmem>>, vector<8x256xbf16>
    %277 = vector.broadcast %274 : vector<1x256xbf16> to vector<8x256xbf16>
    %278 = arith.mulf %276, %277 : vector<8x256xbf16>
    %c0_252 = arith.constant 0 : index
    %c32_253 = arith.constant 32 : index
    %279 = vector.load %arg27[%c0_252, %c32_253] : memref<24x320xbf16, #tpu.memory_space<vmem>>, vector<8x256xbf16>
    tpu.vector_store %arg27[%c0_252, %c32_253], %278 {strides = array<i32>} : memref<24x320xbf16, #tpu.memory_space<vmem>>, vector<8x256xbf16>,
    %c8_254 = arith.constant 8 : index
    %c33_255 = arith.constant 33 : index
    %280 = vector.load %arg27[%c8_254, %c33_255] : memref<24x320xbf16, #tpu.memory_space<vmem>>, vector<8x256xbf16>
    %281 = vector.broadcast %275 : vector<1x256xbf16> to vector<8x256xbf16>
    %282 = arith.mulf %280, %281 : vector<8x256xbf16>
    %c16_256 = arith.constant 16 : index
    %c32_257 = arith.constant 32 : index
    %283 = vector.load %arg27[%c16_256, %c32_257] : memref<24x320xbf16, #tpu.memory_space<vmem>>, vector<8x256xbf16>
    tpu.vector_store %arg27[%c16_256, %c32_257], %282 {strides = array<i32>} : memref<24x320xbf16, #tpu.memory_space<vmem>>, vector<8x256xbf16>,
    %cst_258 = arith.constant 0.000000e+00 : f32
    %284 = vector.broadcast %cst_258 : f32 to vector<8x256xf32>
    %c0_259 = arith.constant 0 : index
    %c0_260 = arith.constant 0 : index
    %c0_261 = arith.constant 0 : index
    %285 = vector.load %arg14[%c0_259, %c0_260, %c0_261] : memref<3x8x24xbf16, #tpu.memory_space<vmem>>, vector<1x8x24xbf16>
    %286 = vector.shape_cast %285 : vector<1x8x24xbf16> to vector<8x24xbf16>
    %c0_262 = arith.constant 0 : index
    %c16_263 = arith.constant 16 : index
    %287 = vector.load %arg27[%c0_262, %c16_263] : memref<24x320xbf16, #tpu.memory_space<vmem>>, vector<24x256xbf16>
    %cst_264 = arith.constant dense<0.000000e+00> : vector<8x256xf32>
    %288 = tpu.matmul %286, %287, %cst_264 {dimension_numbers = #tpu.dot_dimension_numbers<[1], [0], [0], [1], [0, 0, 1, 1], [], []>} : vector<8x24xbf16>, vector<24x256xbf16>, vector<8x256xf32> -> vector<8x256xf32>
    %289 = arith.addf %284, %288 : vector<8x256xf32>
    %c1_265 = arith.constant 1 : index
    %c0_266 = arith.constant 0 : index
    %c0_267 = arith.constant 0 : index
    %290 = vector.load %arg14[%c1_265, %c0_266, %c0_267] : memref<3x8x24xbf16, #tpu.memory_space<vmem>>, vector<1x8x24xbf16>
    %291 = vector.shape_cast %290 : vector<1x8x24xbf16> to vector<8x24xbf16>
    %c0_268 = arith.constant 0 : index
    %c32_269 = arith.constant 32 : index
    %292 = vector.load %arg27[%c0_268, %c32_269] : memref<24x320xbf16, #tpu.memory_space<vmem>>, vector<24x256xbf16>
    %cst_270 = arith.constant dense<0.000000e+00> : vector<8x256xf32>
    %293 = tpu.matmul %291, %292, %cst_270 {dimension_numbers = #tpu.dot_dimension_numbers<[1], [0], [0], [1], [0, 0, 1, 1], [], []>} : vector<8x24xbf16>, vector<24x256xbf16>, vector<8x256xf32> -> vector<8x256xf32>
    %294 = arith.addf %289, %293 : vector<8x256xf32>
    %c2_271 = arith.constant 2 : index
    %c0_272 = arith.constant 0 : index
    %c0_273 = arith.constant 0 : index
    %295 = vector.load %arg14[%c2_271, %c0_272, %c0_273] : memref<3x8x24xbf16, #tpu.memory_space<vmem>>, vector<1x8x24xbf16>
    %296 = vector.shape_cast %295 : vector<1x8x24xbf16> to vector<8x24xbf16>
    %c0_274 = arith.constant 0 : index
    %c48_275 = arith.constant 48 : index
    %297 = vector.load %arg27[%c0_274, %c48_275] : memref<24x320xbf16, #tpu.memory_space<vmem>>, vector<24x256xbf16>
    %cst_276 = arith.constant dense<0.000000e+00> : vector<8x256xf32>
    %298 = tpu.matmul %296, %297, %cst_276 {dimension_numbers = #tpu.dot_dimension_numbers<[1], [0], [0], [1], [0, 0, 1, 1], [], []>} : vector<8x24xbf16>, vector<24x256xbf16>, vector<8x256xf32> -> vector<8x256xf32>
    %299 = arith.addf %294, %298 : vector<8x256xf32>
    %c0_277 = arith.constant 0 : index
    %c0_278 = arith.constant 0 : index
    %300 = vector.load %arg15[%c0_277, %c0_278] : memref<8x3xf32, #tpu.memory_space<vmem>>, vector<8x3xf32>
    %301 = vector.extract_strided_slice %300 {offsets = [0, 0], sizes = [8, 1], strides = [1, 1]} : vector<8x3xf32> to vector<8x1xf32>
    %302 = vector.extract_strided_slice %300 {offsets = [0, 1], sizes = [8, 1], strides = [1, 1]} : vector<8x3xf32> to vector<8x1xf32>
    %303 = vector.extract_strided_slice %300 {offsets = [0, 2], sizes = [8, 1], strides = [1, 1]} : vector<8x3xf32> to vector<8x1xf32>
    %304 = vector.broadcast %301 : vector<8x1xf32> to vector<8x256xf32>
    %305 = arith.addf %299, %304 : vector<8x256xf32>
    %cst_279 = arith.constant 0.000000e+00 : f32
    %306 = vector.broadcast %cst_279 : f32 to vector<8x256xf32>
    %307 = arith.maximumf %305, %306 : vector<8x256xf32>
    %308 = vector.broadcast %302 : vector<8x1xf32> to vector<8x256xf32>
    %309 = arith.mulf %307, %308 : vector<8x256xf32>
    %310 = vector.broadcast %303 : vector<8x1xf32> to vector<8x256xf32>
    %311 = arith.addf %309, %310 : vector<8x256xf32>
    %c0_280 = arith.constant 0 : index
    %c0_281 = arith.constant 0 : index
    %c0_282 = arith.constant 0 : index
    %312 = vector.load %arg20[%c0_280, %c0_281, %c0_282] : memref<1x8x256xf32, #tpu.memory_space<vmem>>, vector<1x8x256xf32>
    %313 = vector.shape_cast %312 : vector<1x8x256xf32> to vector<8x256xf32>
    %314 = vector.shape_cast %311 : vector<8x256xf32> to vector<1x8x256xf32>
    tpu.vector_store %arg20[%c0_280, %c0_281, %c0_282], %314 {strides = array<i32>} : memref<1x8x256xf32, #tpu.memory_space<vmem>>, vector<1x8x256xf32>,
    return
  }
  func.func @transform_0(%arg0: i32) -> (i32, i32, i32) {
    %c0_i32 = arith.constant 0 : i32
    %c0_i32_0 = arith.constant 0 : i32
    %c0_i32_1 = arith.constant 0 : i32
    return %arg0, %c0_i32, %c0_i32_0 : i32, i32, i32
  }
  func.func @transform_1(%arg0: i32) -> (i32, i32, i32) {
    %c0_i32 = arith.constant 0 : i32
    %c0_i32_0 = arith.constant 0 : i32
    %c0_i32_1 = arith.constant 0 : i32
    %c0_i32_2 = arith.constant 0 : i32
    return %c0_i32, %c0_i32_0, %c0_i32_1 : i32, i32, i32
  }
  func.func @transform_2(%arg0: i32) -> (i32, i32) {
    %c0_i32 = arith.constant 0 : i32
    %c0_i32_0 = arith.constant 0 : i32
    %c0_i32_1 = arith.constant 0 : i32
    return %c0_i32, %c0_i32_0 : i32, i32
  }
  func.func @transform_3(%arg0: i32) -> (i32, i32, i32) {
    %c0_i32 = arith.constant 0 : i32
    %c0_i32_0 = arith.constant 0 : i32
    %c0_i32_1 = arith.constant 0 : i32
    %c0_i32_2 = arith.constant 0 : i32
    return %c0_i32, %c0_i32_0, %c0_i32_1 : i32, i32, i32
  }
  func.func @transform_4(%arg0: i32) -> (i32, i32) {
    %c0_i32 = arith.constant 0 : i32
    %c0_i32_0 = arith.constant 0 : i32
    %c0_i32_1 = arith.constant 0 : i32
    return %c0_i32, %c0_i32_0 : i32, i32
  }
  func.func @transform_5(%arg0: i32) -> (i32, i32, i32) {
    %c0_i32 = arith.constant 0 : i32
    %c0_i32_0 = arith.constant 0 : i32
    %c0_i32_1 = arith.constant 0 : i32
    %c0_i32_2 = arith.constant 0 : i32
    return %c0_i32, %c0_i32_0, %c0_i32_1 : i32, i32, i32
  }
  func.func @transform_6(%arg0: i32) -> (i32, i32) {
    %c0_i32 = arith.constant 0 : i32
    %c0_i32_0 = arith.constant 0 : i32
    %c0_i32_1 = arith.constant 0 : i32
    return %c0_i32, %c0_i32_0 : i32, i32
  }
  func.func @transform_7(%arg0: i32) -> (i32, i32, i32) {
    %c0_i32 = arith.constant 0 : i32
    %c0_i32_0 = arith.constant 0 : i32
    %c0_i32_1 = arith.constant 0 : i32
    %c0_i32_2 = arith.constant 0 : i32
    return %c0_i32, %c0_i32_0, %c0_i32_1 : i32, i32, i32
  }
  func.func @transform_8(%arg0: i32) -> (i32, i32) {
    %c0_i32 = arith.constant 0 : i32
    %c0_i32_0 = arith.constant 0 : i32
    %c0_i32_1 = arith.constant 0 : i32
    return %c0_i32, %c0_i32_0 : i32, i32
  }
  func.func @transform_9(%arg0: i32) -> (i32, i32, i32) {
    %c0_i32 = arith.constant 0 : i32
    %c0_i32_0 = arith.constant 0 : i32
    %c0_i32_1 = arith.constant 0 : i32
    %c0_i32_2 = arith.constant 0 : i32
    return %c0_i32, %c0_i32_0, %c0_i32_1 : i32, i32, i32
  }
  func.func @transform_10(%arg0: i32) -> (i32, i32) {
    %c0_i32 = arith.constant 0 : i32
    %c0_i32_0 = arith.constant 0 : i32
    %c0_i32_1 = arith.constant 0 : i32
    return %c0_i32, %c0_i32_0 : i32, i32
  }
  func.func @transform_11(%arg0: i32) -> (i32, i32, i32) {
    %c0_i32 = arith.constant 0 : i32
    %c0_i32_0 = arith.constant 0 : i32
    %c0_i32_1 = arith.constant 0 : i32
    %c0_i32_2 = arith.constant 0 : i32
    return %c0_i32, %c0_i32_0, %c0_i32_1 : i32, i32, i32
  }
  func.func @transform_12(%arg0: i32) -> (i32, i32) {
    %c0_i32 = arith.constant 0 : i32
    %c0_i32_0 = arith.constant 0 : i32
    %c0_i32_1 = arith.constant 0 : i32
    return %c0_i32, %c0_i32_0 : i32, i32
  }
  func.func @transform_13(%arg0: i32) -> (i32, i32, i32) {
    %c0_i32 = arith.constant 0 : i32
    %c0_i32_0 = arith.constant 0 : i32
    %c0_i32_1 = arith.constant 0 : i32
    %c0_i32_2 = arith.constant 0 : i32
    return %c0_i32, %c0_i32_0, %c0_i32_1 : i32, i32, i32
  }
  func.func @transform_14(%arg0: i32) -> (i32, i32) {
    %c0_i32 = arith.constant 0 : i32
    %c0_i32_0 = arith.constant 0 : i32
    %c0_i32_1 = arith.constant 0 : i32
    return %c0_i32, %c0_i32_0 : i32, i32
  }
  func.func @transform_15(%arg0: i32) -> (i32, i32) {
    %c0_i32 = arith.constant 0 : i32
    %c0_i32_0 = arith.constant 0 : i32
    %c0_i32_1 = arith.constant 0 : i32
    return %c0_i32, %c0_i32_0 : i32, i32
  }
  func.func @transform_16(%arg0: i32) -> (i32, i32) {
    %c0_i32 = arith.constant 0 : i32
    %c0_i32_0 = arith.constant 0 : i32
    %c0_i32_1 = arith.constant 0 : i32
    return %c0_i32, %c0_i32_0 : i32, i32
  }
  func.func @transform_17(%arg0: i32) -> (i32, i32) {
    %c0_i32 = arith.constant 0 : i32
    %c0_i32_0 = arith.constant 0 : i32
    %c0_i32_1 = arith.constant 0 : i32
    return %c0_i32, %c0_i32_0 : i32, i32
  }
  func.func @transform_18(%arg0: i32) -> (i32, i32, i32) {
    %c0_i32 = arith.constant 0 : i32
    %c0_i32_0 = arith.constant 0 : i32
    %c0_i32_1 = arith.constant 0 : i32
    %c0_i32_2 = arith.constant 0 : i32
    return %c0_i32, %c0_i32_0, %c0_i32_1 : i32, i32, i32
  }
  func.func @transform_19(%arg0: i32) -> (i32, i32, i32) {
    %c0_i32 = arith.constant 0 : i32
    %c0_i32_0 = arith.constant 0 : i32
    %c0_i32_1 = arith.constant 0 : i32
    return %arg0, %c0_i32, %c0_i32_0 : i32, i32, i32
  }
}

</mosaic_0001>

<bundles_post_ra>
// kernel: _lambda_.1
= control target key start
LH: loop header
LB: loop body
LE: loop exit
PB: predicated region body
PF: predicated region fallthrough
CT: control target
= control target key end

     0   :  { %s5169_s0 = inlined_call_operand.vmem [shape: f32[2,4,256], index: 0, kind: input, shape index: {}]   ;;  %s5170_s1 = inlined_call_operand.vmem [shape: bf16[3,8,12], index: 1, kind: input, shape index: {}]   ;;  %s5171_s2 = inlined_call_operand.vmem [shape: f32[8,3], index: 2, kind: input, shape index: {}]   ;;  %s5172_s3 = inlined_call_operand.vmem [shape: bf16[3,8,24], index: 3, kind: input, shape index: {}]   ;;  %s5173_s4 = inlined_call_operand.vmem [shape: f32[8,3], index: 4, kind: input, shape index: {}]   ;;  %s5174_s5 = inlined_call_operand.vmem [shape: bf16[3,16,24], index: 5, kind: input, shape index: {}]   ;;  %s5175_s6 = inlined_call_operand.vmem [shape: f32[16,3], index: 6, kind: input, shape index: {}]   ;;  %s5176_s7 = inlined_call_operand.vmem [shape: bf16[3,16,48], index: 7, kind: input, shape index: {}]   ;;  %s5177_s8 = inlined_call_operand.vmem [shape: f32[16,3], index: 8, kind: input, shape index: {}]   ;;  %s5178_s9 = inlined_call_operand.vmem [shape: bf16[3,16,32], index: 9, kind: input, shape index: {}]   ;;  %s5179_s10 = inlined_call_operand.vmem [shape: f32[8,1], index: 10, kind: input, shape index: {}]   ;;  %s5180_s11 = inlined_call_operand.vmem [shape: bf16[3,8,48], index: 11, kind: input, shape index: {}]   ;;  %s5181_s12 = inlined_call_operand.vmem [shape: f32[8,3], index: 12, kind: input, shape index: {}]   ;;  %s5182_s13 = inlined_call_operand.vmem [shape: bf16[3,8,24], index: 13, kind: input, shape index: {}]   ;;  %s5183_s14 = inlined_call_operand.vmem [shape: f32[8,3], index: 14, kind: input, shape index: {}]   ;;  %s5184_s15 = inlined_call_operand.vmem [shape: bf16[2,256], index: 15, kind: input, shape index: {}]   ;;  %s5185_s16 = inlined_call_operand.vmem [shape: bf16[2,64], index: 16, kind: input, shape index: {}]   ;;  %s5186_s17 = inlined_call_operand.vmem [shape: bf16[256,64], index: 17, kind: input, shape index: {}]   ;;  %s5187_s18 = inlined_call_operand.vmem [shape: bf16[4,64,256], index: 18, kind: input, shape index: {}]   ;;  %s5188_s19 = inlined_call_operand.vmem [shape: f32[2,8,256], index: 19, kind: output, shape index: {}]  }
   0x1   :  { %5208 = sst [smem:[#allocation9_spill]] %s5169_s0  ;;  %s4379_s0 = smov 0  }
   0x2   :  { %5209 = sst [smem:[#allocation10_spill]] %s5170_s1 }
   0x3   :  { %5210 = sst [smem:[#allocation11_spill]] %s5171_s2 }
   0x4   :  { %5211 = sst [smem:[#allocation12_spill]] %s5172_s3 }
   0x5   :  { %5212 = sst [smem:[#allocation13_spill]] %s5173_s4 }
   0x6   :  { %5213 = sst [smem:[#allocation14_spill]] %s5174_s5 }
   0x7   :  { %5214 = sst [smem:[#allocation15_spill]] %s5175_s6 }
   0x8 LB: > { %s3748_s30 = sadd.s32 4294967295, %s4261_s0   ;;  %p3752_p0 = scmp.ge.s32.totalorder %s4261_s0, 1  ;;  %s4261_s0 = sphi %s4379_s0, %s29_s0  }
   0x9   : > { %p537_p1 = scmp.lt.s32.totalorder %s4261_s0, 3 }
   0xb   : > { %p538_p2 = pnand %p3752_p0, %p537_p1 }
   0xc   : > { %p593_p3 = scmp.lt.s32.totalorder (!%p538_p2), %s3748_s30, 1  ;;  %s5215_s23 = sld [smem:[#allocation9_spill]] (!%p538_p2) }
   0xd   : > { %541 = sbr.rel (%p538_p2) target bundleno = 5144 (0x1418), region = 96  ;;  %s5199_s25 = smov (!%p538_p2), 32  }
   0xe   : > { %s5197_s3 = smov (!%p538_p2), 31   ;;  %s5201_s26 = smov (!%p538_p2), 33  }
   0xf   : > { %s5193_s27 = smov (!%p538_p2), 127   ;;  %s5195_s28 = smov (!%p538_p2), 1  }
  0x10   : > { %s5203_s29 = smov (!%p538_p2), 112   ;;  %s5206_s20 = smov (!%p538_p2), 96  }
  0x11   : > { %s5191_s21 = smov (!%p538_p2), 80   ;;  %s5216_s2 = sld [smem:[#allocation11_spill]] (!%p538_p2) }
  0x12   : > { %v3758_v0 = vld.sshfl [vmem:[%s5184_s15] sm:$0x11 pattern:$0x75316420]  ;;  %v687_v1 = vlaneseq  ;;  %vm605_vm0 = vcmask 519168   ;;  %s5233_s30 = smov (!%p593_p3, %s3748_s30), 1 }
  0x13   : > { %v4263_v2 = vmov 1966171168   ;;  %v4264_v5 = vmov 0   ;;  %s3959_s1 = sshll.u32 %s5233_s30, 3  ;;  %v683_v6 = vcombine.high %v3758_v0, %v3758_v0  ;;  %vm608_vm1 = vcmask 517120   ;;  %s5220_s4 = sld [smem:[#allocation13_spill]] }
  0x14   : > { %v685_v3 = vunpack.c.l.s4 %v4263_v2  ;;  %v688_v4 = vshrl.u32 %v687_v1, 7  ;;  %604 = vst [vmem:[#allocation2] sm:$0xff] %v4264_v5  ;;  %606 = vst.msk [vmem:[#allocation2 + $0x8] sm:$0xf] %vm605_vm0, %v4264_v5  ;;  %870 = vmatprep.mubr.bf16.mxu0 %v4264_v5  ;;  %929 = vmatprep.mubr.bf16.mxu1 %v4264_v5  ;;  %s597_s24 = scalar_lea.vmem %s5215_s23, %s3959_s1  ;;  %vm666_vm2 = vcmask 1043714   ;;  %vm667_vm3 = vcmask 1047558  }
  0x15   : > { %607 = vst [vmem:[#allocation2 + $0xc] sm:$0x33] %v4264_v5  ;;  %610 = vst [vmem:[#allocation3] sm:$0xff] %v4264_v5  ;;  %4125 = vset.pattern.permute.xlu0 %v4264_v5  ;;  %v647_v8 = vld [vmem:[%s597_s24] sm:$0xff]  ;;  %vm662_vm4 = vcmask 261120   ;;  %vm670_vm5 = vcmask 257026  }
  0x16   : > { %611 = vst.msk [vmem:[#allocation3 + $0x8] sm:$0xf] %vm605_vm0, %v4264_v5  ;;  %612 = vst [vmem:[#allocation3 + $0xc] sm:$0xff] %v4264_v5  ;;  %v686_v7 = vunpack.c.0.s8 %v685_v3  ;;  %v649_v10 = vcombine.high %v647_v8, %v647_v8  ;;  %v4454_v11 = vsub.s32 0, %v688_v4  ;;  %vm772_vm7 = vcmask 269312   ;;  %s5217_s1 = sld [smem:[#allocation10_spill]] }
  0x17   : > { %613 = vst.msk [vmem:[#allocation3 + $0x14] sm:$0xf] %vm605_vm0, %v4264_v5  ;;  %614 = vst [vmem:[#allocation3 + $0x18] sm:$0xff] %v4264_v5  ;;  %vm720_vm8 = vcmask 252928   ;;  %vm746_vm9 = vcmask 254976   ;;  %vm742_vm10 = vcmask 1041664  }
  0x18   : > { %615 = vst.msk [vmem:[#allocation3 + $0x20] sm:$0xf] %vm605_vm0, %v4264_v5  ;;  %616 = vst [vmem:[#allocation4] sm:$0xf] %v4264_v5  ;;  %v4452_v9 = vsub.s32 %v686_v7, %v688_v4  ;;  %v3961_v14 = vpack.c.bf16 %v649_v10, %v647_v8  ;;  %vm743_vm11 = vcmask 1045508   ;;  %vm790_vm12 = vcmask 1043456  }
  0x19   : > { %617 = vst [vmem:[#allocation4 + $0x4] sm:$0xf] %v4264_v5  ;;  %618 = vst [vmem:[#allocation4 + $0x8] sm:$0xf] %v4264_v5  ;;  %vm792_vm13 = vcmask 1039360   ;;  %vm737_vm15 = vcmask 7168  }
  0x1a   : > { %619 = vst [vmem:[#allocation5] sm:$0xf] %v4264_v5  ;;  %620 = vst [vmem:[#allocation5 + $0x4] sm:$0xf] %v4264_v5  ;;  %v690_v12 = vrot.slane %v3758_v0, %v4452_v9  ;;  %v697_v13 = vrot.slane %v683_v6, %v4452_v9  ;;  %v658_v19 = vrot.slane %v3961_v14, 6  ;;  %v4272_v63 = vmov 1  }
  0x1b   : > { %621 = vst [vmem:[#allocation5 + $0x8] sm:$0xf] %v4264_v5  ;;  %622 = vst [vmem:[#allocation5 + $0xc] sm:$0xf] %v4264_v5  ;;  %4126 = vset.pattern.permute.xlu1 %v4272_v63  ;;  %v1001_v0 = vld [vmem:[%s5216_s2] sm:$0xff]  ;;  %v4274_v1 = vmov 2  }
  0x1c   : > { %623 = vst [vmem:[#allocation5 + $0x10] sm:$0xf] %v4264_v5  ;;  %624 = vst [vmem:[#allocation5 + $0x14] sm:$0xf] %v4264_v5  ;;  %v750_v15 = vshrl.u32 %v690_v12, 16  ;;  %v757_v16 = vshrl.u32 %v697_v13, 16  ;;  %v699_v17 = vpack.i.b16 %v690_v12, %v690_v12  ;;  %v706_v18 = vpack.i.b16 %v697_v13, %v697_v13  ;;  %659 = vrot.lane.b32.xlu0 %v658_v19, %s5199_s25 }
  0x1d   : > { %625 = vst [vmem:[#allocation6] sm:$0xf] %v4264_v5  ;;  %626 = vst [vmem:[#allocation6 + $0x4] sm:$0xf] %v4264_v5  ;;  %v3765_v12 = vld [vmem:[%s5217_s1 + $0x4] sm:$0xf] }
  0x1e   : > { %627 = vst [vmem:[#allocation6 + $0x8] sm:$0xf] %v4264_v5  ;;  %628 = vst [vmem:[#allocation6 + $0xc] sm:$0xf] %v4264_v5  ;;  %v751_v20 = vpack.i.b16 %v750_v15, %v750_v15  ;;  %v758_v21 = vpack.i.b16 %v757_v16, %v757_v16  ;;  %v704_v22 = vrot.slane %v699_v17, %v4454_v11  ;;  %s5221_s22 = sld [smem:[#allocation12_spill]]  ;;  %s5223_s24 = smov 32  }
  0x1f   : > { %629 = vst [vmem:[#allocation7] sm:$0xff] %v4264_v5  ;;  %630 = vst.msk [vmem:[#allocation7 + $0x8] sm:$0xf] %vm605_vm0, %v4264_v5  ;;  %v711_v23 = vrot.slane %v706_v18, %v4454_v11  ;;  %v798_v18 = vld [vmem:[%s5217_s1] sm:$0xf]  ;;  %s4278_s2 = smov 88  }
  0x20   : > { %631 = vst [vmem:[#allocation7 + $0xc] sm:$0xff] %v4264_v5  ;;  %632 = vst.msk [vmem:[#allocation7 + $0x14] sm:$0xf] %vm605_vm0, %v4264_v5  ;;  %v756_v24 = vrot.slane %v751_v20, %v4454_v11  ;;  %v763_v25 = vrot.slane %v758_v21, %v4454_v11  ;;  %s5227_s6 = sld [smem:[#allocation15_spill]] }
  0x21   : > { %633 = vst [vmem:[#allocation7 + $0x18] sm:$0xff] %v4264_v5  ;;  %634 = vst.msk [vmem:[#allocation7 + $0x20] sm:$0xf] %vm605_vm0, %v4264_v5  ;;  %v4463_v26 = vcombine.low %v704_v22, %v711_v23  ;;  %s5228_s5 = sld [smem:[#allocation14_spill]] }
  0x22   : > { %635 = vst [vmem:[#allocation7 + $0x24] sm:$0xff] %v4264_v5  ;;  %636 = vst.msk [vmem:[#allocation7 + $0x2c] sm:$0xf] %vm605_vm0, %v4264_v5  ;;  %v4465_v27 = vcombine.low %v756_v24, %v763_v25  ;;  %v3773_v25 = vld [vmem:[%s5217_s1 + $0x8] sm:$0xf] }
  0x23   : > { %637 = vst [vmem:[#allocation7 + $0x30] sm:$0xff] %v4264_v5  ;;  %638 = vst.msk [vmem:[#allocation7 + $0x38] sm:$0xf] %vm605_vm0, %v4264_v5  ;;  %717 = vrot.lane.b32.xlu1 %v4463_v26, %s5197_s3 }
  0x24   : > { %639 = vst [vmem:[#allocation7 + $0x3c] sm:$0xff] %v4264_v5  ;;  %640 = vst.msk [vmem:[#allocation7 + $0x44] sm:$0xf] %vm605_vm0, %v4264_v5  ;;  %769 = vrot.lane.b32.xlu0 %v4465_v27, %s5201_s26 }
  0x25   : > { %641 = vst [vmem:[#allocation8] sm:$0xff] %v4264_v5  ;;  %642 = vst.msk [vmem:[#allocation8 + $0x8] sm:$0xf] %vm605_vm0, %v4264_v5 }
  0x26   : > { %643 = vst [vmem:[#allocation8 + $0xc] sm:$0xff] %v4264_v5  ;;  %644 = vst.msk [vmem:[#allocation8 + $0x14] sm:$0xf] %vm605_vm0, %v4264_v5 }
  0x27   : > { %645 = vst [vmem:[#allocation8 + $0x18] sm:$0xff] %v4264_v5  ;;  %646 = vst.msk [vmem:[#allocation8 + $0x20] sm:$0xf] %vm605_vm0, %v4264_v5  ;;  %vm824_vm0 = vcmask 785408  }
  0x28   : > { %609 = vst.msk [vmem:[#allocation2 + $0x14] sm:$0x3] %vm608_vm1, %v4264_v5  ;;  %vm668_vm6 = vmor %vm667_vm3, %vm666_vm2  ;;  %vm831_vm1 = vcmask 1045504   ;;  %vm885_vm2 = vcmask 916480   ;;  %vm827_vm3 = vcmask 97280  }
  0x29   : > { %vm744_vm14 = vmor %vm743_vm11, %vm742_vm10  ;;  %vm1040_vm10 = vcmask 257024  }
  0x8e   : > { %v660_v28 = vpop.permute.xlu0 %659 }
  0x8f   : > { %v661_v29 = vrot.slane %v660_v28, 4 }
  0x91   : > { %v663_v30 = vsel %vm662_vm4, %v661_v29, %v660_v28  ;;  %671 = vst.msk [vmem:[#allocation2 + $0x8] sm:$0xc] %vm670_vm5, %v661_v29  ;;  %vm946_vm5 = vcmask 654336  }
  0x92   : > { %669 = vst.msk [vmem:[#allocation2] sm:$0xcc] %vm668_vm6, %v663_v30  ;;  %vm1036_vm6 = vcmask 1043712  }
  0x95   : > { %v718_v31 = vpop.permute.xlu1 %717 }
  0x96   : > { %v770_v32 = vpop.permute.xlu0 %769  ;;  %v719_v34 = vrot.slane %v718_v31, 4 }
  0x97   : > { %v771_v33 = vrot.slane %v770_v32, 4 }
  0x98   : > { %v749_v35 = vld [vmem:[#allocation2 + $0x8] sm:$0xc]  ;;  %v721_v38 = vsel %vm720_vm8, %v719_v34, %v718_v31 }
  0x99   : > { %v674_v36 = vld [vmem:[#allocation2 + $0x8] sm:$0xc]  ;;  %v773_v37 = vsel %vm772_vm7, %v771_v33, %v770_v32  ;;  %v777_v39 = vmul.bf16 %v771_v33, %v749_v35  ;;  %v748_v40 = vld [vmem:[#allocation2] sm:$0xcc] }
  0x9a   : > { %v673_v41 = vld [vmem:[#allocation2] sm:$0xcc]  ;;  %v776_v42 = vmul.bf16 %v773_v37, %v748_v40  ;;  %v725_v44 = vmul.bf16 %v719_v34, %v674_v36 }
  0x9b   : > { %v3764_v43 = vrot.slane %v777_v39, 10  ;;  %v724_v46 = vmul.bf16 %v721_v38, %v673_v41 }
  0x9c   : > { %v3763_v45 = vrot.slane %v776_v42, 10  ;;  %v3761_v47 = vrot.slane %v725_v44, 10 }
  0x9d   : > { %786 = vrot.lane.b32.xlu0 %v3764_v43, %s5193_s27  ;;  %v3760_v48 = vrot.slane %v724_v46, 10 }
  0x9e   : > { %784 = vrot.lane.b32.xlu1 %v3763_v45, %s5193_s27 }
  0xa1   : > { %734 = vrot.lane.b32.xlu0 %v3761_v47, %s5195_s28 }
  0xa2   : > { %732 = vrot.lane.b32.xlu1 %v3760_v48, %s5195_s28 }
 0x10f   : > { %v787_v49 = vpop.permute.xlu0 %786 }
 0x110   : > { %v789_v50 = vrot.slane %v787_v49, 4  ;;  %797 = vst.msk [vmem:[#allocation2 + $0x14] sm:$0x3] %vm746_vm9, %v787_v49  ;;  %v785_v51 = vpop.permute.xlu1 %784 }
 0x111   : > { %v788_v52 = vrot.slane %v785_v51, 4 }
 0x113   : > { %v791_v53 = vsel %vm790_vm12, %v788_v52, %v789_v50  ;;  %v735_v57 = vpop.permute.xlu0 %734 }
 0x114   : > { %v793_v54 = vsel %vm792_vm13, %v785_v51, %v791_v53  ;;  %v733_v55 = vpop.permute.xlu1 %732 }
 0x115   : > { %796 = vst.msk [vmem:[#allocation2 + $0xc] sm:$0x33] %vm744_vm14, %v793_v54  ;;  %v736_v56 = vrot.slane %v733_v55, 4 }
 0x117   : > { %v738_v58 = vsel %vm737_vm15, %v736_v56, %v733_v55  ;;  %v739_v59 = vsel %vm737_vm15, %v736_v56, %v735_v57 }
 0x118   : > { %745 = vst.msk [vmem:[#allocation2] sm:$0x33] %vm744_vm14, %v738_v58  ;;  %vm1199_vm14 = vcmask 195584  }
 0x119   : > { %747 = vst.msk [vmem:[#allocation2 + $0x8] sm:$0x3] %vm746_vm9, %v739_v59  ;;  %vm1037_vm9 = vcmask 1047556  }
 0x11a   : > { %vm4533_vm11 = vmor %vm1037_vm9, %vm1036_vm6  ;;  %vm2031_vm6 = vcmask 392192   ;;  %vm2517_vm9 = vcmask 523264  }
 0x11f   : > { %v4150_v61 = vld [vmem:[#allocation2 + $0x4] ss:$12 sps:$4 sm:$0x3f]   ;;  %v4152_v62 = vld [vmem:[#allocation2] ss:$12 sps:$4 sm:$0x3f]  }
 0x120   : > { %v4149_v60 = vld [vmem:[#allocation2 + $0x8] ss:$12 sps:$4 sm:$0x3f]  }
 0x121   : > { %883 = vrot.lane.b32.xlu0 %v4149_v60, %s5203_s29  ;;  %822 = vrot.lane.b32.xlu1 %v4149_v60, %s5206_s20 }
 0x125   : > { %820 = vrot.lane.b32.xlu0 %v4150_v61, %s5206_s20  ;;  %818 = vrot.lane.b32.xlu1 %v4152_v62, %s5206_s20 }
 0x129   : > { %879 = vrot.lane.b32.xlu0 %v4152_v62, %s5203_s29  ;;  %881 = vrot.lane.b32.xlu1 %v4150_v61, %s5203_s29 }
 0x12d   : > { %942 = vrot.lane.b32.xlu0 %v4150_v61, %s5191_s21  ;;  %940 = vrot.lane.b32.xlu1 %v4152_v62, %s5191_s21 }
 0x131   : > { %944 = vrot.lane.b32.xlu1 %v4149_v60, %s5191_s21  ;;  %1004 = vperm.xlu0 %4125, %v1001_v0  }
 0x135   : > { %1012 = vperm.xlu1 %4126, %v1001_v0   ;;  %4129 = vset.pattern.permute.xlu0 %v4272_v63 }
 0x139   : > { %4127 = vset.pattern.permute.xlu1 %v4274_v1 }
 0x13a   : > { %1018 = vperm.xlu1 %4127, %v1001_v0  }
 0x13e   : > { %1129 = vrot.lane.b32.xlu1 %v4465_v27, %s5201_s26  ;;  %s5226_s26 = smov 127  }
 0x13f   : > { %4128 = vset.pattern.permute.xlu1 %v4264_v5 }
 0x193   : > { %v884_v2 = vpop.permute.xlu0 %883  ;;  %v823_v3 = vpop.permute.xlu1 %822 }
 0x197   : > { %v821_v4 = vpop.permute.xlu0 %820  ;;  %v819_v6 = vpop.permute.xlu1 %818 }
 0x198   : > { %v826_v7 = vsel %vm824_vm0, %v821_v4, %v823_v3  ;;  %v825_v8 = vsel %vm824_vm0, %v819_v6, %v821_v4 }
 0x199   : > { %3769 = vmatprep.subr.msk.bf16.mxu0 %vm831_vm1, %v826_v7  ;;  %v833_v10 = vsel %vm831_vm1, %v825_v8, 0 }
 0x19a   : > { %853 = vmatpush1.bf16.msra.mxu0 %v833_v10 }
 0x19b   : > { %v880_v13 = vpop.permute.xlu0 %879  ;;  %v882_v14 = vpop.permute.xlu1 %881 }
 0x19c   : > { %v887_v15 = vsel %vm885_vm2, %v882_v14, %v884_v2  ;;  %v886_v16 = vsel %vm885_vm2, %v880_v13, %v882_v14 }
 0x19d   : > { %3771 = vmatprep.subr.msk.bf16.mxu1 %vm831_vm1, %v887_v15  ;;  %v892_v17 = vsel %vm831_vm1, %v886_v16, 0  ;;  %3770 = vmatmul.mubr.msk.bf16.vlgmr.msra.gmra.mxu0 %vm827_vm3, %v3765_v12 }
 0x19e   : > { %912 = vmatpush1.bf16.msra.mxu1 %v892_v17  ;;  %990 = vmatprep.mubr.bf16.mxu0 %v4264_v5 }
 0x19f   : > { %v943_v19 = vpop.permute.xlu0 %942  ;;  %v941_v20 = vpop.permute.xlu1 %940 }
 0x1a0   : > { %v947_v21 = vsel %vm946_vm5, %v941_v20, %v943_v19 }
 0x1a1   : > { %3772 = vmatmul.mubr.msk.bf16.vlgmr.msra.gmra.mxu1 %vm827_vm3, %v798_v18  ;;  %v953_v24 = vsel %vm831_vm1, %v947_v21, 0 }
 0x1a2   : > { %1242 = vmatprep.mubr.bf16.mxu1 %v4264_v5 }
 0x1a3   : > { %v945_v22 = vpop.permute.xlu1 %944 }
 0x1a4   : > { %v948_v23 = vsel %vm946_vm5, %v943_v19, %v945_v22 }
 0x1a5   : > { %3774 = vmatprep.subr.msk.bf16.mxu0 %vm831_vm1, %v948_v23  ;;  %vm1651_vm1 = vcmask 781568  }
 0x1a6   : > { %973 = vmatpush1.bf16.msra.mxu0 %v953_v24 }
 0x1a9   : > { %3775 = vmatmul.mubr.msk.bf16.vlgmr.msra.gmra.mxu0 %vm827_vm3, %v3773_v25  ;;  %vm4276_vm3 = vmmov 0  }
 0x1aa   : > { %1310 = vmatprep.mubr.bf16.mxu0 %v4264_v5 }
 0x1ac   : > { %v1005_v37 = vpop.permute.xlu0 %1004 }
 0x1b0   : > { %v1013_v41 = vpop.permute.xlu1 %1012 }
 0x1b5   : > { %v1019_v50 = vpop.permute.xlu1 %1018 }
 0x1b9   : > { %v1130_v59 = vpop.permute.xlu1 %1129 }
 0x1ba   : > { %v1131_v61 = vrot.slane %v1130_v59, 4 }
 0x1bc   : > { %v1132_v0 = vsel %vm772_vm7, %v1131_v61, %v1130_v59 }
 0x25d   : > { %v872_v27 = vpop.f32.mrf.mxu0 }
 0x25f   : > { %v874_v28 = vpop.f32.mrf.mxu0 }
 0x261   : > { %v876_v29 = vpop.f32.mrf.mxu0  ;;  %v931_v30 = vpop.f32.mrf.mxu1 }
 0x262   : > { %v932_v35 = vadd.f32 %v931_v30, %v872_v27 }
 0x263   : > { %v877_v31 = vpop.f32.mrf.mxu0  ;;  %v933_v32 = vpop.f32.mrf.mxu1 }
 0x264   : > { %v934_v38 = vadd.f32 %v933_v32, %v874_v28  ;;  %v1391_v32 = vld [vmem:[%s5220_s4] sm:$0xff] }
 0x265   : > { %v935_v33 = vpop.f32.mrf.mxu1 }
 0x267   : > { %v936_v34 = vpop.f32.mrf.mxu1 }
 0x269   : > { %v992_v36 = vpop.f32.mrf.mxu0 }
 0x26a   : > { %v999_v39 = vadd.f32 %v992_v36, %v932_v35 }
 0x26b   : > { %v994_v40 = vpop.f32.mrf.mxu0 }
 0x26c   : > { %v1007_v42 = vadd.f32 %v1005_v37, %v999_v39  ;;  %v1000_v43 = vadd.f32 %v994_v40, %v934_v38 }
 0x26d   : > { %v996_v44 = vpop.f32.mrf.mxu0 }
 0x26e   : > { %v1009_v45 = vmax.f32 %v1007_v42, 0.0  ;;  %v1008_v46 = vadd.f32 %v1005_v37, %v1000_v43 }
 0x26f   : > { %v997_v47 = vpop.f32.mrf.mxu0 }
 0x270   : > { %v1010_v48 = vmax.f32 %v1008_v46, 0.0  ;;  %v1015_v49 = vmul.f32 %v1013_v41, %v1009_v45 }
 0x272   : > { %v1016_v51 = vmul.f32 %v1013_v41, %v1010_v48  ;;  %v1021_v52 = vadd.f32 %v1019_v50, %v1015_v49 }
 0x274   : > { %v1022_v53 = vadd.f32 %v1019_v50, %v1016_v51 }
 0x276   : > { %v3962_v54 = vpack.c.bf16 %v1022_v53, %v1021_v52 }
 0x278   : > { %1030 = vrot.lane.b32.xlu0 %v3962_v54, %s5199_s25 }
 0x27c   : > { %1087 = vrot.lane.b32.xlu0 %v4463_v26, %s5197_s3  ;;  %s5225_s3 = smov 1  }
 0x2ea   : > { %v1031_v55 = vpop.permute.xlu0 %1030 }
 0x2eb   : > { %v1032_v57 = vrot.slane %v1031_v55, 4 }
 0x2ed   : > { %v1033_v58 = vsel %vm662_vm4, %v1032_v57, %v1031_v55  ;;  %1041 = vst.msk [vmem:[#allocation3 + $0x14] sm:$0xf] %vm1040_vm10, %v1032_v57  ;;  %v3780_v57 = vld [vmem:[%s5221_s22 + $0x4] sm:$0xf] }
 0x2ee   : > { %1039 = vst.msk [vmem:[#allocation3 + $0xc] sm:$0xff] %vm4533_vm11, %v1033_v58  ;;  %v1088_v60 = vpop.permute.xlu0 %1087 }
 0x2ef   : > { %v1089_v26 = vrot.slane %v1088_v60, 4 }
 0x2f1   : > { %v1090_v7 = vsel %vm720_vm8, %v1089_v26, %v1088_v60 }
 0x2f4   : > { %v1109_v62 = vld [vmem:[#allocation3 + $0x14] sm:$0xf] }
 0x2f5   : > { %v1136_v2 = vmul.bf16 %v1131_v61, %v1109_v62  ;;  %v1108_v3 = vld [vmem:[#allocation3 + $0xc] sm:$0xff]  ;;  %v1044_v6 = vld [vmem:[#allocation3 + $0x14] sm:$0xf] }
 0x2f6   : > { %v1135_v4 = vmul.bf16 %v1132_v0, %v1108_v3  ;;  %v1094_v8 = vmul.bf16 %v1089_v26, %v1044_v6  ;;  %v1093_v10 = vmul.bf16 %v1108_v3, %v1090_v7  ;;  %v1151_v0 = vld [vmem:[%s5221_s22] sm:$0xf]  ;;  %v3791_v7 = vld [vmem:[%s5221_s22 + $0x8] sm:$0xf] }
 0x2f7   : > { %1141 = vrot.lane.b32.xlu0 %v1136_v2, %s5193_s27 }
 0x2f8   : > { %1139 = vrot.lane.b32.xlu1 %v1135_v4, %s5193_s27 }
 0x2fb   : > { %1099 = vrot.lane.b32.xlu0 %v1094_v8, %s5195_s28 }
 0x2fc   : > { %1097 = vrot.lane.b32.xlu1 %v1093_v10, %s5195_s28  ;;  %s5230_s28 = smov 96  }
 0x369   : > { %v1142_v12 = vpop.permute.xlu0 %1141 }
 0x36a   : > { %v1144_v13 = vrot.slane %v1142_v12, 4  ;;  %1150 = vst.msk [vmem:[#allocation3 + $0x20] sm:$0xf] %vm1040_vm10, %v1142_v12  ;;  %v1140_v14 = vpop.permute.xlu1 %1139 }
 0x36b   : > { %v1143_v15 = vrot.slane %v1140_v14, 4 }
 0x36d   : > { %v1145_v16 = vsel %vm790_vm12, %v1143_v15, %v1144_v13  ;;  %v1100_v20 = vpop.permute.xlu0 %1099 }
 0x36e   : > { %v1146_v17 = vsel %vm792_vm13, %v1140_v14, %v1145_v16  ;;  %v1098_v18 = vpop.permute.xlu1 %1097 }
 0x36f   : > { %1149 = vst.msk [vmem:[#allocation3 + $0x18] sm:$0xff] %vm4533_vm11, %v1146_v17  ;;  %v1101_v19 = vrot.slane %v1098_v18, 4 }
 0x371   : > { %v1102_v21 = vsel %vm737_vm15, %v1101_v19, %v1098_v18  ;;  %v1103_v22 = vsel %vm737_vm15, %v1101_v19, %v1100_v20  ;;  %v4153_v23 = vld [vmem:[#allocation3 + $0x20] ss:$0 sps:$4 sm:$0xff]  }
 0x372   : > { %1106 = vst.msk [vmem:[#allocation3] sm:$0xff] %vm4533_vm11, %v1102_v21  ;;  %1331 = vrot.lane.b32.xlu0 %v4153_v23, %s5191_s21  ;;  %1191 = vrot.lane.b32.xlu1 %v4153_v23, %s5206_s20 }
 0x373   : > { %1107 = vst.msk [vmem:[#allocation3 + $0x8] sm:$0xf] %vm1040_vm10, %v1103_v22 }
 0x376   : > { %1261 = vrot.lane.b32.xlu1 %v4153_v23, %s5203_s29  ;;  %v1156_v29 = vld [vmem:[#allocation3 + $0x18] sm:$0xff] }
 0x377   : > { %v3784_v30 = vcombine.low %v1156_v29, %v1156_v29  ;;  %v3785_v31 = vcombine.high %v1156_v29, %v1156_v29 }
 0x379   : > { %v1152_v25 = vld [vmem:[#allocation3] sm:$0xff] }
 0x37a   : > { %v4154_v24 = vld [vmem:[#allocation3 + $0x8] ss:$12 sps:$4 sm:$0xff]   ;;  %v3782_v27 = vcombine.high %v1152_v25, %v1108_v3  ;;  %v3781_v28 = vcombine.low %v1152_v25, %v1108_v3 }
 0x37b   : > { %1185 = vrot.lane.b32.xlu1 %v4154_v24, %s5206_s20 }
 0x37c   : > { %1183 = vrot.lane.b32.xlu0 %v3782_v27, %s5206_s20 }
 0x37f   : > { %1253 = vrot.lane.b32.xlu1 %v3782_v27, %s5203_s29 }
 0x380   : > { %1181 = vrot.lane.b32.xlu0 %v3781_v28, %s5206_s20 }
 0x383   : > { %1251 = vrot.lane.b32.xlu1 %v3781_v28, %s5203_s29 }
 0x384   : > { %1255 = vrot.lane.b32.xlu0 %v4154_v24, %s5203_s29 }
 0x387   : > { %1187 = vrot.lane.b32.xlu1 %v3784_v30, %s5206_s20 }
 0x388   : > { %1189 = vrot.lane.b32.xlu0 %v3785_v31, %s5206_s20 }
 0x38b   : > { %1257 = vrot.lane.b32.xlu1 %v3784_v30, %s5203_s29 }
 0x38c   : > { %1259 = vrot.lane.b32.xlu0 %v3785_v31, %s5203_s29 }
 0x38f   : > { %1329 = vrot.lane.b32.xlu1 %v3785_v31, %s5191_s21 }
 0x390   : > { %1327 = vrot.lane.b32.xlu0 %v3784_v30, %s5191_s21 }
 0x393   : > { %1325 = vrot.lane.b32.xlu1 %v4154_v24, %s5191_s21 }
 0x394   : > { %1323 = vrot.lane.b32.xlu0 %v3782_v27, %s5191_s21 }
 0x397   : > { %1394 = vperm.xlu1 %4128, %v1391_v32  }
 0x398   : > { %1321 = vrot.lane.b32.xlu0 %v3781_v28, %s5191_s21  ;;  %s4277_s21 = smov 104  }
 0x39b   : > { %4130 = vset.pattern.permute.xlu1 %v4274_v1 }
 0x39c   : > { %1402 = vperm.xlu0 %4129, %v1391_v32   ;;  %1408 = vperm.xlu1 %4130, %v1391_v32  }
 0x3a0   : > { %4132 = vset.pattern.permute.xlu1 %v4264_v5  ;;  %4131 = vset.pattern.permute.xlu0 %v4264_v5 }
 0x3e4   : > { %v1192_v33 = vpop.permute.xlu1 %1191  ;;  %v1332_v35 = vpop.permute.xlu0 %1331 }
 0x3e8   : > { %v1262_v34 = vpop.permute.xlu1 %1261 }
 0x3ed   : > { %v1186_v36 = vpop.permute.xlu1 %1185 }
 0x3ee   : > { %v1184_v37 = vpop.permute.xlu0 %1183 }
 0x3ef   : > { %v1194_v47 = vsel %vm824_vm0, %v1184_v37, %v1186_v36 }
 0x3f1   : > { %v1254_v38 = vpop.permute.xlu1 %1253 }
 0x3f2   : > { %v1182_v39 = vpop.permute.xlu0 %1181 }
 0x3f3   : > { %v1193_v52 = vsel %vm824_vm0, %v1182_v39, %v1184_v37 }
 0x3f5   : > { %v1252_v40 = vpop.permute.xlu1 %1251 }
 0x3f6   : > { %v1256_v41 = vpop.permute.xlu0 %1255  ;;  %v1263_v61 = vsel %vm885_vm2, %v1252_v40, %v1254_v38 }
 0x3f7   : > { %v1264_v54 = vsel %vm885_vm2, %v1254_v38, %v1256_v41 }
 0x3f9   : > { %v1188_v42 = vpop.permute.xlu1 %1187 }
 0x3fa   : > { %v1190_v43 = vpop.permute.xlu0 %1189 }
 0x3fb   : > { %v1195_v44 = vsel %vm824_vm0, %v1188_v42, %v1190_v43  ;;  %v1196_v45 = vsel %vm824_vm0, %v1190_v43, %v1192_v33 }
 0x3fc   : > { %v1205_v46 = vsel %vm790_vm12, %v1195_v44, 0  ;;  %3787 = vmatprep.subr.msk.bf16.mxu1 %vm790_vm12, %v1196_v45 }
 0x3fd   : > { %1223 = vmatpush1.bf16.msra.mxu1 %v1205_v46  ;;  %v1258_v48 = vpop.permute.xlu1 %1257 }
 0x3fe   : > { %v1260_v49 = vpop.permute.xlu0 %1259  ;;  %1224 = vmatprep.subr.bf16.mxu1 %v1194_v47 }
 0x3ff   : > { %v1265_v50 = vsel %vm885_vm2, %v1258_v48, %v1260_v49  ;;  %v1266_v51 = vsel %vm885_vm2, %v1260_v49, %v1262_v34 }
 0x400   : > { %v1273_v53 = vsel %vm790_vm12, %v1265_v50, 0  ;;  %3789 = vmatprep.subr.msk.bf16.mxu0 %vm790_vm12, %v1266_v51  ;;  %v4157_v51 = vld [vmem:[%s5186_s17 + $0x78] sm:$0xff]  }
 0x401   : > { %1225 = vmatpush1.bf16.msra.mxu1 %v1193_v52  ;;  %1291 = vmatpush1.bf16.msra.mxu0 %v1273_v53  ;;  %v1330_v55 = vpop.permute.xlu1 %1329  ;;  %v4158_v52 = vld [vmem:[%s5186_s17 + $0x38] sm:$0xff]   ;;  %v4159_v53 = vld [vmem:[%s5186_s17 + $0x70] sm:$0xff]  }
 0x402   : > { %v1328_v58 = vpop.permute.xlu0 %1327  ;;  %1292 = vmatprep.subr.bf16.mxu0 %v1264_v54  ;;  %v1336_v59 = vsel %vm946_vm5, %v1330_v55, %v1332_v35  ;;  %v4160_v54 = vld [vmem:[%s5186_s17 + $0x30] sm:$0xff]  }
 0x403   : > { %v1335_v60 = vsel %vm946_vm5, %v1328_v58, %v1330_v55  ;;  %3792 = vmatprep.subr.msk.bf16.mxu1 %vm790_vm12, %v1336_v59  ;;  %v4161_v55 = vld [vmem:[%s5186_s17 + $0x68] sm:$0xff]   ;;  %v4163_v58 = vld [vmem:[%s5186_s17 + $0x60] sm:$0xff]  }
 0x404   : > { %3788 = vmatmul.mubr.msk.bf16.vlgmr.msra.gmra.mxu1 %vm1199_vm14, %v3780_v57  ;;  %v1343_v26 = vsel %vm790_vm12, %v1335_v60, 0  ;;  %v4162_v57 = vld [vmem:[%s5186_s17 + $0x28] sm:$0xff]   ;;  %v4164_v59 = vld [vmem:[%s5186_s17 + $0x20] sm:$0xff]   ;;  %v4165_v60 = vld [vmem:[%s5186_s17 + $0x58] sm:$0xff]  }
 0x405   : > { %1293 = vmatpush1.bf16.msra.mxu0 %v1263_v61  ;;  %1361 = vmatpush1.bf16.msra.mxu1 %v1343_v26  ;;  %v1326_v62 = vpop.permute.xlu1 %1325  ;;  %v4166_v61 = vld [vmem:[%s5186_s17 + $0x18] sm:$0xff]   ;;  %v4167_v26 = vld [vmem:[%s5186_s17 + $0x50] sm:$0xff]  }
 0x406   : > { %v1324_v2 = vpop.permute.xlu0 %1323  ;;  %1380 = vmatprep.mubr.bf16.mxu1 %v4264_v5  ;;  %3971 = vmatprep.subr.bf16.mxu0 %v4157_v51  ;;  %v1886_v51 = vld [vmem:[%s5227_s6] sm:$0xff] }
 0x407   : > { %v1334_v3 = vsel %vm946_vm5, %v1324_v2, %v1326_v62  ;;  %v4168_v62 = vld [vmem:[%s5186_s17 + $0x10] sm:$0xff]  }
 0x408   : > { %1362 = vmatprep.subr.bf16.mxu1 %v1334_v3  ;;  %3790 = vmatmul.mubr.msk.bf16.vlgmr.msra.gmra.mxu0 %vm1199_vm14, %v1151_v0  ;;  %v4169_v0 = vld [vmem:[%s5186_s17 + $0x48] sm:$0xff]  }
 0x409   : > { %3972 = vmatpush3.bf16.msra.mxu0 %v4158_v52  ;;  %v4712_v52 = vld [vmem:[#allocation7] sm:$0xff] }
 0x40a   : > { %v1322_v4 = vpop.permute.xlu0 %1321  ;;  %3973 = vmatprep.subr.bf16.mxu0 %v4159_v53 }
 0x40b   : > { %v1333_v6 = vsel %vm946_vm5, %v1322_v4, %v1324_v2  ;;  %v4170_v2 = vld [vmem:[%s5186_s17 + $0x8] sm:$0xff]   ;;  %v4171_v4 = vld [vmem:[%s5186_s17 + $0x40] sm:$0xff]  }
 0x40c   : > { %1363 = vmatpush1.bf16.msra.mxu1 %v1333_v6 }
 0x40d   : > { %3974 = vmatpush3.bf16.msra.mxu0 %v4160_v54 }
 0x40e   : > { %3975 = vmatprep.subr.bf16.mxu0 %v4161_v55 }
 0x40f   : > { %3793 = vmatmul.mubr.msk.bf16.vlgmr.msra.gmra.mxu1 %vm1199_vm14, %v3791_v7  ;;  %v4172_v7 = vld [vmem:[%s5186_s17] sm:$0xff]  }
 0x411   : > { %3976 = vmatpush3.bf16.msra.mxu0 %v4162_v57  ;;  %v4175_v57 = vld [vmem:[%s5228_s5 + $0x8] sm:$0xff]  }
 0x412   : > { %v1395_v19 = vpop.permute.xlu1 %1394  ;;  %3977 = vmatprep.subr.bf16.mxu0 %v4163_v58 }
 0x415   : > { %3978 = vmatpush3.bf16.msra.mxu0 %v4164_v59 }
 0x416   : > { %3979 = vmatprep.subr.bf16.mxu0 %v4165_v60 }
 0x417   : > { %v1403_v27 = vpop.permute.xlu0 %1402  ;;  %v1409_v33 = vpop.permute.xlu1 %1408 }
 0x419   : > { %3980 = vmatpush3.bf16.msra.mxu0 %v4166_v61  ;;  %v4176_v61 = vld [vmem:[%s5228_s5] sm:$0xff]  }
 0x41a   : > { %3981 = vmatprep.subr.bf16.mxu0 %v4167_v26 }
 0x41d   : > { %3982 = vmatpush3.bf16.msra.mxu0 %v4168_v62 }
 0x41e   : > { %3983 = vmatprep.subr.bf16.mxu0 %v4169_v0 }
 0x421   : > { %3984 = vmatpush3.bf16.msra.mxu0 %v4170_v2  ;;  %v4177_v2 = vld [vmem:[%s5228_s5 + $0x10] sm:$0xff]   ;;  %s3960_s5 = sshll.u32 %s5233_s30, 4 }
 0x422   : > { %3985 = vmatprep.subr.bf16.mxu0 %v4171_v4  ;;  %s602_s23 = scalar_lea.vmem %s5188_s19, %s3960_s5 }
 0x425   : > { %3986 = vmatpush3.bf16.msra.mxu0 %v4172_v7 }
 0x4c4   : > { %v1244_v8 = vpop.f32.mrf.mxu1 }
 0x4c6   : > { %v1246_v10 = vpop.f32.mrf.mxu1 }
 0x4c8   : > { %v1248_v12 = vpop.f32.mrf.mxu1  ;;  %v1312_v13 = vpop.f32.mrf.mxu0 }
 0x4c9   : > { %v1313_v16 = vadd.f32 %v1312_v13, %v1244_v8 }
 0x4ca   : > { %v1249_v5 = vpop.f32.mrf.mxu1  ;;  %v1314_v14 = vpop.f32.mrf.mxu0 }
 0x4cb   : > { %v1315_v20 = vadd.f32 %v1314_v14, %v1246_v10 }
 0x4cc   : > { %v1316_v15 = vpop.f32.mrf.mxu0 }
 0x4ce   : > { %v1317_v17 = vpop.f32.mrf.mxu0 }
 0x4cf   : > { %v1382_v18 = vpop.f32.mrf.mxu1 }
 0x4d0   : > { %v1389_v21 = vadd.f32 %v1382_v18, %v1313_v16 }
 0x4d1   : > { %v1384_v22 = vpop.f32.mrf.mxu1 }
 0x4d2   : > { %v1390_v23 = vadd.f32 %v1384_v22, %v1315_v20  ;;  %v1397_v24 = vadd.f32 %v1395_v19, %v1389_v21 }
 0x4d3   : > { %v1386_v25 = vpop.f32.mrf.mxu1 }
 0x4d4   : > { %v1398_v28 = vadd.f32 %v1395_v19, %v1390_v23  ;;  %v1399_v29 = vmax.f32 %v1397_v24, 0.0  ;;  %v1653_v23 = vld [vmem:[%s5185_s16] sm:$0x1] }
 0x4d5   : > { %v1387_v30 = vpop.f32.mrf.mxu1  ;;  %v1675_v24 = vshrl.u32 %v1653_v23, 16 }
 0x4d6   : > { %v1400_v31 = vmax.f32 %v1398_v28, 0.0  ;;  %v1405_v32 = vmul.f32 %v1403_v27, %v1399_v29  ;;  %v1656_v29 = vpack.i.b16 %v1653_v23, %v1653_v23 }
 0x4d7   : > { %v1676_v25 = vpack.i.b16 %v1675_v24, %v1675_v24 }
 0x4d8   : > { %v1406_v34 = vmul.f32 %v1403_v27, %v1400_v31  ;;  %v1411_v35 = vadd.f32 %v1409_v33, %v1405_v32 }
 0x4d9   : > { %v1681_v27 = vrot.slane %v1676_v25, %v4454_v11 }
 0x4da   : > { %v1412_v36 = vadd.f32 %v1409_v33, %v1406_v34  ;;  %v1661_v33 = vrot.slane %v1656_v29, %v4454_v11 }
 0x4db   : > { %v3816_v28 = vcombine.low %v1681_v27, %v1681_v27 }
 0x4dc   : > { %v3963_v37 = vpack.c.bf16 %v1412_v36, %v1411_v35 }
 0x4de   : > { %1420 = vrot.lane.b32.xlu1 %v3963_v37, %s5199_s25  ;;  %v3815_v37 = vcombine.low %v1661_v33, %v1661_v33  ;;  %s5224_s25 = smov 31  }
 0x550   : > { %v1421_v38 = vpop.permute.xlu1 %1420 }
 0x551   : > { %v1422_v39 = vrot.slane %v1421_v38, 4 }
 0x553   : > { %v1423_v40 = vsel %vm662_vm4, %v1422_v39, %v1421_v38  ;;  %1427 = vst.msk [vmem:[#allocation7 + $0x20] sm:$0xf] %vm1040_vm10, %v1422_v39 }
 0x554   : > { %1426 = vst.msk [vmem:[#allocation7 + $0x18] sm:$0xff] %vm4533_vm11, %v1423_v40 }
 0x55a   : > { %v1429_v41 = vld [vmem:[#allocation7 + $0x20] sm:$0xf] }
 0x55b   : > { %1434 = vrot.lane.b32.xlu1 %v1429_v41, %s5193_s27  ;;  %v1428_v42 = vld [vmem:[#allocation7 + $0x18] sm:$0xff] }
 0x55c   : > { %1432 = vrot.lane.b32.xlu0 %v1428_v42, %s5193_s27 }
 0x5cd   : > { %v1435_v43 = vpop.permute.xlu1 %1434 }
 0x5ce   : > { %v1437_v44 = vrot.slane %v1435_v43, 4  ;;  %v1443_v45 = vmax.bf16 %v1435_v43, %v1429_v41  ;;  %v1433_v46 = vpop.permute.xlu0 %1432 }
 0x5cf   : > { %v1436_v47 = vrot.slane %v1433_v46, 4 }
 0x5d0   : > { %1448 = vrot.lane.b32.xlu1 %v1443_v45, %s5203_s29 }
 0x5d1   : > { %v1438_v48 = vsel %vm790_vm12, %v1436_v47, %v1437_v44 }
 0x5d2   : > { %v1439_v49 = vsel %vm792_vm13, %v1433_v46, %v1438_v48 }
 0x5d3   : > { %v1442_v50 = vmax.bf16 %v1439_v49, %v1428_v42 }
 0x5d5   : > { %1446 = vrot.lane.b32.xlu0 %v1442_v50, %s5203_s29  ;;  %s5222_s29 = smov 33  }
 0x642   : > { %v1449_v3 = vpop.permute.xlu1 %1448 }
 0x643   : > { %v1457_v6 = vmax.bf16 %v1449_v3, %v1443_v45  ;;  %v1451_v12 = vrot.slane %v1449_v3, 4  ;;  %v4275_v45 = vmov 0.0  }
 0x644   : > { %4023 = vmatprep.subr.bf16.mxu1 %v4275_v45  ;;  %4057 = vmatprep.subr.bf16.mxu0 %v4275_v45 }
 0x645   : > { %v3797_v8 = vcombine.low %v1457_v6, %v1457_v6  ;;  %4027 = vmatprep.mubr.msk.bf16.mxu1 %vm4276_vm3, %v4275_v45 }
 0x647   : > { %1502 = vrot.lane.b32.xlu1 %v3797_v8, %s5206_s20  ;;  %v1447_v10 = vpop.permute.xlu0 %1446 }
 0x648   : > { %v1450_v13 = vrot.slane %v1447_v10, 4 }
 0x64a   : > { %v1452_v5 = vsel %vm790_vm12, %v1450_v13, %v1451_v12 }
 0x64b   : > { %v1453_v14 = vsel %vm885_vm2, %v1447_v10, %v1452_v5 }
 0x64c   : > { %v1456_v15 = vmax.bf16 %v1453_v14, %v1442_v50  ;;  %v1887_v50 = vld [vmem:[%s5227_s6 + $0x8] sm:$0xff]  ;;  %v1936_v14 = vld [vmem:[%s5185_s16] sm:$0x1] }
 0x64e   : > { %v3796_v16 = vcombine.high %v1456_v15, %v1456_v15  ;;  %v3795_v17 = vcombine.low %v1456_v15, %v1456_v15 }
 0x650   : > { %1500 = vrot.lane.b32.xlu0 %v3796_v16, %s5206_s20 }
 0x654   : > { %1498 = vrot.lane.b32.xlu0 %v3795_v17, %s5206_s20 }
 0x658   : > { %1685 = vrot.lane.b32.xlu0 %v3816_v28, %s5222_s29 }
 0x6b9   : > { %v1503_v18 = vpop.permute.xlu1 %1502 }
 0x6c2   : > { %v1501_v19 = vpop.permute.xlu0 %1500 }
 0x6c3   : > { %v1505_v20 = vsel %vm824_vm0, %v1501_v19, %v1503_v18 }
 0x6c4   : > { %1636 = vmatprep.mubr.bf16.mxu0 %v1505_v20  ;;  %v1966_v20 = vshrl.u32 %v1936_v14, 16 }
 0x6c6   : > { %v1499_v21 = vpop.permute.xlu0 %1498  ;;  %v1967_v28 = vpack.i.b16 %v1966_v20, %v1966_v20  ;;  %v4183_v20 = vld [vmem:[%s5176_s7 + $0x10] sm:$0xff]  }
 0x6c7   : > { %v1504_v22 = vsel %vm824_vm0, %v1499_v21, %v1501_v19 }
 0x6c8   : > { %1637 = vmatmul.mubr.bf16.vlgmr.msra.gmra.mxu0 %v1504_v22 }
 0x6c9   : > { %4063 = vmatprep.mubr.msk.bf16.mxu0 %vm4276_vm3, %v4275_v45 }
 0x6ca   : > { %v1686_v40 = vpop.permute.xlu0 %1685 }
 0x788   : > { %v3987_v30 = vpop.f32.mrf.mxu0 }
 0x78a   : > { %v3988_v31 = vpop.f32.mrf.mxu0 }
 0x78b   : > { %v3989_v32 = vadd.f32 %v3988_v31, %v3987_v30 }
 0x78c   : > { %v3990_v34 = vpop.f32.mrf.mxu0 }
 0x78d   : > { %v3964_v35 = vpack.c.bf16 %v3989_v32, %v3989_v32 }
 0x78e   : > { %v3991_v36 = vpop.f32.mrf.mxu0 }
 0x78f   : > { %1648 = vrot.lane.b32.xlu1 %v3964_v35, %s5223_s24  ;;  %v1972_v36 = vrot.slane %v1967_v28, %v4454_v11 }
 0x793   : > { %1665 = vrot.lane.b32.xlu1 %v3815_v37, %s5224_s25  ;;  %v1940_v37 = vpack.i.b16 %v1936_v14, %v1936_v14 }
 0x801   : > { %v1649_v38 = vpop.permute.xlu1 %1648 }
 0x802   : > { %1652 = vst.msk [vmem:[#allocation4 + $0x4] sm:$0xf] %vm1651_vm1, %v1649_v38 }
 0x805   : > { %v1666_v39 = vpop.permute.xlu1 %1665 }
 0x809   : > { %v1654_v41 = vld [vmem:[#allocation4 + $0x4] sm:$0xf] }
 0x80a   : > { %v1674_v42 = vld [vmem:[#allocation4 + $0x4] sm:$0xf]  ;;  %v1668_v43 = vmul.bf16 %v1666_v39, %v1654_v41 }
 0x80b   : > { %v1688_v44 = vmul.bf16 %v1686_v40, %v1674_v42  ;;  %v3832_v42 = vcombine.low %v1972_v36, %v1972_v36 }
 0x80c   : > { %1670 = vrot.lane.b32.xlu1 %v1668_v43, %s5225_s3  ;;  %v1945_v43 = vrot.slane %v1940_v37, %v4454_v11 }
 0x80d   : > { %1690 = vrot.lane.b32.xlu0 %v1688_v44, %s5226_s26 }
 0x87e   : > { %v1671_v46 = vpop.permute.xlu1 %1670 }
 0x87f   : > { %v1691_v47 = vpop.permute.xlu0 %1690  ;;  %1673 = vst.msk [vmem:[#allocation4] sm:$0xf] %vm1651_vm1, %v1671_v46  ;;  %v3831_v46 = vcombine.low %v1945_v43, %v1945_v43 }
 0x880   : > { %1693 = vst.msk [vmem:[#allocation4 + $0x8] sm:$0xf] %vm1651_vm1, %v1691_v47 }
 0x886   : > { %v4173_v48 = vld [vmem:[#allocation4] sm:$0xff]  }
 0x887   : > { %v4174_v49 = vld [vmem:[#allocation4 + $0x8] ss:$0 sps:$4 sm:$0xff]   ;;  %1715 = vrot.lane.b32.xlu1 %v4173_v48, %s5206_s20 }
 0x888   : > { %1717 = vrot.lane.b32.xlu0 %v4174_v49, %s5206_s20 }
 0x88b   : > { %1772 = vrot.lane.b32.xlu1 %v4173_v48, %s4277_s21 }
 0x88c   : > { %1774 = vrot.lane.b32.xlu0 %v4174_v49, %s4277_s21 }
 0x88f   : > { %1832 = vrot.lane.b32.xlu1 %v4173_v48, %s4278_s2 }
 0x890   : > { %1834 = vrot.lane.b32.xlu0 %v4174_v49, %s4278_s2 }
 0x893   : > { %1895 = vperm.xlu1 %4132, %v1887_v50  }
 0x894   : > { %1890 = vperm.xlu0 %4131, %v1886_v51  }
 0x897   : > { %4133 = vset.pattern.permute.xlu1 %v4272_v63 }
 0x898   : > { %4134 = vset.pattern.permute.xlu0 %v4272_v63  ;;  %1903 = vperm.xlu1 %4133, %v1886_v51  }
 0x899   : > { %1907 = vperm.xlu0 %4134, %v1887_v50  }
 0x89c   : > { %4135 = vset.pattern.permute.xlu1 %v4274_v1 }
 0x89d   : > { %4137 = vset.pattern.permute.xlu0 %v4712_v52  ;;  %1913 = vperm.xlu1 %4135, %v1886_v51  }
 0x8a1   : > { %1917 = vperm.xlu1 %4135, %v1887_v50  }
 0x8a5   : > { %4136 = vset.pattern.permute.xlu1 %v4712_v52 }
 0x8f9   : > { %v1716_v55 = vpop.permute.xlu1 %1715 }
 0x8fa   : > { %v1718_v53 = vpop.permute.xlu0 %1717 }
 0x8fb   : > { %v1724_v54 = vsel %vm790_vm12, %v1718_v53, 0 }
 0x8fc   : > { %4024 = vmatpush3.bf16.msra.mxu1 %v1724_v54 }
 0x8fd   : > { %4025 = vmatprep.subr.bf16.mxu1 %v4275_v45  ;;  %v1773_v60 = vpop.permute.xlu1 %1772 }
 0x8fe   : > { %v1775_v58 = vpop.permute.xlu0 %1774 }
 0x8ff   : > { %v1781_v59 = vsel %vm790_vm12, %v1775_v58, 0 }
 0x900   : > { %4026 = vmatpush3.bf16.msra.mxu1 %v1716_v55 }
 0x901   : > { %4031 = vmatprep.subr.bf16.mxu1 %v4275_v45  ;;  %v1833_v0 = vpop.permute.xlu1 %1832 }
 0x902   : > { %v1835_v26 = vpop.permute.xlu0 %1834 }
 0x903   : > { %4028 = vmatmul.mubr.msk.bf16.vlgmr.msra.gmra.mxu1 %vm1199_vm14, %v4175_v57  ;;  %v1841_v62 = vsel %vm790_vm12, %v1835_v26, 0 }
 0x904   : > { %4032 = vmatpush3.bf16.msra.mxu1 %v1781_v59  ;;  %4035 = vmatprep.mubr.msk.bf16.mxu1 %vm4276_vm3, %v4275_v45 }
 0x905   : > { %4033 = vmatprep.subr.bf16.mxu1 %v4275_v45 }
 0x908   : > { %4034 = vmatpush3.bf16.msra.mxu1 %v1773_v60 }
 0x909   : > { %4039 = vmatprep.subr.bf16.mxu1 %v4275_v45 }
 0x90b   : > { %4036 = vmatmul.mubr.msk.bf16.vlgmr.msra.gmra.mxu1 %vm1199_vm14, %v4176_v61 }
 0x90c   : > { %4040 = vmatpush3.bf16.msra.mxu1 %v1841_v62  ;;  %4043 = vmatprep.mubr.msk.bf16.mxu1 %vm4276_vm3, %v4275_v45 }
 0x90d   : > { %4041 = vmatprep.subr.bf16.mxu1 %v4275_v45 }
 0x90e   : > { %v1896_v10 = vpop.permute.xlu1 %1895 }
 0x90f   : > { %v1891_v18 = vpop.permute.xlu0 %1890 }
 0x910   : > { %4042 = vmatpush3.bf16.msra.mxu1 %v1833_v0 }
 0x911   : > { %4047 = vmatprep.subr.bf16.mxu1 %v4275_v45 }
 0x913   : > { %4044 = vmatmul.mubr.msk.bf16.vlgmr.msra.gmra.mxu1 %vm1199_vm14, %v4177_v2  ;;  %v1904_v16 = vpop.permute.xlu1 %1903 }
 0x914   : > { %4053 = vmatprep.mubr.msk.bf16.mxu1 %vm4276_vm3, %v4275_v45  ;;  %v1908_v33 = vpop.permute.xlu0 %1907 }
 0x918   : > { %v1914_v30 = vpop.permute.xlu1 %1913 }
 0x91c   : > { %v1918_v40 = vpop.permute.xlu1 %1917 }
 0x9c3   : > { %v1760_v3 = vpop.f32.mrf.mxu1 }
 0x9c5   : > { %v4029_v4 = vpop.f32.mrf.mxu1 }
 0x9c7   : > { %v1763_v6 = vpop.f32.mrf.mxu1 }
 0x9c9   : > { %v4030_v7 = vpop.f32.mrf.mxu1 }
 0x9ca   : > { %v2198_v7 = vld [vmem:[%s5177_s8 + $0x8] sm:$0xff] }
 0x9cb   : > { %v1817_v8 = vpop.f32.mrf.mxu1 }
 0x9cc   : > { %v1818_v15 = vadd.f32 %v1817_v8, %v1760_v3 }
 0x9cd   : > { %v4037_v12 = vpop.f32.mrf.mxu1 }
 0x9cf   : > { %v1820_v13 = vpop.f32.mrf.mxu1 }
 0x9d0   : > { %v1821_v22 = vadd.f32 %v1820_v13, %v1763_v6  ;;  %v2197_v6 = vld [vmem:[%s5177_s8] sm:$0xff] }
 0x9d1   : > { %v4038_v5 = vpop.f32.mrf.mxu1 }
 0x9d3   : > { %v1877_v17 = vpop.f32.mrf.mxu1 }
 0x9d4   : > { %v1884_v19 = vadd.f32 %v1877_v17, %v1818_v15  ;;  %v4182_v17 = vld [vmem:[%s5176_s7] sm:$0xff]  }
 0x9d5   : > { %v4045_v21 = vpop.f32.mrf.mxu1 }
 0x9d6   : > { %v1898_v23 = vadd.f32 %v1891_v18, %v1884_v19 }
 0x9d7   : > { %v1880_v24 = vpop.f32.mrf.mxu1 }
 0x9d8   : > { %v1900_v25 = vmax.f32 %v1898_v23, 0.0  ;;  %v1885_v27 = vadd.f32 %v1880_v24, %v1821_v22 }
 0x9d9   : > { %v4046_v29 = vpop.f32.mrf.mxu1 }
 0x9da   : > { %v1910_v31 = vmul.f32 %v1904_v16, %v1900_v25  ;;  %v1899_v32 = vadd.f32 %v1896_v10, %v1885_v27  ;;  %v4181_v16 = vld [vmem:[%s5176_s7 + $0x8] sm:$0xff]  }
 0x9dc   : > { %v1901_v34 = vmax.f32 %v1899_v32, 0.0  ;;  %v1920_v35 = vadd.f32 %v1914_v30, %v1910_v31  ;;  %v2249_v31 = vld [vmem:[%s5185_s16] sm:$0x1] }
 0x9dd   : > { %v2251_v37 = vshrl.u32 %v2249_v31, 16  ;;  %v4200_v31 = vld [vmem:[%s5187_s18 + $0x64] ss:$8 sps:$4 sm:$0xff]  }
 0x9de   : > { %v3965_v38 = vpack.c.bf16 %v1920_v35, %v1920_v35  ;;  %v1911_v39 = vmul.f32 %v1908_v33, %v1901_v34 }
 0x9e0   : > { %v1921_v41 = vadd.f32 %v1918_v40, %v1911_v39  ;;  %1928 = vrot.lane.b32.xlu0 %v3965_v38, %s5223_s24 }
 0x9e2   : > { %v3966_v44 = vpack.c.bf16 %v1921_v41, %v1921_v41 }
 0x9e4   : > { %1930 = vrot.lane.b32.xlu1 %v3966_v44, %s5223_s24  ;;  %1976 = vrot.lane.b32.xlu0 %v3832_v42, %s5222_s29 }
 0x9e8   : > { %1949 = vrot.lane.b32.xlu1 %v3831_v46, %s5224_s25  ;;  %v2252_v46 = vpack.i.b16 %v2251_v37, %v2251_v37  ;;  %v4204_v37 = vld [vmem:[%s5187_s18 + $0x50] ss:$8 sps:$4 sm:$0xff]  }
 0xa52   : > { %v1929_v47 = vpop.permute.xlu0 %1928 }
 0xa53   : > { %1934 = vst.msk [vmem:[#allocation5 + $0x8] sm:$0xf] %vm1651_vm1, %v1929_v47 }
 0xa56   : > { %v1931_v48 = vpop.permute.xlu1 %1930  ;;  %v1977_v49 = vpop.permute.xlu0 %1976 }
 0xa57   : > { %1935 = vst.msk [vmem:[#allocation5 + $0xc] sm:$0xf] %vm1651_vm1, %v1931_v48 }
 0xa5a   : > { %v1964_v50 = vld [vmem:[#allocation5 + $0x8] sm:$0xf]  ;;  %v1950_v53 = vpop.permute.xlu1 %1949 }
 0xa5b   : > { %v1979_v51 = vmul.bf16 %v1977_v49, %v1964_v50  ;;  %v1937_v54 = vld [vmem:[#allocation5 + $0x8] sm:$0xf] }
 0xa5c   : > { %v1952_v57 = vmul.bf16 %v1950_v53, %v1937_v54  ;;  %v2257_v54 = vrot.slane %v2252_v46, %v4454_v11  ;;  %v4218_v46 = vld [vmem:[%s5187_s18 + $0xb4] ss:$8 sps:$4 sm:$0xff]  }
 0xa5d   : > { %1983 = vrot.lane.b32.xlu0 %v1979_v51, %s5226_s26 }
 0xa5e   : > { %v1965_v55 = vld [vmem:[#allocation5 + $0xc] sm:$0xf] }
 0xa5f   : > { %v1980_v58 = vmul.bf16 %v1977_v49, %v1965_v55  ;;  %v1938_v59 = vld [vmem:[#allocation5 + $0xc] sm:$0xf] }
 0xa60   : > { %v1953_v60 = vmul.bf16 %v1950_v53, %v1938_v59  ;;  %v4178_v61 = vld [vmem:[#allocation5 + $0x8] sm:$0xff]  }
 0xa61   : > { %1985 = vrot.lane.b32.xlu1 %v1980_v58, %s5226_s26  ;;  %1956 = vrot.lane.b32.xlu0 %v1952_v57, %s5225_s3 }
 0xa65   : > { %1958 = vrot.lane.b32.xlu1 %v1953_v60, %s5225_s3  ;;  %v3848_v60 = vcombine.low %v2257_v54, %v2257_v54  ;;  %v4216_v54 = vld [vmem:[%s5187_s18 + $0xb0] ss:$8 sps:$4 sm:$0xff]  }
 0xa69   : > { %2024 = vrot.lane.b32.xlu1 %v4178_v61, %s5206_s20 }
 0xacf   : > { %v1984_v26 = vpop.permute.xlu0 %1983 }
 0xad0   : > { %1989 = vst.msk [vmem:[#allocation5 + $0x10] sm:$0xf] %vm1651_vm1, %v1984_v26 }
 0xad3   : > { %v1986_v62 = vpop.permute.xlu1 %1985  ;;  %v1957_v0 = vpop.permute.xlu0 %1956 }
 0xad4   : > { %1990 = vst.msk [vmem:[#allocation5 + $0x14] sm:$0xf] %vm1651_vm1, %v1986_v62  ;;  %1962 = vst.msk [vmem:[#allocation5] sm:$0xf] %vm1651_vm1, %v1957_v0 }
 0xad7   : > { %v1959_v2 = vpop.permute.xlu1 %1958 }
 0xad8   : > { %1963 = vst.msk [vmem:[#allocation5 + $0x4] sm:$0xf] %vm1651_vm1, %v1959_v2 }
 0xadb   : > { %v4179_v3 = vld [vmem:[#allocation5 + $0x10] sm:$0xff]   ;;  %v2025_v8 = vpop.permute.xlu1 %2024 }
 0xadc   : > { %2085 = vrot.lane.b32.xlu1 %v4179_v3, %s4277_s21  ;;  %2026 = vrot.lane.b32.xlu0 %v4179_v3, %s5206_s20 }
 0xadf   : > { %v4180_v4 = vld [vmem:[#allocation5] sm:$0xff]  }
 0xae0   : > { %2083 = vrot.lane.b32.xlu1 %v4178_v61, %s4277_s21  ;;  %2022 = vrot.lane.b32.xlu0 %v4180_v4, %s5206_s20 }
 0xae4   : > { %2081 = vrot.lane.b32.xlu1 %v4180_v4, %s4277_s21  ;;  %2146 = vrot.lane.b32.xlu0 %v4179_v3, %s4278_s2  ;;  %s5231_s21 = smov 112  }
 0xae8   : > { %2144 = vrot.lane.b32.xlu0 %v4178_v61, %s4278_s2  ;;  %2201 = vperm.xlu1 %4136, %v2197_v6  }
 0xaec   : > { %2142 = vrot.lane.b32.xlu0 %v4180_v4, %s4278_s2  ;;  %4138 = vset.pattern.permute.xlu1 %v4272_v63 }
 0xaed   : > { %2214 = vperm.xlu1 %4138, %v2197_v6  }
 0xaf0   : > { %2206 = vperm.xlu0 %4137, %v2198_v7  }
 0xaf1   : > { %2218 = vperm.xlu1 %4138, %v2198_v7  }
 0xaf4   : > { %4139 = vset.pattern.permute.xlu0 %v4274_v1 }
 0xaf5   : > { %2224 = vperm.xlu0 %4139, %v2197_v6   ;;  %4140 = vset.pattern.permute.xlu1 %v4274_v1 }
 0xaf6   : > { %2228 = vperm.xlu1 %4140, %v2198_v7  }
 0xaf9   : > { %4141 = vset.pattern.permute.xlu0 %v4712_v52 }
 0xafa   : > { %4142 = vset.pattern.permute.xlu1 %v4272_v63 }
 0xb4e   : > { %v2086_v10 = vpop.permute.xlu1 %2085  ;;  %v2027_v12 = vpop.permute.xlu0 %2026 }
 0xb4f   : > { %4048 = vmatpush3.bf16.msra.mxu1 %v2027_v12  ;;  %4058 = vmatpush3.bf16.msra.mxu0 %v2086_v10  ;;  %v3922_v10 = vld.sshfl [vmem:[%s5184_s15] sm:$0x11 pattern:$0x75316420] }
 0xb50   : > { %4059 = vmatprep.subr.bf16.mxu0 %v4275_v45  ;;  %4049 = vmatprep.subr.bf16.mxu1 %v4275_v45 }
 0xb52   : > { %v2084_v13 = vpop.permute.xlu1 %2083  ;;  %v2023_v5 = vpop.permute.xlu0 %2022 }
 0xb53   : > { %4050 = vmatpush3.bf16.msra.mxu1 %v2025_v8  ;;  %4060 = vmatpush3.bf16.msra.mxu0 %v2084_v13  ;;  %v2874_v13 = vcombine.high %v3922_v10, %v3922_v10 }
 0xb54   : > { %4061 = vmatprep.subr.bf16.mxu0 %v4275_v45  ;;  %4051 = vmatprep.subr.bf16.mxu1 %v4275_v45 }
 0xb56   : > { %v2082_v14 = vpop.permute.xlu1 %2081  ;;  %v2147_v15 = vpop.permute.xlu0 %2146 }
 0xb57   : > { %4052 = vmatpush3.bf16.msra.mxu1 %v2023_v5  ;;  %4062 = vmatpush3.bf16.msra.mxu0 %v2082_v14  ;;  %v4828_v5 = vrot.slane %v3922_v10, %v4452_v9  ;;  %v4831_v14 = vrot.slane %v2874_v13, %v4452_v9  ;;  %v2838_v9 = vld [vmem:[%s5179_s10] sm:$0xff] }
 0xb58   : > { %4067 = vmatprep.subr.bf16.mxu1 %v4275_v45  ;;  %4077 = vmatprep.subr.bf16.mxu0 %v4275_v45  ;;  %v4231_v13 = vld [vmem:[%s5187_s18 + $0xc0] ss:$8 sps:$4 sm:$0xff]  }
 0xb5a   : > { %4054 = vmatmul.mubr.msk.bf16.vlgmr.msra.gmra.mxu1 %vm2031_vm6, %v4181_v16  ;;  %4064 = vmatmul.mubr.msk.bf16.vlgmr.msra.gmra.mxu0 %vm2031_vm6, %v4182_v17  ;;  %v2145_v18 = vpop.permute.xlu0 %2144  ;;  %v2890_v16 = vpack.i.b16 %v4828_v5, %v4828_v5  ;;  %v2897_v17 = vpack.i.b16 %v4831_v14, %v4831_v14 }
 0xb5b   : > { %4068 = vmatpush3.bf16.msra.mxu1 %v2147_v15  ;;  %4073 = vmatprep.mubr.msk.bf16.mxu1 %vm4276_vm3, %v4275_v45 }
 0xb5c   : > { %4069 = vmatprep.subr.bf16.mxu1 %v4275_v45  ;;  %4081 = vmatprep.mubr.msk.bf16.mxu0 %vm4276_vm3, %v4275_v45 }
 0xb5e   : > { %v2143_v19 = vpop.permute.xlu0 %2142 }
 0xb5f   : > { %4070 = vmatpush3.bf16.msra.mxu1 %v2145_v18  ;;  %v2895_v18 = vrot.slane %v2890_v16, %v4454_v11  ;;  %v4236_v16 = vld [vmem:[%s5187_s18 + $0x84] ss:$8 sps:$4 sm:$0xff]  }
 0xb60   : > { %4071 = vmatprep.subr.bf16.mxu1 %v4275_v45 }
 0xb63   : > { %4072 = vmatpush3.bf16.msra.mxu1 %v2143_v19  ;;  %v2202_v28 = vpop.permute.xlu1 %2201  ;;  %v2902_v19 = vrot.slane %v2897_v17, %v4454_v11 }
 0xb64   : > { %4085 = vmatprep.subr.bf16.mxu1 %v4275_v45 }
 0xb66   : > { %4074 = vmatmul.mubr.msk.bf16.vlgmr.msra.gmra.mxu1 %vm2031_vm6, %v4183_v20  ;;  %v4844_v20 = vcombine.low %v2895_v18, %v2902_v19  ;;  %v4234_v19 = vld [vmem:[%s5187_s18 + $0x80] ss:$8 sps:$4 sm:$0xff]  }
 0xb67   : > { %4089 = vmatprep.mubr.msk.bf16.mxu1 %vm4276_vm3, %v4275_v45 }
 0xb68   : > { %v2215_v33 = vpop.permute.xlu1 %2214 }
 0xb6b   : > { %v2207_v35 = vpop.permute.xlu0 %2206 }
 0xb6c   : > { %v2219_v44 = vpop.permute.xlu1 %2218 }
 0xb70   : > { %v2225_v48 = vpop.permute.xlu0 %2224 }
 0xb71   : > { %v2229_v55 = vpop.permute.xlu1 %2228 }
 0xc1a   : > { %v2069_v21 = vpop.f32.mrf.mxu1  ;;  %v2127_v22 = vpop.f32.mrf.mxu0 }
 0xc1b   : > { %v2128_v32 = vadd.f32 %v2127_v22, %v2069_v21 }
 0xc1c   : > { %v4055_v23 = vpop.f32.mrf.mxu1  ;;  %v4065_v24 = vpop.f32.mrf.mxu0 }
 0xc1d   : > { %v4186_v24 = vld [vmem:[%s5178_s9] sm:$0xff]  }
 0xc1e   : > { %v2072_v25 = vpop.f32.mrf.mxu1  ;;  %v2130_v27 = vpop.f32.mrf.mxu0 }
 0xc1f   : > { %v2131_v39 = vadd.f32 %v2130_v27, %v2072_v25  ;;  %v4194_v25 = vld [vmem:[%s5187_s18 + $0x74] ss:$8 sps:$4 sm:$0xff]  }
 0xc20   : > { %v4056_v29 = vpop.f32.mrf.mxu1  ;;  %v4066_v30 = vpop.f32.mrf.mxu0 }
 0xc21   : > { %v4192_v29 = vld [vmem:[%s5187_s18 + $0x70] ss:$8 sps:$4 sm:$0xff]   ;;  %v4191_v30 = vld [vmem:[%s5187_s18 + $0x34] ss:$8 sps:$4 sm:$0xff]  }
 0xc26   : > { %v2188_v34 = vpop.f32.mrf.mxu1 }
 0xc27   : > { %v2195_v36 = vadd.f32 %v2188_v34, %v2128_v32  ;;  %v4188_v32 = vld [vmem:[%s5178_s9 + $0x8] sm:$0xff]  }
 0xc28   : > { %v4075_v38 = vpop.f32.mrf.mxu1  ;;  %v4197_v34 = vld [vmem:[%s5187_s18 + $0x24] ss:$8 sps:$4 sm:$0xff]  }
 0xc29   : > { %v2209_v40 = vadd.f32 %v2202_v28, %v2195_v36  ;;  %v4187_v28 = vld [vmem:[%s5178_s9 + $0x10] sm:$0xff]   ;;  %v4195_v36 = vld [vmem:[%s5187_s18 + $0x20] ss:$8 sps:$4 sm:$0xff]  }
 0xc2a   : > { %v2191_v41 = vpop.f32.mrf.mxu1  ;;  %v4203_v38 = vld [vmem:[%s5187_s18 + $0x14] ss:$8 sps:$4 sm:$0xff]  }
 0xc2b   : > { %v2211_v42 = vmax.f32 %v2209_v40, 0.0  ;;  %v2196_v43 = vadd.f32 %v2191_v41, %v2131_v39  ;;  %v4201_v39 = vld [vmem:[%s5187_s18 + $0x10] ss:$8 sps:$4 sm:$0xff]   ;;  %v4209_v40 = vld [vmem:[%s5187_s18 + $0x4] ss:$8 sps:$4 sm:$0xff]  }
 0xc2c   : > { %v4076_v47 = vpop.f32.mrf.mxu1  ;;  %v4207_v41 = vld [vmem:[%s5187_s18] ss:$8 sps:$4 sm:$0xff]  }
 0xc2d   : > { %v2221_v49 = vmul.f32 %v2215_v33, %v2211_v42  ;;  %v2210_v50 = vadd.f32 %v2207_v35, %v2196_v43  ;;  %v4198_v33 = vld [vmem:[%s5187_s18 + $0x60] ss:$8 sps:$4 sm:$0xff]   ;;  %v4206_v35 = vld [vmem:[%s5187_s18 + $0x54] ss:$8 sps:$4 sm:$0xff]   ;;  %v4212_v42 = vld [vmem:[%s5187_s18 + $0x44] ss:$8 sps:$4 sm:$0xff]  }
 0xc2e   : > { %v4215_v43 = vld [vmem:[%s5187_s18 + $0xf4] ss:$8 sps:$4 sm:$0xff]  }
 0xc2f   : > { %v2212_v51 = vmax.f32 %v2210_v50, 0.0  ;;  %v2231_v53 = vadd.f32 %v2225_v48, %v2221_v49  ;;  %v4213_v48 = vld [vmem:[%s5187_s18 + $0xf0] ss:$8 sps:$4 sm:$0xff]   ;;  %v4221_v50 = vld [vmem:[%s5187_s18 + $0xe4] ss:$8 sps:$4 sm:$0xff]  }
 0xc31   : > { %v2222_v57 = vmul.f32 %v2219_v44, %v2212_v51  ;;  %v3967_v58 = vpack.c.bf16 %v2231_v53, %v2231_v53  ;;  %v4210_v44 = vld [vmem:[%s5187_s18 + $0x40] ss:$8 sps:$4 sm:$0xff]  }
 0xc33   : > { %v2232_v59 = vadd.f32 %v2229_v55, %v2222_v57  ;;  %2239 = vrot.lane.b32.xlu1 %v3967_v58, %s5223_s24  ;;  %v4219_v55 = vld [vmem:[%s5187_s18 + $0xe0] ss:$8 sps:$4 sm:$0xff]  }
 0xc35   : > { %v3968_v61 = vpack.c.bf16 %v2232_v59, %v2232_v59  ;;  %v4224_v59 = vld [vmem:[%s5187_s18 + $0xa4] ss:$8 sps:$4 sm:$0xff]  }
 0xc37   : > { %2241 = vrot.lane.b32.xlu0 %v3968_v61, %s5223_s24  ;;  %2261 = vrot.lane.b32.xlu1 %v3848_v60, %s5222_s29  ;;  %v4227_v60 = vld [vmem:[%s5187_s18 + $0xd4] ss:$8 sps:$4 sm:$0xff]  }
 0xca5   : > { %v2240_v26 = vpop.permute.xlu1 %2239 }
 0xca6   : > { %2245 = vst.msk [vmem:[#allocation6] sm:$0xf] %vm1651_vm1, %v2240_v26 }
 0xca9   : > { %v2242_v62 = vpop.permute.xlu0 %2241  ;;  %v2262_v0 = vpop.permute.xlu1 %2261 }
 0xcaa   : > { %2246 = vst.msk [vmem:[#allocation6 + $0x4] sm:$0xf] %vm1651_vm1, %v2242_v62 }
 0xcad   : > { %v2247_v2 = vld [vmem:[#allocation6] sm:$0xf] }
 0xcae   : > { %v2264_v3 = vmul.bf16 %v2262_v0, %v2247_v2  ;;  %v4225_v2 = vld [vmem:[%s5187_s18 + $0xd0] ss:$8 sps:$4 sm:$0xff]  }
 0xcb0   : > { %2268 = vrot.lane.b32.xlu0 %v2264_v3, %s5226_s26 }
 0xcb1   : > { %v2248_v4 = vld [vmem:[#allocation6 + $0x4] sm:$0xf] }
 0xcb2   : > { %v2265_v6 = vmul.bf16 %v2262_v0, %v2248_v4  ;;  %v4184_v7 = vld [vmem:[#allocation6] sm:$0xff]   ;;  %v4230_v4 = vld [vmem:[%s5187_s18 + $0x94] ss:$8 sps:$4 sm:$0xff]  }
 0xcb3   : > { %v4222_v0 = vld [vmem:[%s5187_s18 + $0xa0] ss:$8 sps:$4 sm:$0xff]  }
 0xcb4   : > { %2270 = vrot.lane.b32.xlu1 %v2265_v6, %s5226_s26  ;;  %v4233_v6 = vld [vmem:[%s5187_s18 + $0xc4] ss:$8 sps:$4 sm:$0xff]  }
 0xcb8   : > { %2297 = vrot.lane.b32.xlu1 %v4184_v7, %s5206_s20 }
 0xcbc   : > { %2359 = vrot.lane.b32.xlu1 %v4184_v7, %s4278_s2 }
 0xd22   : > { %v2269_v8 = vpop.permute.xlu0 %2268 }
 0xd23   : > { %2274 = vst.msk [vmem:[#allocation6 + $0x8] sm:$0xf] %vm1651_vm1, %v2269_v8 }
 0xd26   : > { %v2271_v12 = vpop.permute.xlu1 %2270 }
 0xd27   : > { %2275 = vst.msk [vmem:[#allocation6 + $0xc] sm:$0xf] %vm1651_vm1, %v2271_v12  ;;  %v4228_v12 = vld [vmem:[%s5187_s18 + $0x90] ss:$8 sps:$4 sm:$0xff]  }
 0xd2a   : > { %v2298_v22 = vpop.permute.xlu1 %2297 }
 0xd2e   : > { %v4185_v15 = vld [vmem:[#allocation6 + $0x8] sm:$0xff]   ;;  %v2360_v27 = vpop.permute.xlu1 %2359 }
 0xd2f   : > { %2299 = vrot.lane.b32.xlu0 %v4185_v15, %s5206_s20  ;;  %s5229_s20 = smov 80  }
 0xd33   : > { %2361 = vrot.lane.b32.xlu0 %v4185_v15, %s4278_s2 }
 0xd37   : > { %2841 = vperm.xlu0 %4141, %v2838_v9  }
 0xd3b   : > { %2908 = vrot.lane.b32.xlu0 %v4844_v20, %s5224_s25 }
 0xda1   : > { %v2300_v21 = vpop.permute.xlu0 %2299 }
 0xda2   : > { %4078 = vmatpush3.bf16.msra.mxu0 %v2300_v21 }
 0xda3   : > { %4079 = vmatprep.subr.bf16.mxu0 %v4275_v45 }
 0xda5   : > { %v2362_v23 = vpop.permute.xlu0 %2361 }
 0xda6   : > { %4080 = vmatpush3.bf16.msra.mxu0 %v2298_v22  ;;  %4086 = vmatpush3.bf16.msra.mxu1 %v2362_v23 }
 0xda7   : > { %4087 = vmatprep.subr.bf16.mxu1 %v4275_v45  ;;  %4093 = vmatprep.subr.bf16.mxu0 %v4275_v45 }
 0xda9   : > { %4082 = vmatmul.mubr.msk.bf16.vlgmr.msra.gmra.mxu0 %vm662_vm4, %v4186_v24 }
 0xdaa   : > { %4088 = vmatpush3.bf16.msra.mxu1 %v2360_v27  ;;  %4094 = vmatpush3.bf16.msra.mxu0 %v2300_v21 }
 0xdab   : > { %4095 = vmatprep.subr.bf16.mxu0 %v4275_v45  ;;  %4097 = vmatprep.mubr.msk.bf16.mxu0 %vm4276_vm3, %v4275_v45  ;;  %v4189_v45 = vld [vmem:[%s5187_s18 + $0x30] ss:$8 sps:$4 sm:$0xff]  }
 0xdac   : > { %2529 = vmatprep.subr.bf16.mxu1 %v4194_v25 }
 0xdad   : > { %4090 = vmatmul.mubr.msk.bf16.vlgmr.msra.gmra.mxu1 %vm662_vm4, %v4187_v28 }
 0xdae   : > { %4096 = vmatpush3.bf16.msra.mxu0 %v2298_v22  ;;  %2530 = vmatpush1.bf16.msra.mxu1 %v4192_v29 }
 0xdaf   : > { %2613 = vmatprep.subr.bf16.mxu0 %v4191_v30  ;;  %2531 = vmatprep.subr.bf16.mxu1 %v4200_v31 }
 0xdb0   : > { %2553 = vmatprep.mubr.bf16.mxu1 %v4712_v52 }
 0xdb1   : > { %4098 = vmatmul.mubr.msk.bf16.vlgmr.msra.gmra.mxu0 %vm662_vm4, %v4188_v32 }
 0xdb2   : > { %2614 = vmatpush1.bf16.msra.mxu0 %v4189_v45  ;;  %2532 = vmatpush1.bf16.msra.mxu1 %v4198_v33  ;;  %v2948_v33 = vshrl.u32 %v4828_v5, 16 }
 0xdb3   : > { %2615 = vmatprep.subr.bf16.mxu0 %v4197_v34  ;;  %2533 = vmatprep.subr.bf16.mxu1 %v4206_v35  ;;  %v2955_v34 = vshrl.u32 %v4831_v14, 16 }
 0xdb4   : > { %2637 = vmatprep.mubr.bf16.mxu0 %v4712_v52 }
 0xdb6   : > { %2616 = vmatpush1.bf16.msra.mxu0 %v4195_v36  ;;  %2534 = vmatpush1.bf16.msra.mxu1 %v4204_v37 }
 0xdb7   : > { %2617 = vmatprep.subr.bf16.mxu0 %v4203_v38  ;;  %2535 = vmatprep.subr.bf16.mxu1 %v4212_v42  ;;  %v2949_v42 = vpack.i.b16 %v2948_v33, %v2948_v33 }
 0xdb9   : > { %v2954_v5 = vrot.slane %v2949_v42, %v4454_v11 }
 0xdba   : > { %2618 = vmatpush1.bf16.msra.mxu0 %v4201_v39  ;;  %2536 = vmatpush1.bf16.msra.mxu1 %v4210_v44 }
 0xdbb   : > { %2619 = vmatprep.subr.bf16.mxu0 %v4209_v40  ;;  %2707 = vmatprep.subr.bf16.mxu1 %v4218_v46 }
 0xdbe   : > { %2620 = vmatpush1.bf16.msra.mxu0 %v4207_v41 }
 0xdbf   : > { %2803 = vmatprep.subr.bf16.mxu0 %v4215_v43  ;;  %v2956_v43 = vpack.i.b16 %v2955_v34, %v2955_v34 }
 0xdc1   : > { %v2961_v14 = vrot.slane %v2956_v43, %v4454_v11 }
 0xe69   : > { %v2341_v47 = vpop.f32.mrf.mxu0 }
 0xe6a   : > { %v2458_v49 = vpack.c.bf16 %v2341_v47, %v2341_v47  ;;  %v2842_v47 = vpop.permute.xlu0 %2841 }
 0xe6b   : > { %v4083_v51 = vpop.f32.mrf.mxu0 }
 0xe6c   : > { %3886 = vmatmul.mubr.msk.bf16.vlgmr.msra.gmra.mxu0 %vm2517_vm9, %v2458_v49 }
 0xe6d   : > { %2804 = vmatpush1.bf16.msra.mxu0 %v4213_v48  ;;  %v2344_v53 = vpop.f32.mrf.mxu0  ;;  %v2402_v57 = vpop.f32.mrf.mxu1  ;;  %2827 = vmatprep.mubr.bf16.mxu0 %v4712_v52 }
 0xe6e   : > { %v2467_v58 = vpack.c.bf16 %v2344_v53, %v2344_v53  ;;  %2805 = vmatprep.subr.bf16.mxu0 %v4221_v50  ;;  %v4977_v53 = vcombine.low %v2954_v5, %v2961_v14  ;;  %v2909_v11 = vpop.permute.xlu0 %2908  ;;  %v5049_v5 = vld [vmem:[#allocation8] sm:$0xff] }
 0xe6f   : > { %v4084_v61 = vpop.f32.mrf.mxu0  ;;  %v4091_v26 = vpop.f32.mrf.mxu1 }
 0xe70   : > { %3877 = vmatmul.mubr.msk.bf16.vlgmr.msra.gmra.mxu1 %vm2517_vm9, %v2467_v58  ;;  %v2944_v61 = vld [vmem:[#allocation7 + $0x18] sm:$0xff] }
 0xe71   : > { %2708 = vmatpush1.bf16.msra.mxu1 %v4216_v54  ;;  %2806 = vmatpush1.bf16.msra.mxu0 %v4219_v55  ;;  %v2451_v62 = vpop.f32.mrf.mxu0  ;;  %v2405_v3 = vpop.f32.mrf.mxu1 }
 0xe72   : > { %2709 = vmatprep.subr.bf16.mxu1 %v4224_v59  ;;  %2807 = vmatprep.subr.bf16.mxu0 %v4227_v60  ;;  %v2452_v9 = vadd.f32 %v2451_v62, %v2402_v57  ;;  %v2945_v60 = vld [vmem:[#allocation7 + $0x20] sm:$0xf] }
 0xe73   : > { %v4099_v7 = vpop.f32.mrf.mxu0  ;;  %v4092_v8 = vpop.f32.mrf.mxu1  ;;  %2731 = vmatprep.mubr.bf16.mxu1 %v4712_v52 }
 0xe74   : > { %v2646_v21 = vpack.c.bf16 %v2452_v9, %v2452_v9 }
 0xe75   : > { %2710 = vmatpush1.bf16.msra.mxu1 %v4222_v0  ;;  %2808 = vmatpush1.bf16.msra.mxu0 %v4225_v2  ;;  %v2454_v10 = vpop.f32.mrf.mxu0  ;;  %v2910_v2 = vrot.slane %v2909_v11, 4 }
 0xe76   : > { %v2455_v15 = vadd.f32 %v2454_v10, %v2405_v3  ;;  %2711 = vmatprep.subr.bf16.mxu1 %v4230_v4  ;;  %2809 = vmatprep.subr.bf16.mxu0 %v4233_v6 }
 0xe77   : > { %v4100_v17 = vpop.f32.mrf.mxu0  ;;  %v2911_v8 = vsel %vm720_vm8, %v2910_v2, %v2909_v11 }
 0xe78   : > { %v2742_v18 = vpack.c.bf16 %v2455_v15, %v2455_v15 }
 0xe79   : > { %2712 = vmatpush1.bf16.msra.mxu1 %v4228_v12  ;;  %2810 = vmatpush1.bf16.msra.mxu0 %v4231_v13  ;;  %v4253_v12 = vld [vmem:[#allocation7 + $0x18] sm:$0xff] }
 0xe7a   : > { %2713 = vmatprep.subr.bf16.mxu1 %v4236_v16  ;;  %v2914_v13 = vmul.bf16 %v4253_v12, %v2911_v8  ;;  %v2863_v16 = vld [vmem:[#allocation7 + $0x20] sm:$0xf] }
 0xe7c   : > { %3920 = vmatmul.mubr.msk.bf16.vlgmr.msra.gmra.mxu0 %vm2517_vm9, %v2742_v18  ;;  %v2915_v18 = vmul.bf16 %v2910_v2, %v2863_v16 }
 0xe7d   : > { %2714 = vmatpush1.bf16.msra.mxu1 %v4234_v19  ;;  %3198 = vmatprep.mubr.bf16.mxu0 %v4712_v52 }
 0xe80   : > { %3903 = vmatmul.mubr.msk.bf16.vlgmr.msra.gmra.mxu1 %vm2517_vm9, %v2646_v21 }
 0xe81   : > { %3124 = vmatprep.mubr.bf16.mxu1 %v4712_v52 }
 0xf2c   : > { %v2639_v22 = vpop.f32.mrf.mxu0 }
 0xf2e   : > { %v2641_v23 = vpop.f32.mrf.mxu0 }
 0xf30   : > { %v2555_v24 = vpop.f32.mrf.mxu1  ;;  %v2643_v25 = vpop.f32.mrf.mxu0 }
 0xf31   : > { %v2640_v45 = vadd.f32 %v2639_v22, %v2555_v24 }
 0xf32   : > { %v2557_v27 = vpop.f32.mrf.mxu1  ;;  %v2644_v28 = vpop.f32.mrf.mxu0 }
 0xf33   : > { %v2642_v37 = vadd.f32 %v2641_v23, %v2557_v27 }
 0xf34   : > { %v2559_v29 = vpop.f32.mrf.mxu1 }
 0xf36   : > { %v2560_v30 = vpop.f32.mrf.mxu1 }
 0xf3c   : > { %v2829_v31 = vpop.f32.mrf.mxu0 }
 0xf3e   : > { %v2831_v32 = vpop.f32.mrf.mxu0 }
 0xf40   : > { %v2733_v35 = vpop.f32.mrf.mxu1  ;;  %v2833_v36 = vpop.f32.mrf.mxu0 }
 0xf41   : > { %v2740_v38 = vadd.f32 %v2733_v35, %v2640_v45 }
 0xf42   : > { %v2735_v52 = vpop.f32.mrf.mxu1  ;;  %v2834_v39 = vpop.f32.mrf.mxu0 }
 0xf43   : > { %v2836_v40 = vadd.f32 %v2829_v31, %v2740_v38  ;;  %v2741_v41 = vadd.f32 %v2735_v52, %v2642_v37 }
 0xf44   : > { %v2737_v44 = vpop.f32.mrf.mxu1 }
 0xf45   : > { %v2837_v46 = vadd.f32 %v2831_v32, %v2741_v41  ;;  %v2844_v49 = vadd.f32 %v2842_v47, %v2836_v40 }
 0xf46   : > { %v2738_v48 = vpop.f32.mrf.mxu1 }
 0xf47   : > { %v2845_v50 = vadd.f32 %v2842_v47, %v2837_v46 }
 0xf49   : > { %v3969_v51 = vpack.c.bf16 %v2845_v50, %v2844_v49  ;;  %v3285_v50 = vld [vmem:[%s5181_s12] sm:$0xff] }
 0xf4b   : > { %2853 = vrot.lane.b32.xlu1 %v3969_v51, %s5223_s24 }
 0xf4f   : > { %2967 = vrot.lane.b32.xlu1 %v4977_v53, %s5222_s29 }
 0xfbd   : > { %v2854_v54 = vpop.permute.xlu1 %2853 }
 0xfbe   : > { %v2855_v55 = vrot.slane %v2854_v54, 4 }
 0xfc0   : > { %v2856_v57 = vsel %vm662_vm4, %v2855_v55, %v2854_v54  ;;  %2860 = vst.msk [vmem:[#allocation7 + $0x2c] sm:$0xf] %vm1040_vm10, %v2855_v55 }
 0xfc1   : > { %2859 = vst.msk [vmem:[#allocation7 + $0x24] sm:$0xff] %vm4533_vm11, %v2856_v57  ;;  %v2968_v58 = vpop.permute.xlu1 %2967 }
 0xfc2   : > { %v2969_v59 = vrot.slane %v2968_v58, 4 }
 0xfc4   : > { %v2970_v26 = vsel %vm772_vm7, %v2969_v59, %v2968_v58  ;;  %v2974_v62 = vmul.bf16 %v2969_v59, %v2945_v60 }
 0xfc5   : > { %v2973_v0 = vmul.bf16 %v2970_v26, %v2944_v61 }
 0xfc6   : > { %2983 = vrot.lane.b32.xlu0 %v2974_v62, %s5226_s26 }
 0xfc7   : > { %v2947_v3 = vld [vmem:[#allocation7 + $0x2c] sm:$0xf]  ;;  %2981 = vrot.lane.b32.xlu1 %v2973_v0, %s5226_s26 }
 0xfc8   : > { %v2946_v4 = vld [vmem:[#allocation7 + $0x24] sm:$0xff]  ;;  %v2976_v6 = vmul.bf16 %v2969_v59, %v2947_v3  ;;  %v2865_v15 = vld [vmem:[#allocation7 + $0x2c] sm:$0xf] }
 0xfc9   : > { %v2975_v7 = vmul.bf16 %v2970_v26, %v2946_v4  ;;  %v2916_v10 = vmul.bf16 %v2946_v4, %v2911_v8  ;;  %v2917_v17 = vmul.bf16 %v2910_v2, %v2865_v15  ;;  %v4237_v19 = vld [vmem:[#allocation7 + $0x20] ss:$12 sps:$4 sm:$0xff]   ;;  %v3930_v9 = vcombine.high %v2944_v61, %v2946_v4 }
 0xfca   : > { %2987 = vrot.lane.b32.xlu0 %v2976_v6, %s5226_s26  ;;  %v3929_v21 = vcombine.low %v2944_v61, %v2946_v4 }
 0xfcb   : > { %2985 = vrot.lane.b32.xlu1 %v2975_v7, %s5226_s26 }
 0xfce   : > { %2926 = vrot.lane.b32.xlu0 %v2916_v10, %s5225_s3 }
 0xfcf   : > { %2922 = vrot.lane.b32.xlu1 %v2914_v13, %s5225_s3 }
 0xfd2   : > { %2928 = vrot.lane.b32.xlu0 %v2917_v17, %s5225_s3 }
 0xfd3   : > { %2924 = vrot.lane.b32.xlu1 %v2915_v18, %s5225_s3 }
 0xfd6   : > { %3219 = vrot.lane.b32.xlu0 %v4237_v19, %s5229_s20 }
 0xfd7   : > { %3069 = vrot.lane.b32.xlu1 %v4237_v19, %s5230_s28 }
 0xfda   : > { %3067 = vrot.lane.b32.xlu0 %v3930_v9, %s5230_s28 }
 0xfdb   : > { %3143 = vrot.lane.b32.xlu1 %v4237_v19, %s5231_s21 }
 0xfde   : > { %3065 = vrot.lane.b32.xlu0 %v3929_v21, %s5230_s28 }
 0xfdf   : > { %3217 = vrot.lane.b32.xlu1 %v3930_v9, %s5229_s20 }
 0xfe2   : > { %3141 = vrot.lane.b32.xlu0 %v3930_v9, %s5231_s21 }
 0xfe3   : > { %3215 = vrot.lane.b32.xlu1 %v3929_v21, %s5229_s20 }
 0xfe6   : > { %3139 = vrot.lane.b32.xlu0 %v3929_v21, %s5231_s21 }
0x1038   : > { %v2984_v22 = vpop.permute.xlu0 %2983 }
0x1039   : > { %v2990_v23 = vrot.slane %v2984_v22, 4  ;;  %3002 = vst.msk [vmem:[#allocation7 + $0x38] sm:$0xf] %vm1040_vm10, %v2984_v22  ;;  %v2982_v24 = vpop.permute.xlu1 %2981 }
0x103a   : > { %v2989_v25 = vrot.slane %v2982_v24, 4 }
0x103c   : > { %v2993_v27 = vsel %vm790_vm12, %v2989_v25, %v2990_v23  ;;  %v2988_v28 = vpop.permute.xlu0 %2987  ;;  %v3005_v25 = vld [vmem:[%s5180_s11] sm:$0xf] }
0x103d   : > { %v2994_v29 = vsel %vm792_vm13, %v2982_v24, %v2993_v27  ;;  %v2992_v30 = vrot.slane %v2988_v28, 4  ;;  %3004 = vst.msk [vmem:[#allocation7 + $0x44] sm:$0xf] %vm1040_vm10, %v2988_v28  ;;  %v2986_v31 = vpop.permute.xlu1 %2985 }
0x103e   : > { %3001 = vst.msk [vmem:[#allocation7 + $0x30] sm:$0xff] %vm4533_vm11, %v2994_v29  ;;  %v2991_v32 = vrot.slane %v2986_v31, 4  ;;  %v3925_v29 = vld [vmem:[%s5180_s11 + $0x4] sm:$0xf] }
0x1040   : > { %v2995_v45 = vsel %vm790_vm12, %v2991_v32, %v2992_v30  ;;  %v2927_v33 = vpop.permute.xlu0 %2926 }
0x1041   : > { %v2996_v34 = vsel %vm792_vm13, %v2986_v31, %v2995_v45  ;;  %v2931_v35 = vrot.slane %v2927_v33, 4  ;;  %v2923_v36 = vpop.permute.xlu1 %2922 }
0x1042   : > { %3003 = vst.msk [vmem:[#allocation7 + $0x3c] sm:$0xff] %vm4533_vm11, %v2996_v34  ;;  %v2930_v37 = vrot.slane %v2923_v36, 4 }
0x1043   : > { %v2934_v38 = vsel %vm737_vm15, %v2931_v35, %v2927_v33 }
0x1044   : > { %2942 = vst.msk [vmem:[#allocation7 + $0xc] sm:$0xff] %vm4533_vm11, %v2934_v38  ;;  %v2932_v52 = vsel %vm737_vm15, %v2930_v37, %v2923_v36  ;;  %v2929_v39 = vpop.permute.xlu0 %2928  ;;  %v4240_v40 = vld [vmem:[#allocation7 + $0x38] ss:$12 sps:$4 sm:$0xff]  }
0x1045   : > { %2940 = vst.msk [vmem:[#allocation7] sm:$0xff] %vm4533_vm11, %v2932_v52  ;;  %v2935_v41 = vsel %vm737_vm15, %v2931_v35, %v2929_v39  ;;  %v2925_v42 = vpop.permute.xlu1 %2924  ;;  %3149 = vrot.lane.b32.xlu1 %v4240_v40, %s5231_s21  ;;  %3075 = vrot.lane.b32.xlu0 %v4240_v40, %s5230_s28  ;;  %v3937_v38 = vld [vmem:[%s5180_s11 + $0x8] sm:$0xf] }
0x1046   : > { %2943 = vst.msk [vmem:[#allocation7 + $0x14] sm:$0xf] %vm1040_vm10, %v2935_v41  ;;  %v2933_v43 = vsel %vm737_vm15, %v2930_v37, %v2925_v42 }
0x1047   : > { %2941 = vst.msk [vmem:[#allocation7 + $0x8] sm:$0xf] %vm1040_vm10, %v2933_v43 }
0x1048   : > { %v3220_v14 = vpop.permute.xlu0 %3219 }
0x1049   : > { %3225 = vrot.lane.b32.xlu0 %v4240_v40, %s5229_s20  ;;  %v4245_v48 = vld [vmem:[#allocation7 + $0x34] ss:$12 sps:$4 sm:$0xff]   ;;  %v4247_v49 = vld [vmem:[#allocation7 + $0x30] ss:$12 sps:$4 sm:$0xff]   ;;  %v3070_v54 = vpop.permute.xlu1 %3069 }
0x104c   : > { %v4241_v44 = vld [vmem:[#allocation7 + $0x4] ss:$12 sps:$4 sm:$0xff]   ;;  %v4244_v47 = vld [vmem:[#allocation7] ss:$12 sps:$4 sm:$0xff]   ;;  %v3068_v51 = vpop.permute.xlu0 %3067 }
0x104d   : > { %3061 = vrot.lane.b32.xlu1 %v4241_v44, %s5230_s28  ;;  %v3144_v57 = vpop.permute.xlu1 %3143  ;;  %v3080_v16 = vsel %vm824_vm0, %v3068_v51, %v3070_v54 }
0x104e   : > { %v4243_v46 = vld [vmem:[#allocation7 + $0x8] ss:$12 sps:$4 sm:$0xff]  }
0x104f   : > { %3063 = vrot.lane.b32.xlu0 %v4243_v46, %s5230_s28 }
0x1050   : > { %v3066_v55 = vpop.permute.xlu0 %3065 }
0x1051   : > { %3059 = vrot.lane.b32.xlu1 %v4244_v47, %s5230_s28  ;;  %v3218_v59 = vpop.permute.xlu1 %3217  ;;  %v3079_v19 = vsel %vm824_vm0, %v3066_v55, %v3068_v51 }
0x1052   : > { %v3230_v32 = vsel %vm946_vm5, %v3218_v59, %v3220_v14 }
0x1053   : > { %3147 = vrot.lane.b32.xlu0 %v4245_v48, %s5231_s21 }
0x1054   : > { %v3142_v58 = vpop.permute.xlu0 %3141 }
0x1055   : > { %3073 = vrot.lane.b32.xlu1 %v4245_v48, %s5230_s28  ;;  %v3216_v60 = vpop.permute.xlu1 %3215  ;;  %v3154_v12 = vsel %vm885_vm2, %v3142_v58, %v3144_v57 }
0x1056   : > { %v3229_v34 = vsel %vm946_vm5, %v3216_v60, %v3218_v59 }
0x1057   : > { %3145 = vrot.lane.b32.xlu0 %v4247_v49, %s5231_s21 }
0x1058   : > { %v3140_v11 = vpop.permute.xlu0 %3139 }
0x1059   : > { %3071 = vrot.lane.b32.xlu1 %v4247_v49, %s5230_s28  ;;  %v3153_v17 = vsel %vm885_vm2, %v3140_v11, %v3142_v58 }
0x105b   : > { %3135 = vrot.lane.b32.xlu0 %v4241_v44, %s5231_s21 }
0x105d   : > { %3137 = vrot.lane.b32.xlu1 %v4243_v46, %s5231_s21 }
0x105f   : > { %3133 = vrot.lane.b32.xlu0 %v4244_v47, %s5231_s21 }
0x1061   : > { %3223 = vrot.lane.b32.xlu1 %v4245_v48, %s5229_s20 }
0x1063   : > { %3213 = vrot.lane.b32.xlu0 %v4243_v46, %s5229_s20 }
0x1065   : > { %3221 = vrot.lane.b32.xlu1 %v4247_v49, %s5229_s20 }
0x1067   : > { %3288 = vperm.xlu0 %4141, %v3285_v50  }
0x1069   : > { %3211 = vrot.lane.b32.xlu1 %v4241_v44, %s5229_s20 }
0x106b   : > { %4143 = vset.pattern.permute.xlu0 %v4274_v1 }
0x106c   : > { %3302 = vperm.xlu0 %4143, %v3285_v50  }
0x106d   : > { %3209 = vrot.lane.b32.xlu1 %v4244_v47, %s5229_s20 }
0x1070   : > { %3367 = vrot.lane.b32.xlu0 %v4844_v20, %s5224_s25 }
0x1071   : > { %3296 = vperm.xlu1 %4142, %v3285_v50   ;;  %4145 = vset.pattern.permute.xlu0 %v4272_v63 }
0x1075   : > { %4144 = vset.pattern.permute.xlu1 %v5049_v5 }
0x10b7   : > { %v3076_v61 = vpop.permute.xlu0 %3075  ;;  %v3150_v26 = vpop.permute.xlu1 %3149 }
0x10bb   : > { %v3226_v62 = vpop.permute.xlu0 %3225 }
0x10bf   : > { %v3062_v20 = vpop.permute.xlu1 %3061 }
0x10c1   : > { %v3064_v0 = vpop.permute.xlu0 %3063 }
0x10c2   : > { %v3078_v22 = vsel %vm824_vm0, %v3062_v20, %v3064_v0 }
0x10c3   : > { %v3060_v2 = vpop.permute.xlu1 %3059 }
0x10c4   : > { %v3077_v27 = vsel %vm824_vm0, %v3060_v2, %v3062_v20 }
0x10c5   : > { %v3148_v63 = vpop.permute.xlu0 %3147 }
0x10c6   : > { %v3156_v3 = vsel %vm885_vm2, %v3148_v63, %v3150_v26 }
0x10c7   : > { %v3074_v4 = vpop.permute.xlu1 %3073  ;;  %3176 = vmatprep.subr.bf16.mxu0 %v3156_v3 }
0x10c8   : > { %v3082_v6 = vsel %vm824_vm0, %v3074_v4, %v3076_v61 }
0x10c9   : > { %3102 = vmatprep.subr.bf16.mxu1 %v3082_v6  ;;  %v3146_v7 = vpop.permute.xlu0 %3145 }
0x10ca   : > { %v3155_v8 = vsel %vm885_vm2, %v3146_v7, %v3148_v63 }
0x10cb   : > { %v3072_v10 = vpop.permute.xlu1 %3071  ;;  %3177 = vmatpush1.bf16.msra.mxu0 %v3155_v8 }
0x10cc   : > { %v3081_v13 = vsel %vm824_vm0, %v3072_v10, %v3074_v4  ;;  %3178 = vmatprep.subr.bf16.mxu0 %v3154_v12 }
0x10cd   : > { %3103 = vmatpush1.bf16.msra.mxu1 %v3081_v13  ;;  %v3136_v15 = vpop.permute.xlu0 %3135 }
0x10ce   : > { %3104 = vmatprep.subr.bf16.mxu1 %v3080_v16 }
0x10cf   : > { %v3138_v18 = vpop.permute.xlu1 %3137  ;;  %3179 = vmatpush1.bf16.msra.mxu0 %v3153_v17 }
0x10d0   : > { %v3152_v9 = vsel %vm885_vm2, %v3136_v15, %v3138_v18 }
0x10d1   : > { %3105 = vmatpush1.bf16.msra.mxu1 %v3079_v19  ;;  %3180 = vmatprep.subr.bf16.mxu0 %v3152_v9  ;;  %v3134_v21 = vpop.permute.xlu0 %3133 }
0x10d2   : > { %v3151_v23 = vsel %vm885_vm2, %v3134_v21, %v3136_v15  ;;  %3106 = vmatprep.subr.bf16.mxu1 %v3078_v22 }
0x10d3   : > { %v3224_v24 = vpop.permute.xlu1 %3223  ;;  %3181 = vmatpush1.bf16.msra.mxu0 %v3151_v23 }
0x10d4   : > { %v3232_v28 = vsel %vm946_vm5, %v3224_v24, %v3226_v62 }
0x10d5   : > { %3107 = vmatpush1.bf16.msra.mxu1 %v3077_v27  ;;  %v3214_v45 = vpop.permute.xlu0 %3213 }
0x10d6   : > { %3252 = vmatprep.subr.bf16.mxu1 %v3232_v28  ;;  %3936 = vmatmul.mubr.msk.bf16.vlgmr.msra.gmra.mxu0 %vm2031_vm6, %v3005_v25 }
0x10d7   : > { %v3222_v30 = vpop.permute.xlu1 %3221  ;;  %3520 = vmatprep.mubr.bf16.mxu0 %v5049_v5 }
0x10d8   : > { %v3231_v31 = vsel %vm946_vm5, %v3222_v30, %v3224_v24  ;;  %3935 = vmatmul.mubr.msk.bf16.vlgmr.msra.gmra.mxu1 %vm2031_vm6, %v3925_v29 }
0x10d9   : > { %3253 = vmatpush1.bf16.msra.mxu1 %v3231_v31  ;;  %3274 = vmatprep.mubr.bf16.mxu1 %v5049_v5 }
0x10da   : > { %3254 = vmatprep.subr.bf16.mxu1 %v3230_v32 }
0x10db   : > { %v3212_v33 = vpop.permute.xlu1 %3211 }
0x10dc   : > { %v3228_v35 = vsel %vm946_vm5, %v3212_v33, %v3214_v45 }
0x10dd   : > { %3255 = vmatpush1.bf16.msra.mxu1 %v3229_v34 }
0x10de   : > { %3256 = vmatprep.subr.bf16.mxu1 %v3228_v35 }
0x10df   : > { %v3210_v36 = vpop.permute.xlu1 %3209 }
0x10e0   : > { %v3227_v37 = vsel %vm946_vm5, %v3210_v36, %v3212_v33 }
0x10e1   : > { %3257 = vmatpush1.bf16.msra.mxu1 %v3227_v37 }
0x10e2   : > { %v3289_v14 = vpop.permute.xlu0 %3288 }
0x10e4   : > { %3938 = vmatmul.mubr.msk.bf16.vlgmr.msra.gmra.mxu1 %vm2031_vm6, %v3937_v38 }
0x10e5   : > { %3658 = vmatprep.mubr.bf16.mxu1 %v5049_v5 }
0x10e7   : > { %v3303_v62 = vpop.permute.xlu0 %3302 }
0x10eb   : > { %v3368_v8 = vpop.permute.xlu0 %3367 }
0x10ec   : > { %v3297_v58 = vpop.permute.xlu1 %3296  ;;  %v3369_v12 = vrot.slane %v3368_v8, 4 }
0x10ee   : > { %v3370_v19 = vsel %vm720_vm8, %v3369_v12, %v3368_v8 }
0x1196   : > { %v3200_v52 = vpop.f32.mrf.mxu0 }
0x1198   : > { %v3126_v39 = vpop.f32.mrf.mxu1  ;;  %v3202_v40 = vpop.f32.mrf.mxu0 }
0x1199   : > { %v3201_v47 = vadd.f32 %v3200_v52, %v3126_v39  ;;  %v3669_v39 = vld [vmem:[%s5183_s14] sm:$0xff] }
0x119a   : > { %v3128_v41 = vpop.f32.mrf.mxu1  ;;  %v3204_v42 = vpop.f32.mrf.mxu0 }
0x119b   : > { %v3203_v49 = vadd.f32 %v3202_v40, %v3128_v41 }
0x119c   : > { %v3130_v43 = vpop.f32.mrf.mxu1  ;;  %v3205_v44 = vpop.f32.mrf.mxu0 }
0x119e   : > { %v3131_v46 = vpop.f32.mrf.mxu1 }
0x11a4   : > { %v3276_v48 = vpop.f32.mrf.mxu1 }
0x11a5   : > { %v3283_v50 = vadd.f32 %v3276_v48, %v3201_v47 }
0x11a6   : > { %v3278_v51 = vpop.f32.mrf.mxu1 }
0x11a7   : > { %v3291_v54 = vadd.f32 %v3289_v14, %v3283_v50  ;;  %v3284_v55 = vadd.f32 %v3278_v51, %v3203_v49 }
0x11a8   : > { %v3280_v57 = vpop.f32.mrf.mxu1 }
0x11a9   : > { %v3293_v59 = vmax.f32 %v3291_v54, 0.0  ;;  %v3292_v11 = vadd.f32 %v3289_v14, %v3284_v55 }
0x11aa   : > { %v3281_v60 = vpop.f32.mrf.mxu1 }
0x11ab   : > { %v3294_v61 = vmax.f32 %v3292_v11, 0.0  ;;  %v3299_v26 = vmul.f32 %v3297_v58, %v3293_v59 }
0x11ad   : > { %v3300_v20 = vmul.f32 %v3297_v58, %v3294_v61  ;;  %v3305_v0 = vadd.f32 %v3303_v62, %v3299_v26  ;;  %v3943_v26 = vld [vmem:[%s5182_s13 + $0x4] sm:$0xf] }
0x11af   : > { %v3306_v2 = vadd.f32 %v3303_v62, %v3300_v20 }
0x11b1   : > { %v3970_v63 = vpack.c.bf16 %v3306_v2, %v3305_v0 }
0x11b3   : > { %3314 = vrot.lane.b32.xlu1 %v3970_v63, %s5223_s24 }
0x11b7   : > { %3409 = vrot.lane.b32.xlu1 %v4977_v53, %s5222_s29 }
0x1225   : > { %v3315_v3 = vpop.permute.xlu1 %3314 }
0x1226   : > { %v3316_v4 = vrot.slane %v3315_v3, 4 }
0x1228   : > { %v3317_v6 = vsel %vm662_vm4, %v3316_v4, %v3315_v3  ;;  %3321 = vst.msk [vmem:[#allocation8 + $0x14] sm:$0xf] %vm1040_vm10, %v3316_v4 }
0x1229   : > { %3320 = vst.msk [vmem:[#allocation8 + $0xc] sm:$0xff] %vm4533_vm11, %v3317_v6  ;;  %v3410_v7 = vpop.permute.xlu1 %3409 }
0x122a   : > { %v3411_v10 = vrot.slane %v3410_v7, 4 }
0x122c   : > { %v3412_v16 = vsel %vm772_vm7, %v3411_v10, %v3410_v7 }
0x122f   : > { %v3389_v13 = vld [vmem:[#allocation8 + $0x14] sm:$0xf] }
0x1230   : > { %v3388_v15 = vld [vmem:[#allocation8 + $0xc] sm:$0xff]  ;;  %v3416_v17 = vmul.bf16 %v3411_v10, %v3389_v13  ;;  %v3324_v53 = vld [vmem:[#allocation8 + $0x14] sm:$0xf]  ;;  %v3431_v10 = vld [vmem:[%s5182_s13] sm:$0xf] }
0x1231   : > { %v3415_v18 = vmul.bf16 %v3412_v16, %v3388_v15  ;;  %v3374_v9 = vmul.bf16 %v3369_v12, %v3324_v53  ;;  %v3373_v21 = vmul.bf16 %v3388_v15, %v3370_v19 }
0x1232   : > { %3421 = vrot.lane.b32.xlu0 %v3416_v17, %s5226_s26 }
0x1233   : > { %3419 = vrot.lane.b32.xlu1 %v3415_v18, %s5226_s26 }
0x1236   : > { %3379 = vrot.lane.b32.xlu0 %v3374_v9, %s5225_s3 }
0x1237   : > { %3377 = vrot.lane.b32.xlu1 %v3373_v21, %s5225_s3 }
0x12a4   : > { %v3422_v22 = vpop.permute.xlu0 %3421 }
0x12a5   : > { %v3424_v23 = vrot.slane %v3422_v22, 4  ;;  %3430 = vst.msk [vmem:[#allocation8 + $0x20] sm:$0xf] %vm1040_vm10, %v3422_v22  ;;  %v3420_v24 = vpop.permute.xlu1 %3419 }
0x12a6   : > { %v3423_v25 = vrot.slane %v3420_v24, 4 }
0x12a8   : > { %v3425_v27 = vsel %vm790_vm12, %v3423_v25, %v3424_v23  ;;  %v3380_v31 = vpop.permute.xlu0 %3379 }
0x12a9   : > { %v3426_v28 = vsel %vm792_vm13, %v3420_v24, %v3425_v27  ;;  %v3378_v29 = vpop.permute.xlu1 %3377 }
0x12aa   : > { %3429 = vst.msk [vmem:[#allocation8 + $0x18] sm:$0xff] %vm4533_vm11, %v3426_v28  ;;  %v3381_v30 = vrot.slane %v3378_v29, 4 }
0x12ac   : > { %v3382_v32 = vsel %vm737_vm15, %v3381_v30, %v3378_v29  ;;  %v3383_v45 = vsel %vm737_vm15, %v3381_v30, %v3380_v31  ;;  %v4248_v33 = vld [vmem:[#allocation8 + $0x20] ss:$0 sps:$4 sm:$0xff]  }
0x12ad   : > { %3386 = vst.msk [vmem:[#allocation8] sm:$0xff] %vm4533_vm11, %v3382_v32  ;;  %3609 = vrot.lane.b32.xlu0 %v4248_v33, %s5229_s20  ;;  %3471 = vrot.lane.b32.xlu1 %v4248_v33, %s5230_s28 }
0x12ae   : > { %3387 = vst.msk [vmem:[#allocation8 + $0x8] sm:$0xf] %vm1040_vm10, %v3383_v45 }
0x12b1   : > { %3539 = vrot.lane.b32.xlu1 %v4248_v33, %s5231_s21  ;;  %v3436_v38 = vld [vmem:[#allocation8 + $0x18] sm:$0xff] }
0x12b2   : > { %v3947_v56 = vcombine.low %v3436_v38, %v3436_v38  ;;  %v3948_v52 = vcombine.high %v3436_v38, %v3436_v38 }
0x12b4   : > { %v3432_v34 = vld [vmem:[#allocation8] sm:$0xff] }
0x12b5   : > { %v4249_v35 = vld [vmem:[#allocation8 + $0x8] ss:$12 sps:$4 sm:$0xff]   ;;  %v3945_v36 = vcombine.high %v3432_v34, %v3388_v15  ;;  %v3944_v37 = vcombine.low %v3432_v34, %v3388_v15 }
0x12b6   : > { %3465 = vrot.lane.b32.xlu1 %v4249_v35, %s5230_s28 }
0x12b7   : > { %3463 = vrot.lane.b32.xlu0 %v3945_v36, %s5230_s28 }
0x12ba   : > { %3531 = vrot.lane.b32.xlu1 %v3945_v36, %s5231_s21 }
0x12bb   : > { %3461 = vrot.lane.b32.xlu0 %v3944_v37, %s5230_s28 }
0x12be   : > { %3467 = vrot.lane.b32.xlu1 %v3947_v56, %s5230_s28 }
0x12bf   : > { %3533 = vrot.lane.b32.xlu0 %v4249_v35, %s5231_s21 }
0x12c2   : > { %3529 = vrot.lane.b32.xlu1 %v3944_v37, %s5231_s21 }
0x12c3   : > { %3469 = vrot.lane.b32.xlu0 %v3948_v52, %s5230_s28 }
0x12c6   : > { %3535 = vrot.lane.b32.xlu1 %v3947_v56, %s5231_s21 }
0x12c7   : > { %3537 = vrot.lane.b32.xlu0 %v3948_v52, %s5231_s21 }
0x12ca   : > { %3607 = vrot.lane.b32.xlu1 %v3948_v52, %s5229_s20 }
0x12cb   : > { %3605 = vrot.lane.b32.xlu0 %v3947_v56, %s5229_s20 }
0x12ce   : > { %3603 = vrot.lane.b32.xlu1 %v4249_v35, %s5229_s20 }
0x12cf   : > { %3601 = vrot.lane.b32.xlu0 %v3945_v36, %s5229_s20 }
0x12d2   : > { %3672 = vperm.xlu1 %4144, %v3669_v39  }
0x12d3   : > { %3599 = vrot.lane.b32.xlu0 %v3944_v37, %s5229_s20 }
0x12d6   : > { %4146 = vset.pattern.permute.xlu1 %v4274_v1 }
0x12d7   : > { %3680 = vperm.xlu0 %4145, %v3669_v39   ;;  %3686 = vperm.xlu1 %4146, %v3669_v39  }
0x12db   : > { %4147 = vset.pattern.permute.xlu0 %v4274_v1 }
0x131f   : > { %v3472_v40 = vpop.permute.xlu1 %3471  ;;  %v3610_v42 = vpop.permute.xlu0 %3609 }
0x1323   : > { %v3540_v41 = vpop.permute.xlu1 %3539 }
0x1328   : > { %v3466_v43 = vpop.permute.xlu1 %3465 }
0x1329   : > { %v3464_v44 = vpop.permute.xlu0 %3463 }
0x132a   : > { %v3474_v57 = vsel %vm824_vm0, %v3464_v44, %v3466_v43 }
0x132c   : > { %v3532_v46 = vpop.permute.xlu1 %3531 }
0x132d   : > { %v3462_v47 = vpop.permute.xlu0 %3461 }
0x132e   : > { %v3473_v59 = vsel %vm824_vm0, %v3462_v47, %v3464_v44 }
0x1330   : > { %v3468_v48 = vpop.permute.xlu1 %3467 }
0x1331   : > { %v3534_v49 = vpop.permute.xlu0 %3533 }
0x1332   : > { %v3542_v4 = vsel %vm885_vm2, %v3532_v46, %v3534_v49 }
0x1334   : > { %v3530_v50 = vpop.permute.xlu1 %3529 }
0x1335   : > { %v3470_v14 = vpop.permute.xlu0 %3469  ;;  %v3541_v8 = vsel %vm885_vm2, %v3530_v50, %v3532_v46 }
0x1336   : > { %v3475_v51 = vsel %vm824_vm0, %v3468_v48, %v3470_v14  ;;  %v3476_v54 = vsel %vm824_vm0, %v3470_v14, %v3472_v40 }
0x1337   : > { %v3483_v55 = vsel %vm790_vm12, %v3475_v51, 0  ;;  %3950 = vmatprep.subr.msk.bf16.mxu0 %vm790_vm12, %v3476_v54 }
0x1338   : > { %3501 = vmatpush1.bf16.msra.mxu0 %v3483_v55  ;;  %v3536_v1 = vpop.permute.xlu1 %3535 }
0x1339   : > { %3502 = vmatprep.subr.bf16.mxu0 %v3474_v57  ;;  %v3538_v58 = vpop.permute.xlu0 %3537 }
0x133a   : > { %v3543_v11 = vsel %vm885_vm2, %v3536_v1, %v3538_v58  ;;  %v3544_v60 = vsel %vm885_vm2, %v3538_v58, %v3540_v41 }
0x133b   : > { %v3551_v2 = vsel %vm790_vm12, %v3543_v11, 0 }
0x133c   : > { %3503 = vmatpush1.bf16.msra.mxu0 %v3473_v59  ;;  %v3608_v61 = vpop.permute.xlu1 %3607 }
0x133d   : > { %v3614_v62 = vsel %vm946_vm5, %v3608_v61, %v3610_v42  ;;  %3952 = vmatprep.subr.msk.bf16.mxu0 %vm790_vm12, %v3544_v60  ;;  %v3606_v20 = vpop.permute.xlu0 %3605 }
0x133e   : > { %v3613_v0 = vsel %vm946_vm5, %v3606_v20, %v3608_v61  ;;  %3955 = vmatprep.subr.msk.bf16.mxu1 %vm790_vm12, %v3614_v62 }
0x133f   : > { %v3621_v63 = vsel %vm790_vm12, %v3613_v0, 0  ;;  %3951 = vmatmul.mubr.msk.bf16.vlgmr.msra.gmra.mxu0 %vm1199_vm14, %v3943_v26 }
0x1340   : > { %3569 = vmatpush1.bf16.msra.mxu0 %v3551_v2  ;;  %3639 = vmatpush1.bf16.msra.mxu1 %v3621_v63  ;;  %v3604_v3 = vpop.permute.xlu1 %3603 }
0x1341   : > { %3570 = vmatprep.subr.bf16.mxu0 %v3542_v4  ;;  %v3602_v6 = vpop.permute.xlu0 %3601  ;;  %3588 = vmatprep.mubr.bf16.mxu0 %v5049_v5  ;;  %v3954_v5 = vld [vmem:[%s5182_s13 + $0x8] sm:$0xf] }
0x1342   : > { %v3612_v7 = vsel %vm946_vm5, %v3602_v6, %v3604_v3 }
0x1343   : > { %3640 = vmatprep.subr.bf16.mxu1 %v3612_v7 }
0x1344   : > { %3571 = vmatpush1.bf16.msra.mxu0 %v3541_v8 }
0x1345   : > { %v3600_v12 = vpop.permute.xlu0 %3599 }
0x1346   : > { %v3611_v13 = vsel %vm946_vm5, %v3600_v12, %v3602_v6 }
0x1347   : > { %3953 = vmatmul.mubr.msk.bf16.vlgmr.msra.gmra.mxu0 %vm1199_vm14, %v3431_v10  ;;  %3641 = vmatpush1.bf16.msra.mxu1 %v3611_v13 }
0x134a   : > { %3956 = vmatmul.mubr.msk.bf16.vlgmr.msra.gmra.mxu1 %vm1199_vm14, %v3954_v5 }
0x134d   : > { %v3673_v23 = vpop.permute.xlu1 %3672 }
0x1352   : > { %v3681_v32 = vpop.permute.xlu0 %3680  ;;  %v3687_v35 = vpop.permute.xlu1 %3686 }
0x13ff   : > { %v3522_v15 = vpop.f32.mrf.mxu0 }
0x1401   : > { %v3524_v16 = vpop.f32.mrf.mxu0 }
0x1403   : > { %v3526_v17 = vpop.f32.mrf.mxu0 }
0x1405   : > { %v3527_v18 = vpop.f32.mrf.mxu0 }
0x1407   : > { %v3590_v53 = vpop.f32.mrf.mxu0 }
0x1408   : > { %v3591_v19 = vadd.f32 %v3590_v53, %v3522_v15 }
0x1409   : > { %v3592_v9 = vpop.f32.mrf.mxu0 }
0x140a   : > { %v3593_v21 = vadd.f32 %v3592_v9, %v3524_v16  ;;  %v3660_v22 = vpop.f32.mrf.mxu1 }
0x140b   : > { %v3667_v24 = vadd.f32 %v3660_v22, %v3591_v19  ;;  %v3594_v25 = vpop.f32.mrf.mxu0 }
0x140c   : > { %v3662_v27 = vpop.f32.mrf.mxu1 }
0x140d   : > { %v3675_v28 = vadd.f32 %v3673_v23, %v3667_v24  ;;  %v3668_v29 = vadd.f32 %v3662_v27, %v3593_v21  ;;  %v3595_v30 = vpop.f32.mrf.mxu0 }
0x140e   : > { %v3664_v31 = vpop.f32.mrf.mxu1 }
0x140f   : > { %v3677_v45 = vmax.f32 %v3675_v28, 0.0  ;;  %v3676_v33 = vadd.f32 %v3673_v23, %v3668_v29 }
0x1410   : > { %v3665_v34 = vpop.f32.mrf.mxu1 }
0x1411   : > { %v3678_v36 = vmax.f32 %v3676_v33, 0.0  ;;  %v3683_v37 = vmul.f32 %v3681_v32, %v3677_v45 }
0x1413   : > { %v3684_v38 = vmul.f32 %v3681_v32, %v3678_v36  ;;  %v3689_v56 = vadd.f32 %v3687_v35, %v3683_v37 }
0x1415   : > { %v3690_v52 = vadd.f32 %v3687_v35, %v3684_v38  ;;  %3691 = vst [vmem:[%s602_s23] sm:$0xff] %v3689_v56 }
0x1417   : > { %3692 = vst [vmem:[%s602_s23 + $0x8] sm:$0xff] %v3690_v52 }
0x1418 PF: > { %s29_s0 = sadd.s32 1, %s4261_s0  }
0x1419   : > { %p26_p4 = scmp.ge.s32.totalorder %s29_s0, 4  }
0x141b   :  { %28 = sbr.rel (!%p26_p4) target bundleno = 8 (0x8), region = 143 }

</bundles_post_ra>
